<compile_context>
chip_gen: v5e
topology: v5e:2x2
jax: 0.10.0
libtpu: 0.0.40
codegen_flags: <defaults>
</compile_context>

<pallas_src>
import functools

import jax
import jax.numpy as jnp
from jax import lax
from jax.experimental import pallas as pl
from jax.experimental.pallas import tpu as pltpu

EPS = 1e-5


def _softmax(x, axis):
    m = jnp.max(x, axis=axis, keepdims=True)
    e = jnp.exp(x - m)
    # EUP approximate reciprocal: frees VALU slots next to the exp.
    return e * pl.reciprocal(jnp.sum(e, axis=axis, keepdims=True), approx=True)


# -----------------------------------------------------------------------------
# Kernel 1: fused projections + both attention branches + convExtension,
#           plus per-batch BN partial sums.  Grid = (B,).
# -----------------------------------------------------------------------------
def attention_kernel(x_ref, wP_ref, bP_ref, wE_ref, bE_ref,
                     e1_ref, e2_ref, s1_ref, q1_ref, s2_ref, q2_ref,
                     *, c_m, c_n):
    x = x_ref[0]                                                      # (HW, C)

    # One fused projection matmul for all six 1x1 convs.
    proj = jnp.dot(x, wP_ref[...],
                   preferred_element_type=jnp.float32) + bP_ref[...]  # (HW, 4c_m+2c_n)

    o = 0
    A = proj[:, o:o + c_m]; o += c_m                                  # (HW, c_m)
    Bc = proj[:, o:o + c_n]; o += c_n                                 # (HW, c_n)
    V = proj[:, o:o + c_n]; o += c_n                                  # (HW, c_n)
    A_S = proj[:, o:o + c_m]; o += c_m                                # (HW, c_m)
    B_S = proj[:, o:o + c_m]; o += c_m                                # (HW, c_m)
    V_S = proj[:, o:o + c_m]                                          # (HW, c_m)

    wE = wE_ref[...]
    bE = bE_ref[...]

    # ---------------- branch 1: channel attention (c_m x c_n) ---------------
    smB = _softmax(Bc, axis=0)          # torch: softmax over h*w positions
    smV = _softmax(V, axis=1)           # torch: softmax over c_n
    # G = smB^T @ A  -> (c_n, c_m)   (contract over HW)
    G = lax.dot_general(smB, A, (((0,), (0,)), ((), ())),
                        preferred_element_type=jnp.float32)
    Z1 = jnp.dot(smV, G, preferred_element_type=jnp.float32)          # (HW, c_m)
    E1 = jnp.dot(Z1, wE, preferred_element_type=jnp.float32) + bE     # (HW, C)
    e1_ref[0] = E1
    s1_ref[0] = jnp.sum(E1, axis=0, keepdims=True)                    # (1, C)
    q1_ref[0] = jnp.sum(E1 * E1, axis=0, keepdims=True)

    # ---------------- branch 2: spatial attention, re-associated ------------
    smB_S = _softmax(B_S, axis=1)       # torch: softmax over c_m
    smV_S = _softmax(V_S, axis=1)
    # Z2 = (A_S @ smB_S^T) @ smV_S == A_S @ (smB_S^T @ smV_S): no (HW,HW) blob.
    G2 = lax.dot_general(smB_S, smV_S, (((0,), (0,)), ((), ())),
                         preferred_element_type=jnp.float32)          # (c_m, c_m)
    Z2 = jnp.dot(A_S, G2, preferred_element_type=jnp.float32)         # (HW, c_m)
    # NOTE: torch forward reuses convExtension / bnZ (the *_S copies are dead).
    E2 = jnp.dot(Z2, wE, preferred_element_type=jnp.float32) + bE     # (HW, C)
    e2_ref[0] = E2
    s2_ref[0] = jnp.sum(E2, axis=0, keepdims=True)
    q2_ref[0] = jnp.sum(E2 * E2, axis=0, keepdims=True)


# -----------------------------------------------------------------------------
# Kernel 2: BN(batch stats) + ReLU both branches + residual + 3x3 conv,
#           all in lane-dense (H, W*C) layout.  Grid = (B,).
# The conv is: for each vertical tap dy, Y = t @ Mband[dy] (block-banded
# horizontal taps + channel mixing), then out += Vshift[dy] @ Y.
# -----------------------------------------------------------------------------
def bn_relu_conv_kernel(e1_ref, e2_ref, x_ref,
                        sc1_ref, sh1_ref, sc2_ref, sh2_ref,
                        mband_ref, vshift_ref, bias_ref, out_ref):
    n1 = jnp.maximum(e1_ref[0] * sc1_ref[...] + sh1_ref[...], 0.0)
    n2 = jnp.maximum(e2_ref[0] * sc2_ref[...] + sh2_ref[...], 0.0)
    t = n1 + n2 + x_ref[0]                                            # (H, W*C)

    acc = None
    for dy in range(3):                                               # unrolled
        y = jnp.dot(t, mband_ref[dy], preferred_element_type=jnp.float32)
        c = jnp.dot(vshift_ref[dy], y, preferred_element_type=jnp.float32)
        acc = c if acc is None else acc + c
    out_ref[0] = acc + bias_ref[...]


# -----------------------------------------------------------------------------
# Wrapper
# -----------------------------------------------------------------------------
def double_double_attention_norm(x_nchw, p):
    B, C, H, W = x_nchw.shape
    HW, WC = H * W, W * C
    f32 = jnp.float32
    c_m = p['wA'].shape[1]
    c_n = p['wB'].shape[1]
    P = 4 * c_m + 2 * c_n

    x_hwc = jnp.transpose(x_nchw, (0, 2, 3, 1)).reshape(B, HW, C).astype(f32)

    # Fuse all six 1x1-conv weights / biases into single arrays.
    wP = jnp.concatenate([p['wA'], p['wB'], p['wV'],
                          p['wAS'], p['wBS'], p['wVS']], axis=1)      # (C, P)
    bP = jnp.concatenate([p['bA'], p['bB'], p['bV'],
                          p['bAS'], p['bBS'], p['bVS']], axis=1)      # (1, P)

    bmap3 = lambda b: (b, 0, 0)     # per-batch 3D block
    rep2 = lambda b: (0, 0)         # replicated 2D block
    rep3 = lambda b: (0, 0, 0)      # replicated 3D block

    e1, e2, s1, q1, s2, q2 = pl.pallas_call(
        functools.partial(attention_kernel, c_m=c_m, c_n=c_n),
        out_shape=(jax.ShapeDtypeStruct((B, HW, C), f32),
                   jax.ShapeDtypeStruct((B, HW, C), f32),
                   jax.ShapeDtypeStruct((B, 1, C), f32),
                   jax.ShapeDtypeStruct((B, 1, C), f32),
                   jax.ShapeDtypeStruct((B, 1, C), f32),
                   jax.ShapeDtypeStruct((B, 1, C), f32)),
        grid=(B,),
        in_specs=[pl.BlockSpec((1, HW, C), bmap3),
                  pl.BlockSpec((C, P), rep2),
                  pl.BlockSpec((1, P), rep2),
                  pl.BlockSpec((c_m, C), rep2),
                  pl.BlockSpec((1, C), rep2)],
        out_specs=(pl.BlockSpec((1, HW, C), bmap3),
                   pl.BlockSpec((1, HW, C), bmap3),
                   pl.BlockSpec((1, 1, C), bmap3),
                   pl.BlockSpec((1, 1, C), bmap3),
                   pl.BlockSpec((1, 1, C), bmap3),
                   pl.BlockSpec((1, 1, C), bmap3)),
        compiler_params=pltpu.CompilerParams(
            dimension_semantics=("parallel",)),
    )(x_hwc, wP, bP, p['wE'], p['bE'])

    # Finish the BatchNorm batch statistics on (B, C)-sized partials (tiny).
    n_el = B * HW

    def scale_shift(s, q):
        m = jnp.sum(s, axis=(0, 1)) / n_el                            # (C,)
        v = jnp.maximum(jnp.sum(q, axis=(0, 1)) / n_el - m * m, 0.0)  # biased var
        sc = lax.rsqrt(v + EPS)
        return sc, -m * sc

    sc1, sh1 = scale_shift(s1, q1)
    sc2, sh2 = scale_shift(s2, q2)
    tile_wc = lambda v: jnp.tile(v.reshape(1, C), (1, W))             # (1, W*C)

    # Weight-only preprocessing for the 3x3 conv (no input data touched):
    # Mband[dy][wi*C:(wi+1)*C, wo*C:(wo+1)*C] = W_hwio[dy, wi-wo+1]  (|wi-wo|<=1)
    wcol = p['w_out_col']                                             # (9C, C)
    mband = jnp.stack([
        sum(jnp.kron(jnp.eye(W, k=-(dx - 1), dtype=f32),
                     wcol[(dy * 3 + dx) * C:(dy * 3 + dx + 1) * C, :])
            for dx in range(3))
        for dy in range(3)])                                          # (3, WC, WC)
    vshift = jnp.stack([jnp.eye(H, k=dy - 1, dtype=f32)
                        for dy in range(3)])                          # (3, H, H)
    bias_t = jnp.tile(p['b_out'], (1, W))                             # (1, WC)

    out = pl.pallas_call(
        bn_relu_conv_kernel,
        out_shape=jax.ShapeDtypeStruct((B, H, WC), f32),
        grid=(B,),
        in_specs=[pl.BlockSpec((1, H, WC), bmap3)] * 3
                 + [pl.BlockSpec((1, WC), rep2)] * 4
                 + [pl.BlockSpec((3, WC, WC), rep3),
                    pl.BlockSpec((3, H, H), rep3),
                    pl.BlockSpec((1, WC), rep2)],
        out_specs=pl.BlockSpec((1, H, WC), bmap3),
        compiler_params=pltpu.CompilerParams(
            dimension_semantics=("parallel",)),
    )(e1.reshape(B, H, WC), e2.reshape(B, H, WC), x_hwc.reshape(B, H, WC),
      tile_wc(sc1), tile_wc(sh1), tile_wc(sc2), tile_wc(sh2),
      mband, vshift, bias_t)

    return jnp.transpose(out.reshape(B, H, W, C), (0, 3, 1, 2))


# -----------------------------------------------------------------------------
# Pure-JAX reference (mirrors the PyTorch forward, XLA ops only).
# -----------------------------------------------------------------------------
def ref_forward(x_nchw, p):
    B, C, H, W = x_nchw.shape
    HW = H * W
    x = jnp.transpose(x_nchw, (0, 2, 3, 1)).reshape(B, HW, C).astype(jnp.float32)
    lin = lambda w, b: jnp.einsum('bnc,cd->bnd', x, w) + b

    A = lin(p['wA'], p['bA'])
    Bc = lin(p['wB'], p['bB'])
    V = lin(p['wV'], p['bV'])
    smB = jax.nn.softmax(Bc, axis=1)
    smV = jax.nn.softmax(V, axis=2)
    G = jnp.einsum('bnk,bnm->bkm', smB, A)
    Z1 = jnp.einsum('bnk,bkm->bnm', smV, G)
    E1 = jnp.einsum('bnm,mc->bnc', Z1, p['wE']) + p['bE']

    A_S = lin(p['wAS'], p['bAS'])
    B_S = lin(p['wBS'], p['bBS'])
    V_S = lin(p['wVS'], p['bVS'])
    smB_S = jax.nn.softmax(B_S, axis=2)
    smV_S = jax.nn.softmax(V_S, axis=2)
    G_S = jnp.einsum('bnm,bpm->bnp', A_S, smB_S)
    Z2 = jnp.einsum('bnp,bpm->bnm', G_S, smV_S)
    E2 = jnp.einsum('bnm,mc->bnc', Z2, p['wE']) + p['bE']

    def bn_relu(e):
        m = jnp.mean(e, axis=(0, 1), keepdims=True)
        v = jnp.mean((e - m) ** 2, axis=(0, 1), keepdims=True)
        return jnp.maximum((e - m) * lax.rsqrt(v + EPS), 0.0)

    tmp_plus = (bn_relu(E1) + bn_relu(E2) + x).reshape(B, H, W, C)
    w_hwio = p['w_out_col'].reshape(3, 3, C, C)
    out = lax.conv_general_dilated(
        tmp_plus, w_hwio, (1, 1), 'SAME',
        dimension_numbers=('NHWC', 'HWIO', 'NHWC')) + p['b_out'].reshape(1, 1, 1, C)
    return jnp.transpose(out, (0, 3, 1, 2))


# -----------------------------------------------------------------------------
def init_params(key, C, c_m, c_n):
    ks = jax.random.split(key, 18)

    def mk(k, shape, fan_in):
        return (jax.random.normal(k, shape, jnp.float32) /
                jnp.sqrt(jnp.float32(fan_in)))

    p = {
        'wA':  mk(ks[0],  (C, c_m), C), 'bA':  mk(ks[1],  (1, c_m), C),
        'wB':  mk(ks[2],  (C, c_n), C), 'bB':  mk(ks[3],  (1, c_n), C),
        'wV':  mk(ks[4],  (C, c_n), C), 'bV':  mk(ks[5],  (1, c_n), C),
        'wAS': mk(ks[6],  (C, c_m), C), 'bAS': mk(ks[7],  (1, c_m), C),
        'wBS': mk(ks[8],  (C, c_m), C), 'bBS': mk(ks[9],  (1, c_m), C),
        'wVS': mk(ks[10], (C, c_m), C), 'bVS': mk(ks[11], (1, c_m), C),
        'wE':  mk(ks[12], (c_m, C), c_m), 'bE': mk(ks[13], (1, C), c_m),
        # conv_out weight stored in HWIO-flattened im2col order: (9*C, C)
        'w_out_col': mk(ks[14], (9 * C, C), 9 * C),
        'b_out':     mk(ks[15], (1, C), 9 * C),
    }
    return p


if __name__ == "__main__":
    key = jax.random.PRNGKey(0)
    B, C, H, W = 2, 8, 16, 16           # in_channels=8, K=1
    c_m, c_n = 16, 8

    kx, kp = jax.random.split(key)
    x = jax.random.normal(kx, (B, C, H, W), jnp.float32)
    params = init_params(kp, C, c_m, c_n)

    out = double_double_attention_norm(x, params)
    out = jax.block_until_ready(out)

    ref = jax.block_until_ready(ref_forward(x, params))
    max_err = float(jnp.max(jnp.abs(out - ref)))
    scale = float(jnp.max(jnp.abs(ref))) + 1e-6
    assert out.shape == (B, C, H, W)
    assert max_err <= 2e-2 * scale + 1e-3, f"mismatch: max_err={max_err}"

    print("KERNEL_OK")
</pallas_src>

<mosaic_0001>
module attributes {stable_mosaic.version = 11 : i64} {
  func.func @attention_kernel(%arg0: i32, %arg1: memref<1x256x8xf32, #tpu.memory_space<vmem>>, %arg2: memref<8x80xf32, #tpu.memory_space<vmem>>, %arg3: memref<1x80xf32, #tpu.memory_space<vmem>>, %arg4: memref<16x8xf32, #tpu.memory_space<vmem>>, %arg5: memref<1x8xf32, #tpu.memory_space<vmem>>, %arg6: memref<1x256x8xf32, #tpu.memory_space<vmem>>, %arg7: memref<1x256x8xf32, #tpu.memory_space<vmem>>, %arg8: memref<1x1x8xf32, #tpu.memory_space<vmem>>, %arg9: memref<1x1x8xf32, #tpu.memory_space<vmem>>, %arg10: memref<1x1x8xf32, #tpu.memory_space<vmem>>, %arg11: memref<1x1x8xf32, #tpu.memory_space<vmem>>) attributes {dimension_semantics = [#tpu.dimension_semantics<parallel>], iteration_bounds = array<i64: 2>, scalar_prefetch = 0 : i64, scratch_operands = 0 : i64, tpu.core_type = #tpu.core_type<tc>, window_params = [{transform_indices = @transform_0, window_bounds = array<i64: 1, 256, 8>}, {pipeline_mode = #tpu.pipeline_mode<synchronous>, transform_indices = @transform_1, window_bounds = array<i64: 8, 80>}, {pipeline_mode = #tpu.pipeline_mode<synchronous>, transform_indices = @transform_2, window_bounds = array<i64: 1, 80>}, {pipeline_mode = #tpu.pipeline_mode<synchronous>, transform_indices = @transform_3, window_bounds = array<i64: 16, 8>}, {pipeline_mode = #tpu.pipeline_mode<synchronous>, transform_indices = @transform_4, window_bounds = array<i64: 1, 8>}, {transform_indices = @transform_5, window_bounds = array<i64: 1, 256, 8>}, {transform_indices = @transform_6, window_bounds = array<i64: 1, 256, 8>}, {transform_indices = @transform_7, window_bounds = array<i64: 1, 1, 8>}, {transform_indices = @transform_8, window_bounds = array<i64: 1, 1, 8>}, {transform_indices = @transform_9, window_bounds = array<i64: 1, 1, 8>}, {transform_indices = @transform_10, window_bounds = array<i64: 1, 1, 8>}]} {
    %c0 = arith.constant 0 : index
    %c0_0 = arith.constant 0 : index
    %c0_1 = arith.constant 0 : index
    %0 = vector.load %arg1[%c0, %c0_0, %c0_1] : memref<1x256x8xf32, #tpu.memory_space<vmem>>, vector<1x256x8xf32>
    %1 = vector.shape_cast %0 : vector<1x256x8xf32> to vector<256x8xf32>
    %c0_2 = arith.constant 0 : index
    %c0_3 = arith.constant 0 : index
    %2 = vector.load %arg2[%c0_2, %c0_3] : memref<8x80xf32, #tpu.memory_space<vmem>>, vector<8x80xf32>
    %cst = arith.constant dense<0.000000e+00> : vector<256x80xf32>
    %3 = tpu.matmul %1, %2, %cst {dimension_numbers = #tpu.dot_dimension_numbers<[1], [0], [0], [1], [0, 0, 1, 1], [], []>} : vector<256x8xf32>, vector<8x80xf32>, vector<256x80xf32> -> vector<256x80xf32>
    %c0_4 = arith.constant 0 : index
    %c0_5 = arith.constant 0 : index
    %4 = vector.load %arg3[%c0_4, %c0_5] : memref<1x80xf32, #tpu.memory_space<vmem>>, vector<1x80xf32>
    %5 = vector.broadcast %4 : vector<1x80xf32> to vector<256x80xf32>
    %6 = arith.addf %3, %5 : vector<256x80xf32>
    %7 = vector.extract_strided_slice %6 {offsets = [0, 0], sizes = [256, 16], strides = [1, 1]} : vector<256x80xf32> to vector<256x16xf32>
    %8 = vector.extract_strided_slice %6 {offsets = [0, 16], sizes = [256, 8], strides = [1, 1]} : vector<256x80xf32> to vector<256x8xf32>
    %9 = vector.extract_strided_slice %6 {offsets = [0, 24], sizes = [256, 8], strides = [1, 1]} : vector<256x80xf32> to vector<256x8xf32>
    %10 = vector.extract_strided_slice %6 {offsets = [0, 32], sizes = [256, 16], strides = [1, 1]} : vector<256x80xf32> to vector<256x16xf32>
    %11 = vector.extract_strided_slice %6 {offsets = [0, 48], sizes = [256, 16], strides = [1, 1]} : vector<256x80xf32> to vector<256x16xf32>
    %12 = vector.extract_strided_slice %6 {offsets = [0, 64], sizes = [256, 16], strides = [1, 1]} : vector<256x80xf32> to vector<256x16xf32>
    %c0_6 = arith.constant 0 : index
    %c0_7 = arith.constant 0 : index
    %13 = vector.load %arg4[%c0_6, %c0_7] : memref<16x8xf32, #tpu.memory_space<vmem>>, vector<16x8xf32>
    %c0_8 = arith.constant 0 : index
    %c0_9 = arith.constant 0 : index
    %14 = vector.load %arg5[%c0_8, %c0_9] : memref<1x8xf32, #tpu.memory_space<vmem>>, vector<1x8xf32>
    %cst_10 = arith.constant dense<0xFF800000> : vector<8xf32>
    %15 = vector.multi_reduction <maximumf>, %8, %cst_10 [0] : vector<256x8xf32> to vector<8xf32>
    %16 = vector.shape_cast %15 : vector<8xf32> to vector<1x8xf32>
    %17 = vector.broadcast %16 : vector<1x8xf32> to vector<256x8xf32>
    %18 = arith.subf %8, %17 : vector<256x8xf32>
    %19 = math.exp %18 : vector<256x8xf32>
    %cst_11 = arith.constant dense<0.000000e+00> : vector<8xf32>
    %20 = vector.multi_reduction <add>, %19, %cst_11 [0] : vector<256x8xf32> to vector<8xf32>
    %21 = vector.shape_cast %20 : vector<8xf32> to vector<1x8xf32>
    %22 = tpu.reciprocal %21 {approx = true} : vector<1x8xf32> -> vector<1x8xf32>
    %23 = vector.broadcast %22 : vector<1x8xf32> to vector<256x8xf32>
    %24 = arith.mulf %19, %23 : vector<256x8xf32>
    %cst_12 = arith.constant dense<0xFF800000> : vector<256xf32>
    %25 = vector.multi_reduction <maximumf>, %9, %cst_12 [1] : vector<256x8xf32> to vector<256xf32>
    %26 = vector.shape_cast %25 : vector<256xf32> to vector<256x1xf32>
    %27 = vector.broadcast %26 : vector<256x1xf32> to vector<256x8xf32>
    %28 = arith.subf %9, %27 : vector<256x8xf32>
    %29 = math.exp %28 : vector<256x8xf32>
    %cst_13 = arith.constant dense<0.000000e+00> : vector<256xf32>
    %30 = vector.multi_reduction <add>, %29, %cst_13 [1] : vector<256x8xf32> to vector<256xf32>
    %31 = vector.shape_cast %30 : vector<256xf32> to vector<256x1xf32>
    %32 = tpu.reciprocal %31 {approx = true} : vector<256x1xf32> -> vector<256x1xf32>
    %33 = vector.broadcast %32 : vector<256x1xf32> to vector<256x8xf32>
    %34 = arith.mulf %29, %33 : vector<256x8xf32>
    %cst_14 = arith.constant dense<0.000000e+00> : vector<8x16xf32>
    %35 = tpu.matmul %24, %7, %cst_14 {dimension_numbers = #tpu.dot_dimension_numbers<[0], [0], [1], [1], [0, 1, 1, 1], [], []>} : vector<256x8xf32>, vector<256x16xf32>, vector<8x16xf32> -> vector<8x16xf32>
    %cst_15 = arith.constant dense<0.000000e+00> : vector<256x16xf32>
    %36 = tpu.matmul %34, %35, %cst_15 {dimension_numbers = #tpu.dot_dimension_numbers<[1], [0], [0], [1], [0, 0, 1, 1], [], []>} : vector<256x8xf32>, vector<8x16xf32>, vector<256x16xf32> -> vector<256x16xf32>
    %cst_16 = arith.constant dense<0.000000e+00> : vector<256x8xf32>
    %37 = tpu.matmul %36, %13, %cst_16 {dimension_numbers = #tpu.dot_dimension_numbers<[1], [0], [0], [1], [0, 0, 1, 1], [], []>} : vector<256x16xf32>, vector<16x8xf32>, vector<256x8xf32> -> vector<256x8xf32>
    %38 = vector.broadcast %14 : vector<1x8xf32> to vector<256x8xf32>
    %39 = arith.addf %37, %38 : vector<256x8xf32>
    %c0_17 = arith.constant 0 : index
    %c0_18 = arith.constant 0 : index
    %c0_19 = arith.constant 0 : index
    %40 = vector.load %arg6[%c0_17, %c0_18, %c0_19] : memref<1x256x8xf32, #tpu.memory_space<vmem>>, vector<1x256x8xf32>
    %41 = vector.shape_cast %40 : vector<1x256x8xf32> to vector<256x8xf32>
    %42 = vector.shape_cast %39 : vector<256x8xf32> to vector<1x256x8xf32>
    tpu.vector_store %arg6[%c0_17, %c0_18, %c0_19], %42 {strides = array<i32>} : memref<1x256x8xf32, #tpu.memory_space<vmem>>, vector<1x256x8xf32>,
    %cst_20 = arith.constant dense<0.000000e+00> : vector<8xf32>
    %43 = vector.multi_reduction <add>, %39, %cst_20 [0] : vector<256x8xf32> to vector<8xf32>
    %44 = vector.shape_cast %43 : vector<8xf32> to vector<1x8xf32>
    %c0_21 = arith.constant 0 : index
    %c0_22 = arith.constant 0 : index
    %c0_23 = arith.constant 0 : index
    %45 = vector.load %arg8[%c0_21, %c0_22, %c0_23] : memref<1x1x8xf32, #tpu.memory_space<vmem>>, vector<1x1x8xf32>
    %46 = vector.shape_cast %45 : vector<1x1x8xf32> to vector<1x8xf32>
    %47 = vector.shape_cast %44 : vector<1x8xf32> to vector<1x1x8xf32>
    tpu.vector_store %arg8[%c0_21, %c0_22, %c0_23], %47 {strides = array<i32>} : memref<1x1x8xf32, #tpu.memory_space<vmem>>, vector<1x1x8xf32>,
    %48 = arith.mulf %39, %39 : vector<256x8xf32>
    %cst_24 = arith.constant dense<0.000000e+00> : vector<8xf32>
    %49 = vector.multi_reduction <add>, %48, %cst_24 [0] : vector<256x8xf32> to vector<8xf32>
    %50 = vector.shape_cast %49 : vector<8xf32> to vector<1x8xf32>
    %c0_25 = arith.constant 0 : index
    %c0_26 = arith.constant 0 : index
    %c0_27 = arith.constant 0 : index
    %51 = vector.load %arg9[%c0_25, %c0_26, %c0_27] : memref<1x1x8xf32, #tpu.memory_space<vmem>>, vector<1x1x8xf32>
    %52 = vector.shape_cast %51 : vector<1x1x8xf32> to vector<1x8xf32>
    %53 = vector.shape_cast %50 : vector<1x8xf32> to vector<1x1x8xf32>
    tpu.vector_store %arg9[%c0_25, %c0_26, %c0_27], %53 {strides = array<i32>} : memref<1x1x8xf32, #tpu.memory_space<vmem>>, vector<1x1x8xf32>,
    %cst_28 = arith.constant dense<0xFF800000> : vector<256xf32>
    %54 = vector.multi_reduction <maximumf>, %11, %cst_28 [1] : vector<256x16xf32> to vector<256xf32>
    %55 = vector.shape_cast %54 : vector<256xf32> to vector<256x1xf32>
    %56 = vector.broadcast %55 : vector<256x1xf32> to vector<256x16xf32>
    %57 = arith.subf %11, %56 : vector<256x16xf32>
    %58 = math.exp %57 : vector<256x16xf32>
    %cst_29 = arith.constant dense<0.000000e+00> : vector<256xf32>
    %59 = vector.multi_reduction <add>, %58, %cst_29 [1] : vector<256x16xf32> to vector<256xf32>
    %60 = vector.shape_cast %59 : vector<256xf32> to vector<256x1xf32>
    %61 = tpu.reciprocal %60 {approx = true} : vector<256x1xf32> -> vector<256x1xf32>
    %62 = vector.broadcast %61 : vector<256x1xf32> to vector<256x16xf32>
    %63 = arith.mulf %58, %62 : vector<256x16xf32>
    %cst_30 = arith.constant dense<0xFF800000> : vector<256xf32>
    %64 = vector.multi_reduction <maximumf>, %12, %cst_30 [1] : vector<256x16xf32> to vector<256xf32>
    %65 = vector.shape_cast %64 : vector<256xf32> to vector<256x1xf32>
    %66 = vector.broadcast %65 : vector<256x1xf32> to vector<256x16xf32>
    %67 = arith.subf %12, %66 : vector<256x16xf32>
    %68 = math.exp %67 : vector<256x16xf32>
    %cst_31 = arith.constant dense<0.000000e+00> : vector<256xf32>
    %69 = vector.multi_reduction <add>, %68, %cst_31 [1] : vector<256x16xf32> to vector<256xf32>
    %70 = vector.shape_cast %69 : vector<256xf32> to vector<256x1xf32>
    %71 = tpu.reciprocal %70 {approx = true} : vector<256x1xf32> -> vector<256x1xf32>
    %72 = vector.broadcast %71 : vector<256x1xf32> to vector<256x16xf32>
    %73 = arith.mulf %68, %72 : vector<256x16xf32>
    %cst_32 = arith.constant dense<0.000000e+00> : vector<16x16xf32>
    %74 = tpu.matmul %63, %73, %cst_32 {dimension_numbers = #tpu.dot_dimension_numbers<[0], [0], [1], [1], [0, 1, 1, 1], [], []>} : vector<256x16xf32>, vector<256x16xf32>, vector<16x16xf32> -> vector<16x16xf32>
    %cst_33 = arith.constant dense<0.000000e+00> : vector<256x16xf32>
    %75 = tpu.matmul %10, %74, %cst_33 {dimension_numbers = #tpu.dot_dimension_numbers<[1], [0], [0], [1], [0, 0, 1, 1], [], []>} : vector<256x16xf32>, vector<16x16xf32>, vector<256x16xf32> -> vector<256x16xf32>
    %cst_34 = arith.constant dense<0.000000e+00> : vector<256x8xf32>
    %76 = tpu.matmul %75, %13, %cst_34 {dimension_numbers = #tpu.dot_dimension_numbers<[1], [0], [0], [1], [0, 0, 1, 1], [], []>} : vector<256x16xf32>, vector<16x8xf32>, vector<256x8xf32> -> vector<256x8xf32>
    %77 = vector.broadcast %14 : vector<1x8xf32> to vector<256x8xf32>
    %78 = arith.addf %76, %77 : vector<256x8xf32>
    %c0_35 = arith.constant 0 : index
    %c0_36 = arith.constant 0 : index
    %c0_37 = arith.constant 0 : index
    %79 = vector.load %arg7[%c0_35, %c0_36, %c0_37] : memref<1x256x8xf32, #tpu.memory_space<vmem>>, vector<1x256x8xf32>
    %80 = vector.shape_cast %79 : vector<1x256x8xf32> to vector<256x8xf32>
    %81 = vector.shape_cast %78 : vector<256x8xf32> to vector<1x256x8xf32>
    tpu.vector_store %arg7[%c0_35, %c0_36, %c0_37], %81 {strides = array<i32>} : memref<1x256x8xf32, #tpu.memory_space<vmem>>, vector<1x256x8xf32>,
    %cst_38 = arith.constant dense<0.000000e+00> : vector<8xf32>
    %82 = vector.multi_reduction <add>, %78, %cst_38 [0] : vector<256x8xf32> to vector<8xf32>
    %83 = vector.shape_cast %82 : vector<8xf32> to vector<1x8xf32>
    %c0_39 = arith.constant 0 : index
    %c0_40 = arith.constant 0 : index
    %c0_41 = arith.constant 0 : index
    %84 = vector.load %arg10[%c0_39, %c0_40, %c0_41] : memref<1x1x8xf32, #tpu.memory_space<vmem>>, vector<1x1x8xf32>
    %85 = vector.shape_cast %84 : vector<1x1x8xf32> to vector<1x8xf32>
    %86 = vector.shape_cast %83 : vector<1x8xf32> to vector<1x1x8xf32>
    tpu.vector_store %arg10[%c0_39, %c0_40, %c0_41], %86 {strides = array<i32>} : memref<1x1x8xf32, #tpu.memory_space<vmem>>, vector<1x1x8xf32>,
    %87 = arith.mulf %78, %78 : vector<256x8xf32>
    %cst_42 = arith.constant dense<0.000000e+00> : vector<8xf32>
    %88 = vector.multi_reduction <add>, %87, %cst_42 [0] : vector<256x8xf32> to vector<8xf32>
    %89 = vector.shape_cast %88 : vector<8xf32> to vector<1x8xf32>
    %c0_43 = arith.constant 0 : index
    %c0_44 = arith.constant 0 : index
    %c0_45 = arith.constant 0 : index
    %90 = vector.load %arg11[%c0_43, %c0_44, %c0_45] : memref<1x1x8xf32, #tpu.memory_space<vmem>>, vector<1x1x8xf32>
    %91 = vector.shape_cast %90 : vector<1x1x8xf32> to vector<1x8xf32>
    %92 = vector.shape_cast %89 : vector<1x8xf32> to vector<1x1x8xf32>
    tpu.vector_store %arg11[%c0_43, %c0_44, %c0_45], %92 {strides = array<i32>} : memref<1x1x8xf32, #tpu.memory_space<vmem>>, vector<1x1x8xf32>,
    return
  }
  func.func @transform_0(%arg0: i32) -> (i32, i32, i32) {
    %c0_i32 = arith.constant 0 : i32
    %c0_i32_0 = arith.constant 0 : i32
    %c0_i32_1 = arith.constant 0 : i32
    return %arg0, %c0_i32, %c0_i32_0 : i32, i32, i32
  }
  func.func @transform_1(%arg0: i32) -> (i32, i32) {
    %c0_i32 = arith.constant 0 : i32
    %c0_i32_0 = arith.constant 0 : i32
    %c0_i32_1 = arith.constant 0 : i32
    return %c0_i32, %c0_i32_0 : i32, i32
  }
  func.func @transform_2(%arg0: i32) -> (i32, i32) {
    %c0_i32 = arith.constant 0 : i32
    %c0_i32_0 = arith.constant 0 : i32
    %c0_i32_1 = arith.constant 0 : i32
    return %c0_i32, %c0_i32_0 : i32, i32
  }
  func.func @transform_3(%arg0: i32) -> (i32, i32) {
    %c0_i32 = arith.constant 0 : i32
    %c0_i32_0 = arith.constant 0 : i32
    %c0_i32_1 = arith.constant 0 : i32
    return %c0_i32, %c0_i32_0 : i32, i32
  }
  func.func @transform_4(%arg0: i32) -> (i32, i32) {
    %c0_i32 = arith.constant 0 : i32
    %c0_i32_0 = arith.constant 0 : i32
    %c0_i32_1 = arith.constant 0 : i32
    return %c0_i32, %c0_i32_0 : i32, i32
  }
  func.func @transform_5(%arg0: i32) -> (i32, i32, i32) {
    %c0_i32 = arith.constant 0 : i32
    %c0_i32_0 = arith.constant 0 : i32
    %c0_i32_1 = arith.constant 0 : i32
    return %arg0, %c0_i32, %c0_i32_0 : i32, i32, i32
  }
  func.func @transform_6(%arg0: i32) -> (i32, i32, i32) {
    %c0_i32 = arith.constant 0 : i32
    %c0_i32_0 = arith.constant 0 : i32
    %c0_i32_1 = arith.constant 0 : i32
    return %arg0, %c0_i32, %c0_i32_0 : i32, i32, i32
  }
  func.func @transform_7(%arg0: i32) -> (i32, i32, i32) {
    %c0_i32 = arith.constant 0 : i32
    %c0_i32_0 = arith.constant 0 : i32
    %c0_i32_1 = arith.constant 0 : i32
    return %arg0, %c0_i32, %c0_i32_0 : i32, i32, i32
  }
  func.func @transform_8(%arg0: i32) -> (i32, i32, i32) {
    %c0_i32 = arith.constant 0 : i32
    %c0_i32_0 = arith.constant 0 : i32
    %c0_i32_1 = arith.constant 0 : i32
    return %arg0, %c0_i32, %c0_i32_0 : i32, i32, i32
  }
  func.func @transform_9(%arg0: i32) -> (i32, i32, i32) {
    %c0_i32 = arith.constant 0 : i32
    %c0_i32_0 = arith.constant 0 : i32
    %c0_i32_1 = arith.constant 0 : i32
    return %arg0, %c0_i32, %c0_i32_0 : i32, i32, i32
  }
  func.func @transform_10(%arg0: i32) -> (i32, i32, i32) {
    %c0_i32 = arith.constant 0 : i32
    %c0_i32_0 = arith.constant 0 : i32
    %c0_i32_1 = arith.constant 0 : i32
    return %arg0, %c0_i32, %c0_i32_0 : i32, i32, i32
  }
}

</mosaic_0001>

<bundles_post_ra>
// kernel: tpu_custom_call.1
= control target key start
LH: loop header
LB: loop body
LE: loop exit
PB: predicated region body
PF: predicated region fallthrough
CT: control target
= control target key end

     0   :  { %s8617_s0 = inlined_call_operand.vmem [shape: f32[2,256,8], index: 0, kind: input, shape index: {}]   ;;  %s8618_s1 = inlined_call_operand.vmem [shape: f32[8,80], index: 1, kind: input, shape index: {}]   ;;  %s8619_s2 = inlined_call_operand.vmem [shape: f32[1,80], index: 2, kind: input, shape index: {}]   ;;  %s8620_s3 = inlined_call_operand.vmem [shape: f32[16,8], index: 3, kind: input, shape index: {}]   ;;  %s8621_s4 = inlined_call_operand.vmem [shape: f32[1,8], index: 4, kind: input, shape index: {}]   ;;  %s8622_s5 = inlined_call_operand.vmem [shape: f32[2,256,8], index: 5, kind: output, shape index: {0}]   ;;  %s8623_s6 = inlined_call_operand.vmem [shape: f32[2,256,8], index: 6, kind: output, shape index: {1}]   ;;  %s8624_s7 = inlined_call_operand.hbm [shape: f32[2,1,8], index: 7, kind: output, shape index: {2}]   ;;  %s8625_s8 = inlined_call_operand.hbm [shape: f32[2,1,8], index: 8, kind: output, shape index: {3}]   ;;  %s8626_s9 = inlined_call_operand.hbm [shape: f32[2,1,8], index: 9, kind: output, shape index: {4}]   ;;  %s8627_s10 = inlined_call_operand.hbm [shape: f32[2,1,8], index: 10, kind: output, shape index: {5}]  }
   0x1   :  { %8778 = sst [smem:[#allocation89_spill]] %s8617_s0 }
   0x2   :  { %8779 = sst [smem:[#allocation90_spill]] %s8618_s1 }
   0x3   :  { %8780 = sst [smem:[#allocation91_spill]] %s8619_s2 }
   0x4   :  { %16 = vsyncpa [#allocation3], 0 }
   0x5   :  { %18 = vsyncpa [#allocation3 + $0x1], 0 }
   0x6   :  { %19 = vsyncpa [#allocation5], 0 }
   0x7   :  { %21 = vsyncpa [#allocation5 + $0x1], 0 }
   0x8   :  { %22 = vsyncpa [#allocation8], 0 }
   0x9   :  { %24 = vsyncpa [#allocation8 + $0x1], 0  ;;  %s5787_s13 = smov 0   ;;  %s5789_s14 = smov 0  }
   0xa   :  { %s5791_s15 = smov 0   ;;  %s5793_s16 = smov 0  }
   0xb LB: > { %s5808_s17 = sadd.s32 4294967295, %s5724_s16   ;;  %s8776_s18 = sadd.s32 4294967294, %s5724_s16   ;;  %s5724_s16 = sphi %s5793_s16, %s9027_s16   ;;  %s5720_s15 = sphi %s5791_s15, %s9026_s15   ;;  %s5716_s14 = sphi %s5789_s14, %s9025_s14   ;;  %s5712_s13 = sphi %s5787_s13, %s9024_s13  }
   0xc   : > { %s5812_s19 = sadd.s32 1, %s5724_s16   ;;  %s199_s20 = sadd.s32 1, %s5720_s15 }
   0xd   : > { %s196_s21 = ssub.s32 %s5724_s16, %s5812_s19  ;;  %p209_p0 = scmp.ne.s32.totalorder %s5720_s15, %s5716_s14 }
   0xe   : > { %p197_p1 = scmp.eq.s32.totalorder %s196_s21, 0  ;;  %p210_p2 = scmp.eq.s32.totalorder %s5808_s17, 1 }
   0xf   : > { %p215_p3 = scmp.ne.s32.totalorder %s5716_s14, %s5712_s13  ;;  %p216_p4 = scmp.eq.s32.totalorder %s8776_s18, 1 }
  0x10   : > { %s5825_s22 = scalar_select %p197_p1, %s5720_s15, %s199_s20  }
  0x11   : > { %p5827_p5 = por %p210_p2, %p209_p0  ;;  %p5831_p6 = por %p216_p4, %p215_p3 }
  0x12   : > { %p4611_p7 = scmp.ge.s32.totalorder %s5724_s16, 1  ;;  %p332_p8 = scmp.lt.s32.totalorder %s5724_s16, 3 }
  0x14   : > { %p333_p9 = pnand %p4611_p7, %p332_p8 }
  0x16   : > { %336 = sbr.rel (%p333_p9) target bundleno = 2779 (0xadb), region = 40 }
  0x1b   : > { %s8783_s1 = sld [smem:[#allocation90_spill]]  ;;  %p391_p10 = scmp.lt.s32.totalorder %s5808_s17, 1  ;;  %vm443_vm0 = vcmask 64512   ;;  %vm924_vm1 = vcmask 261312   ;;  %vm2328_vm2 = vcmask 523648   ;;  %vm656_vm3 = vcmask 195712  }
  0x1c   : > { %s8784_s0 = sld [smem:[#allocation89_spill]]  ;;  %s5726_s21 = smov 104   ;;  %vm2809_vm4 = vcmask 654848   ;;  %vm1913_vm5 = vcmask 130048   ;;  %vm2224_vm6 = vcmask 57344  }
  0x1d   : > { %s392_s27 = scalar_select %p391_p10, %s5808_s17, 1 }
  0x1e   : > { %s8785_s2 = sld [smem:[#allocation91_spill]]  ;;  %s5727_s25 = smov 112  }
  0x1f   : > { %s5842_s28 = sshll.u32 %s392_s27, 8  ;;  %s5728_s26 = smov 80  }
  0x20   : > { %s5729_s12 = smov 64   ;;  %s7204_s29 = scalar_lea.vmem %s8622_s5, %s5842_s28 }
  0x21   : > { %v438_v0 = vld [vmem:[%s8783_s1] sm:$0xff]  ;;  %s7711_s20 = sand.u32 1, %s5716_s14   ;;  %s5590_s1 = scalar_lea.hbm %s8625_s8, 2 }
  0x22   : > { %555 = vmatpush.msra.mxu0 %v438_v0  ;;  %4783 = vmatpush.msra.mxu1 %v438_v0  ;;  %s5848_s11 = scalar_lea.vmem %s8784_s0, %s5842_s28 }
  0x23   : > { %4784 = vmatpush.msra.mxu3 %v438_v0  ;;  %v406_v1 = vld [vmem:[%s5848_s11] sm:$0xff]  ;;  %v419_v2 = vld [vmem:[%s5848_s11 + $0x68] sm:$0xff]  ;;  %v420_v5 = vld [vmem:[%s5848_s11 + $0x70] sm:$0xff] }
  0x24   : > { %v426_v3 = vld [vmem:[%s5848_s11 + $0xa0] sm:$0xff]  ;;  %4618 = vmatmul.msk.f32.vlgmr.msra.gmra.mxu0 %vm443_vm0, %v406_v1  ;;  %4631 = vmatmul.msk.f32.vlgmr.msra.gmra.mxu1 %vm443_vm0, %v419_v2  ;;  %v407_v4 = vld [vmem:[%s5848_s11 + $0x8] sm:$0xff]  ;;  %v408_v7 = vld [vmem:[%s5848_s11 + $0x10] sm:$0xff] }
  0x25   : > { %4638 = vmatmul.msk.f32.vlgmr.msra.gmra.mxu3 %vm443_vm0, %v426_v3  ;;  %v427_v6 = vld [vmem:[%s5848_s11 + $0xa8] sm:$0xff]  ;;  %v421_v8 = vld [vmem:[%s5848_s11 + $0x78] sm:$0xff]  ;;  %v428_v9 = vld [vmem:[%s5848_s11 + $0xb0] sm:$0xff] }
  0x26   : > { %v409_v10 = vld [vmem:[%s5848_s11 + $0x18] sm:$0xff]  ;;  %v422_v11 = vld [vmem:[%s5848_s11 + $0x80] sm:$0xff]  ;;  %v423_v14 = vld [vmem:[%s5848_s11 + $0x88] sm:$0xff] }
  0x27   : > { %v429_v12 = vld [vmem:[%s5848_s11 + $0xb8] sm:$0xff]  ;;  %v410_v13 = vld [vmem:[%s5848_s11 + $0x20] sm:$0xff]  ;;  %v411_v16 = vld [vmem:[%s5848_s11 + $0x28] sm:$0xff] }
  0x28   : > { %v430_v15 = vld [vmem:[%s5848_s11 + $0xc0] sm:$0xff]  ;;  %v424_v17 = vld [vmem:[%s5848_s11 + $0x90] sm:$0xff]  ;;  %v431_v18 = vld [vmem:[%s5848_s11 + $0xc8] sm:$0xff] }
  0x29   : > { %v412_v19 = vld [vmem:[%s5848_s11 + $0x30] sm:$0xff]  ;;  %v425_v20 = vld [vmem:[%s5848_s11 + $0x98] sm:$0xff]  ;;  %v414_v24 = vld [vmem:[%s5848_s11 + $0x40] sm:$0xff] }
  0x2a   : > { %v432_v21 = vld [vmem:[%s5848_s11 + $0xd0] sm:$0xff]  ;;  %v413_v22 = vld [vmem:[%s5848_s11 + $0x38] sm:$0xff]  ;;  %v434_v25 = vld [vmem:[%s5848_s11 + $0xe0] sm:$0xff] }
  0x2b   : > { %v433_v23 = vld [vmem:[%s5848_s11 + $0xd8] sm:$0xff]  ;;  %v415_v26 = vld [vmem:[%s5848_s11 + $0x48] sm:$0xff]  ;;  %v416_v28 = vld [vmem:[%s5848_s11 + $0x50] sm:$0xff] }
  0x2c   : > { %4619 = vmatmul.msk.f32.gmra.mxu0 %vm443_vm0, %v407_v4  ;;  %4632 = vmatmul.msk.f32.gmra.mxu1 %vm443_vm0, %v420_v5  ;;  %v435_v27 = vld [vmem:[%s5848_s11 + $0xe8] sm:$0xff]  ;;  %v436_v29 = vld [vmem:[%s5848_s11 + $0xf0] sm:$0xff]  ;;  %v417_v30 = vld [vmem:[%s5848_s11 + $0x58] sm:$0xff] }
  0x2d   : > { %4639 = vmatmul.msk.f32.gmra.mxu3 %vm443_vm0, %v427_v6  ;;  %v437_v31 = vld [vmem:[%s5848_s11 + $0xf8] sm:$0xff]  ;;  %v418_v32 = vld [vmem:[%s5848_s11 + $0x60] sm:$0xff] }
  0x2e   : > { %v5917_v33 = vld [vmem:[%s8785_s2] ss:$0 sm:$0xff] }
  0x34   : > { %4620 = vmatmul.msk.f32.gmra.mxu0 %vm443_vm0, %v408_v7  ;;  %4633 = vmatmul.msk.f32.gmra.mxu1 %vm443_vm0, %v421_v8 }
  0x35   : > { %4640 = vmatmul.msk.f32.gmra.mxu3 %vm443_vm0, %v428_v9 }
  0x3c   : > { %4621 = vmatmul.msk.f32.gmra.mxu0 %vm443_vm0, %v409_v10  ;;  %4634 = vmatmul.msk.f32.gmra.mxu1 %vm443_vm0, %v422_v11 }
  0x3d   : > { %4641 = vmatmul.msk.f32.gmra.mxu3 %vm443_vm0, %v429_v12 }
  0x44   : > { %4622 = vmatmul.msk.f32.gmra.mxu0 %vm443_vm0, %v410_v13  ;;  %4635 = vmatmul.msk.f32.gmra.mxu1 %vm443_vm0, %v423_v14 }
  0x45   : > { %4642 = vmatmul.msk.f32.gmra.mxu3 %vm443_vm0, %v430_v15 }
  0x4c   : > { %4623 = vmatmul.msk.f32.gmra.mxu0 %vm443_vm0, %v411_v16  ;;  %4636 = vmatmul.msk.f32.gmra.mxu1 %vm443_vm0, %v424_v17 }
  0x4d   : > { %4643 = vmatmul.msk.f32.gmra.mxu3 %vm443_vm0, %v431_v18 }
  0x54   : > { %4624 = vmatmul.msk.f32.gmra.mxu0 %vm443_vm0, %v412_v19  ;;  %4637 = vmatmul.msk.f32.gmra.mxu1 %vm443_vm0, %v425_v20 }
  0x55   : > { %4644 = vmatmul.msk.f32.gmra.mxu3 %vm443_vm0, %v432_v21 }
  0x5c   : > { %4625 = vmatmul.msk.f32.gmra.mxu0 %vm443_vm0, %v413_v22 }
  0x5d   : > { %4645 = vmatmul.msk.f32.gmra.mxu3 %vm443_vm0, %v433_v23 }
  0x64   : > { %4626 = vmatmul.msk.f32.gmra.mxu0 %vm443_vm0, %v414_v24 }
  0x65   : > { %4646 = vmatmul.msk.f32.gmra.mxu3 %vm443_vm0, %v434_v25 }
  0x6c   : > { %4627 = vmatmul.msk.f32.gmra.mxu0 %vm443_vm0, %v415_v26 }
  0x6d   : > { %4647 = vmatmul.msk.f32.gmra.mxu3 %vm443_vm0, %v435_v27 }
  0x74   : > { %4628 = vmatmul.msk.f32.gmra.mxu0 %vm443_vm0, %v416_v28 }
  0x75   : > { %4648 = vmatmul.msk.f32.gmra.mxu3 %vm443_vm0, %v436_v29 }
  0x7c   : > { %4629 = vmatmul.msk.f32.gmra.mxu0 %vm443_vm0, %v417_v30 }
  0x7d   : > { %4649 = vmatmul.msk.f32.gmra.mxu3 %vm443_vm0, %v437_v31 }
  0x84   : > { %4630 = vmatmul.msk.f32.gmra.mxu0 %vm443_vm0, %v418_v32 }
  0xa1   : > { %v557_v34 = vpop.f32.mrf.mxu0  ;;  %v596_v35 = vpop.f32.mrf.mxu1 }
  0xa2   : > { %v5920_v36 = vadd.f32 %v5917_v33, %v557_v34  ;;  %v5923_v37 = vadd.f32 %v5917_v33, %v596_v35 }
  0xa4   : > { %8786 = vst [vmem:[#allocation12_spill] sm:$0xff] %v5920_v36  ;;  %v964_v38 = vsel %vm924_vm1, %v5923_v37, -inf  ;;  %v925_v39 = vsel %vm924_vm1, %v5920_v36, -inf  ;;  %v2329_v47 = vsel %vm2328_vm2, %v5920_v36, -inf  ;;  %v679_v28 = vsel %vm656_vm3, %v5923_v37, -inf }
  0xa5   : > { %8787 = vst [vmem:[#allocation13_spill] sm:$0xff] %v5923_v37  ;;  %965 = vmax.xlane.f32.xlu1 %v964_v38  ;;  %926 = vmax.xlane.f32.xlu0 %v925_v39 }
  0xa8   : > { %v617_v40 = vpop.f32.mrf.mxu3 }
  0xa9   : > { %v5930_v41 = vadd.f32 %v5917_v33, %v617_v40  ;;  %v560_v42 = vpop.f32.mrf.mxu0  ;;  %v599_v43 = vpop.f32.mrf.mxu1 }
  0xaa   : > { %v5933_v44 = vadd.f32 %v5917_v33, %v560_v42  ;;  %v5942_v48 = vadd.f32 %v5917_v33, %v599_v43 }
  0xab   : > { %8788 = vst [vmem:[#allocation14_spill] sm:$0xff] %v5930_v41  ;;  %v985_v45 = vsel %vm924_vm1, %v5930_v41, -inf  ;;  %v693_v26 = vsel %vm656_vm3, %v5930_v41, -inf }
  0xac   : > { %8789 = vst [vmem:[#allocation15_spill] sm:$0xff] %v5933_v44  ;;  %986 = vmax.xlane.f32.xlu2 %v985_v45  ;;  %v2332_v46 = vsel %vm2328_vm2, %v5933_v44, -inf  ;;  %v967_v52 = vsel %vm924_vm1, %v5942_v48, -inf  ;;  %v928_v56 = vsel %vm924_vm1, %v5933_v44, -inf  ;;  %v680_v29 = vmax.f32 %v693_v26, %v679_v28 }
  0xad   : > { %2333 = vmax.xlane.f32.xlu1 %v2332_v46  ;;  %2330 = vmax.xlane.f32.xlu0 %v2329_v47  ;;  %8790 = vst [vmem:[#allocation16_spill] sm:$0xff] %v5942_v48  ;;  %v681_v32 = vsel %vm656_vm3, %v5942_v48, -inf }
  0xae   : > { %v688_v43 = vmax.f32 %v680_v29, %v681_v32 }
  0xb0   : > { %v620_v49 = vpop.f32.mrf.mxu3 }
  0xb1   : > { %v563_v50 = vpop.f32.mrf.mxu0  ;;  %v602_v51 = vpop.f32.mrf.mxu1  ;;  %v5963_v61 = vadd.f32 %v5917_v33, %v620_v49 }
  0xb2   : > { %v5947_v53 = vadd.f32 %v5917_v33, %v563_v50  ;;  %v5950_v54 = vadd.f32 %v5917_v33, %v602_v51 }
  0xb3   : > { %8794 = vst [vmem:[#allocation20_spill] sm:$0xff] %v5963_v61  ;;  %v988_v63 = vsel %vm924_vm1, %v5963_v61, -inf  ;;  %v695_v40 = vsel %vm656_vm3, %v5963_v61, -inf }
  0xb4   : > { %8791 = vst [vmem:[#allocation17_spill] sm:$0xff] %v5947_v53  ;;  %968 = vmax.xlane.f32.xlu2 %v967_v52  ;;  %1597 = vmatpush.msra.mxu1 %v5950_v54  ;;  %v931_v55 = vsel %vm924_vm1, %v5947_v53, -inf  ;;  %v970_v6 = vsel %vm924_vm1, %v5950_v54, -inf  ;;  %v696_v45 = vmax.f32 %v688_v43, %v695_v40  ;;  %v683_v46 = vsel %vm656_vm3, %v5950_v54, -inf }
  0xb5   : > { %8792 = vst [vmem:[#allocation18_spill] sm:$0xff] %v5950_v54  ;;  %932 = vmax.xlane.f32.xlu1 %v931_v55  ;;  %929 = vmax.xlane.f32.xlu0 %v928_v56 }
  0xb6   : > { %1598 = vmatpush.msra.mxu1 %v5942_v48 }
  0xb8   : > { %v623_v57 = vpop.f32.mrf.mxu3  ;;  %1599 = vmatpush.msra.mxu1 %v5923_v37 }
  0xb9   : > { %v5960_v58 = vadd.f32 %v5917_v33, %v623_v57  ;;  %v566_v59 = vpop.f32.mrf.mxu0  ;;  %v605_v60 = vpop.f32.mrf.mxu1  ;;  %v704_v57 = vmax.f32 %v696_v45, %v683_v46 }
  0xba   : > { %v5970_v0 = vadd.f32 %v5917_v33, %v566_v59  ;;  %v5985_v9 = vadd.f32 %v5917_v33, %v605_v60 }
  0xbb   : > { %8793 = vst [vmem:[#allocation19_spill] sm:$0xff] %v5960_v58  ;;  %v991_v62 = vsel %vm924_vm1, %v5960_v58, -inf  ;;  %v697_v51 = vsel %vm656_vm3, %v5960_v58, -inf }
  0xbc   : > { %8795 = vst [vmem:[#allocation21_spill] sm:$0xff] %v5970_v0  ;;  %v934_v5 = vsel %vm924_vm1, %v5970_v0, -inf  ;;  %v973_v15 = vsel %vm924_vm1, %v5985_v9, -inf }
  0xbd   : > { %992 = vmax.xlane.f32.xlu1 %v991_v62  ;;  %989 = vmax.xlane.f32.xlu0 %v988_v63  ;;  %8798 = vst [vmem:[#allocation24_spill] sm:$0xff] %v5985_v9  ;;  %v712_v63 = vmax.f32 %v704_v57, %v697_v51 }
  0xc0   : > { %v626_v1 = vpop.f32.mrf.mxu3 }
  0xc1   : > { %v5973_v2 = vadd.f32 %v5917_v33, %v626_v1  ;;  %v569_v3 = vpop.f32.mrf.mxu0  ;;  %v608_v4 = vpop.f32.mrf.mxu1 }
  0xc2   : > { %v5982_v8 = vadd.f32 %v5917_v33, %v569_v3  ;;  %v6000_v18 = vadd.f32 %v5917_v33, %v608_v4  ;;  %v685_v3 = vsel %vm656_vm3, %v5985_v9, -inf }
  0xc3   : > { %8796 = vst [vmem:[#allocation22_spill] sm:$0xff] %v5973_v2  ;;  %v994_v7 = vsel %vm924_vm1, %v5973_v2, -inf  ;;  %v699_v60 = vsel %vm656_vm3, %v5973_v2, -inf }
  0xc4   : > { %995 = vmax.xlane.f32.xlu2 %v994_v7  ;;  %8797 = vst [vmem:[#allocation23_spill] sm:$0xff] %v5982_v8  ;;  %v937_v13 = vsel %vm924_vm1, %v5982_v8, -inf  ;;  %v976_v22 = vsel %vm924_vm1, %v6000_v18, -inf  ;;  %v682_v1 = vmax.f32 %v699_v60, %v712_v63 }
  0xc5   : > { %935 = vmax.xlane.f32.xlu1 %v934_v5  ;;  %971 = vmax.xlane.f32.xlu0 %v970_v6  ;;  %8801 = vst [vmem:[#allocation27_spill] sm:$0xff] %v6000_v18 }
  0xc8   : > { %v629_v10 = vpop.f32.mrf.mxu3 }
  0xc9   : > { %v5988_v11 = vadd.f32 %v5917_v33, %v629_v10  ;;  %v572_v12 = vpop.f32.mrf.mxu0  ;;  %v611_v14 = vpop.f32.mrf.mxu1 }
  0xca   : > { %v5997_v17 = vadd.f32 %v5917_v33, %v611_v14  ;;  %v6024_v34 = vadd.f32 %v5917_v33, %v572_v12 }
  0xcb   : > { %8799 = vst [vmem:[#allocation25_spill] sm:$0xff] %v5988_v11  ;;  %v997_v16 = vsel %vm924_vm1, %v5988_v11, -inf  ;;  %v701_v6 = vsel %vm656_vm3, %v5988_v11, -inf }
  0xcc   : > { %938 = vmax.xlane.f32.xlu2 %v937_v13  ;;  %8800 = vst [vmem:[#allocation26_spill] sm:$0xff] %v5997_v17  ;;  %v979_v23 = vsel %vm924_vm1, %v5997_v17, -inf  ;;  %v940_v42 = vsel %vm924_vm1, %v6024_v34, -inf  ;;  %v690_v13 = vmax.f32 %v682_v1, %v685_v3  ;;  %v663_v43 = vsel %vm656_vm3, %v6024_v34, -inf }
  0xcd   : > { %974 = vmax.xlane.f32.xlu1 %v973_v15  ;;  %998 = vmax.xlane.f32.xlu0 %v997_v16  ;;  %8805 = vst [vmem:[#allocation31_spill] sm:$0xff] %v6024_v34 }
  0xce   : > { %v698_v16 = vmax.f32 %v690_v13, %v701_v6 }
  0xd0   : > { %v632_v19 = vpop.f32.mrf.mxu3 }
  0xd1   : > { %v6003_v20 = vadd.f32 %v5917_v33, %v632_v19  ;;  %v575_v21 = vpop.f32.mrf.mxu0  ;;  %v614_v25 = vpop.f32.mrf.mxu1 }
  0xd2   : > { %v6014_v27 = vadd.f32 %v5917_v33, %v614_v25  ;;  %v6019_v30 = vadd.f32 %v5917_v33, %v575_v21  ;;  %v687_v21 = vsel %vm656_vm3, %v6000_v18, -inf }
  0xd3   : > { %8802 = vst [vmem:[#allocation28_spill] sm:$0xff] %v6003_v20  ;;  %v1000_v24 = vsel %vm924_vm1, %v6003_v20, -inf }
  0xd4   : > { %977 = vmax.xlane.f32.xlu2 %v976_v22  ;;  %8803 = vst [vmem:[#allocation29_spill] sm:$0xff] %v6014_v27  ;;  %v982_v38 = vsel %vm924_vm1, %v6014_v27, -inf  ;;  %v943_v39 = vsel %vm924_vm1, %v6019_v30, -inf  ;;  %v703_v22 = vsel %vm656_vm3, %v6003_v20, -inf  ;;  %v691_v45 = vsel %vm656_vm3, %v6014_v27, -inf }
  0xd5   : > { %1001 = vmax.xlane.f32.xlu1 %v1000_v24  ;;  %980 = vmax.xlane.f32.xlu0 %v979_v23  ;;  %8804 = vst [vmem:[#allocation30_spill] sm:$0xff] %v6019_v30  ;;  %v706_v23 = vmax.f32 %v698_v16, %v687_v21  ;;  %v665_v1 = vsel %vm656_vm3, %v6019_v30, -inf }
  0xd7   : > { %v714_v28 = vmax.f32 %v706_v23, %v703_v22 }
  0xd8   : > { %v635_v31 = vpop.f32.mrf.mxu3 }
  0xd9   : > { %v578_v35 = vpop.f32.mrf.mxu0  ;;  %v6037_v47 = vadd.f32 %v5917_v33, %v635_v31  ;;  %v689_v31 = vsel %vm656_vm3, %v5997_v17, -inf }
  0xda   : > { %v6040_v49 = vadd.f32 %v5917_v33, %v578_v35 }
  0xdb   : > { %8806 = vst [vmem:[#allocation32_spill] sm:$0xff] %v6037_v47  ;;  %v1003_v56 = vsel %vm924_vm1, %v6037_v47, -inf }
  0xdc   : > { %941 = vmax.xlane.f32.xlu2 %v940_v42  ;;  %8807 = vst [vmem:[#allocation33_spill] sm:$0xff] %v6040_v49  ;;  %v946_v59 = vsel %vm924_vm1, %v6040_v49, -inf }
  0xdd   : > { %983 = vmax.xlane.f32.xlu1 %v982_v38  ;;  %944 = vmax.xlane.f32.xlu0 %v943_v39  ;;  %v705_v38 = vsel %vm656_vm3, %v6037_v47, -inf  ;;  %v684_v39 = vmax.f32 %v689_v31, %v714_v28  ;;  %v660_v31 = vsel %vm656_vm3, %v5970_v0, -inf }
  0xdf   : > { %v692_v40 = vmax.f32 %v684_v39, %v705_v38 }
  0xe0   : > { %v638_v50 = vpop.f32.mrf.mxu3 }
  0xe1   : > { %v6045_v52 = vadd.f32 %v5917_v33, %v638_v50  ;;  %v581_v55 = vpop.f32.mrf.mxu0 }
  0xe2   : > { %v6058_v4 = vadd.f32 %v5917_v33, %v581_v55  ;;  %v658_v55 = vsel %vm656_vm3, %v5933_v44, -inf }
  0xe3   : > { %8808 = vst [vmem:[#allocation34_spill] sm:$0xff] %v6045_v52  ;;  %v1006_v62 = vsel %vm924_vm1, %v6045_v52, -inf  ;;  %v664_v60 = vmax.f32 %v658_v55, %v663_v43 }
  0xe4   : > { %1004 = vmax.xlane.f32.xlu2 %v1003_v56  ;;  %8809 = vst [vmem:[#allocation35_spill] sm:$0xff] %v6058_v4  ;;  %v949_v12 = vsel %vm924_vm1, %v6058_v4, -inf  ;;  %v707_v56 = vsel %vm656_vm3, %v6045_v52, -inf  ;;  %v669_v43 = vsel %vm656_vm3, %v6058_v4, -inf }
  0xe5   : > { %947 = vmax.xlane.f32.xlu1 %v946_v59  ;;  %1007 = vmax.xlane.f32.xlu0 %v1006_v62  ;;  %v700_v62 = vmax.f32 %v692_v40, %v691_v45 }
  0xe8   : > { %v641_v5 = vpop.f32.mrf.mxu3 }
  0xe9   : > { %v6063_v7 = vadd.f32 %v5917_v33, %v641_v5  ;;  %v584_v10 = vpop.f32.mrf.mxu0  ;;  %v708_v5 = vmax.f32 %v700_v62, %v707_v56 }
  0xea   : > { %v6068_v14 = vadd.f32 %v5917_v33, %v584_v10  ;;  %v659_v10 = vsel %vm656_vm3, %v5947_v53, -inf }
  0xeb   : > { %8810 = vst [vmem:[#allocation36_spill] sm:$0xff] %v6063_v7  ;;  %v1009_v15 = vsel %vm924_vm1, %v6063_v7, -inf  ;;  %v709_v3 = vsel %vm656_vm3, %v6063_v7, -inf  ;;  %v666_v13 = vmax.f32 %v659_v10, %v665_v1 }
  0xec   : > { %8811 = vst [vmem:[#allocation37_spill] sm:$0xff] %v6068_v14  ;;  %950 = vmax.xlane.f32.xlu2 %v949_v12  ;;  %v952_v19 = vsel %vm924_vm1, %v6068_v14, -inf  ;;  %v671_v57 = vsel %vm656_vm3, %v6068_v14, -inf }
  0xed   : > { %1010 = vmax.xlane.f32.xlu1 %v1009_v15  ;;  %953 = vmax.xlane.f32.xlu0 %v952_v19  ;;  %v672_v6 = vmax.f32 %v664_v60, %v671_v57  ;;  %v716_v15 = vmax.f32 %v708_v5, %v709_v3  ;;  %v667_v19 = vsel %vm656_vm3, %v6040_v49, -inf }
  0xee   : > { %v668_v39 = vmax.f32 %v660_v31, %v667_v19 }
  0xf0   : > { %v644_v24 = vpop.f32.mrf.mxu3 }
  0xf1   : > { %v6079_v25 = vadd.f32 %v5917_v33, %v644_v24  ;;  %v587_v26 = vpop.f32.mrf.mxu0  ;;  %v718_v24 = vmax.f32 %v672_v6, %v716_v15 }
  0xf2   : > { %v6082_v29 = vadd.f32 %v5917_v33, %v587_v26 }
  0xf3   : > { %8812 = vst [vmem:[#allocation38_spill] sm:$0xff] %v6079_v25  ;;  %v1012_v32 = vsel %vm924_vm1, %v6079_v25, -inf  ;;  %v711_v21 = vsel %vm656_vm3, %v6079_v25, -inf }
  0xf4   : > { %8813 = vst [vmem:[#allocation39_spill] sm:$0xff] %v6082_v29  ;;  %1013 = vmax.xlane.f32.xlu2 %v1012_v32  ;;  %v955_v35 = vsel %vm924_vm1, %v6082_v29, -inf  ;;  %v673_v12 = vsel %vm656_vm3, %v6082_v29, -inf  ;;  %v661_v32 = vsel %vm656_vm3, %v5982_v8, -inf  ;;  %v686_v40 = vmax.f32 %v711_v21, %v718_v24 }
  0xf5   : > { %956 = vmax.xlane.f32.xlu1 %v955_v35  ;;  %v674_v26 = vmax.f32 %v666_v13, %v673_v12 }
  0xf7   : > { %v694_v55 = vmax.f32 %v686_v40, %v674_v26 }
  0xf8   : > { %v647_v42 = vpop.f32.mrf.mxu3 }
  0xf9   : > { %v6097_v46 = vadd.f32 %v5917_v33, %v647_v42  ;;  %v590_v50 = vpop.f32.mrf.mxu0  ;;  %v657_v42 = vsel %vm656_vm3, %v5920_v36, -inf }
  0xfa   : > { %v6100_v51 = vadd.f32 %v5917_v33, %v590_v50  ;;  %v662_v50 = vmax.f32 %v657_v42, %v661_v32 }
  0xfb   : > { %8814 = vst [vmem:[#allocation40_spill] sm:$0xff] %v6097_v46  ;;  %v1015_v59 = vsel %vm924_vm1, %v6097_v46, -inf  ;;  %v713_v45 = vsel %vm656_vm3, %v6097_v46, -inf }
  0xfc   : > { %8815 = vst [vmem:[#allocation41_spill] sm:$0xff] %v6100_v51  ;;  %1016 = vmax.xlane.f32.xlu0 %v1015_v59  ;;  %v958_v63 = vsel %vm924_vm1, %v6100_v51, -inf  ;;  %v675_v35 = vsel %vm656_vm3, %v6100_v51, -inf  ;;  %v670_v59 = vmax.f32 %v662_v50, %v669_v43  ;;  %v702_v60 = vmax.f32 %v694_v55, %v713_v45 }
  0xfd   : > { %959 = vmax.xlane.f32.xlu2 %v958_v63  ;;  %v676_v56 = vmax.f32 %v668_v39, %v675_v35 }
  0xff   : > { %v710_v63 = vmax.f32 %v702_v60, %v676_v56 }
 0x100   : > { %v650_v16 = vpop.f32.mrf.mxu3 }
 0x101   : > { %v6125_v22 = vadd.f32 %v5917_v33, %v650_v16  ;;  %v593_v23 = vpop.f32.mrf.mxu0 }
 0x102   : > { %v6128_v28 = vadd.f32 %v5917_v33, %v593_v23 }
 0x103   : > { %8816 = vst [vmem:[#allocation42_spill] sm:$0xff] %v6125_v22  ;;  %1617 = vmatpush.msra.mxu2 %v6125_v22  ;;  %v1018_v38 = vsel %vm924_vm1, %v6125_v22, -inf  ;;  %v715_v62 = vsel %vm656_vm3, %v6125_v22, -inf }
 0x104   : > { %8817 = vst [vmem:[#allocation43_spill] sm:$0xff] %v6128_v28  ;;  %1019 = vmax.xlane.f32.xlu1 %v1018_v38  ;;  %1600 = vmatpush.msra.mxu1 %v6128_v28  ;;  %v961_v33 = vsel %vm924_vm1, %v6128_v28, -inf  ;;  %v677_v57 = vsel %vm656_vm3, %v6128_v28, -inf  ;;  %v717_v3 = vmax.f32 %v710_v63, %v715_v62 }
 0x105   : > { %1618 = vmatpush.msra.mxu2 %v6097_v46  ;;  %962 = vmax.xlane.f32.xlu0 %v961_v33  ;;  %v678_v1 = vmax.f32 %v670_v59, %v677_v57 }
 0x106   : > { %1601 = vmatpush.msra.mxu1 %v6100_v51 }
 0x107   : > { %1619 = vmatpush.msra.mxu2 %v6079_v25  ;;  %v719_v5 = vmax.f32 %v717_v3, %v678_v1 }
 0x108   : > { %1602 = vmatpush.msra.mxu1 %v6082_v29 }
 0x109   : > { %1620 = vmatpush.msra.mxu2 %v6063_v7  ;;  %v720_v6 = vrot.slane %v719_v5, 4 }
 0x10a   : > { %1603 = vmatpush.msra.mxu1 %v6068_v14 }
 0x10b   : > { %1621 = vmatpush.msra.mxu2 %v6045_v52  ;;  %v721_v10 = vmax.f32 %v719_v5, %v720_v6 }
 0x10c   : > { %1604 = vmatpush.msra.mxu1 %v6058_v4 }
 0x10d   : > { %1622 = vmatpush.msra.mxu2 %v6037_v47  ;;  %v722_v15 = vrot.slane %v721_v10, 2 }
 0x10e   : > { %1605 = vmatpush.msra.mxu1 %v6040_v49 }
 0x10f   : > { %1623 = vmatpush.msra.mxu2 %v6003_v20  ;;  %v723_v16 = vmax.f32 %v721_v10, %v722_v15 }
 0x110   : > { %1606 = vmatpush.msra.mxu1 %v6019_v30 }
 0x111   : > { %1624 = vmatpush.msra.mxu2 %v5988_v11  ;;  %v724_v23 = vrot.slane %v723_v16, 1 }
 0x112   : > { %1607 = vmatpush.msra.mxu1 %v6024_v34 }
 0x113   : > { %1625 = vmatpush.msra.mxu2 %v5973_v2  ;;  %v6185_v32 = vmax.f32 %v723_v16, %v724_v23 }
 0x114   : > { %1608 = vmatpush.msra.mxu1 %v5982_v8 }
 0x115   : > { %1626 = vmatpush.msra.mxu2 %v5960_v58  ;;  %v726_v43 = vsub.f32 %v5920_v36, %v6185_v32  ;;  %v727_v45 = vsub.f32 %v5933_v44, %v6185_v32  ;;  %v728_v55 = vsub.f32 %v5947_v53, %v6185_v32  ;;  %v729_v60 = vsub.f32 %v5970_v0, %v6185_v32 }
 0x116   : > { %1609 = vmatpush.msra.mxu1 %v5970_v0  ;;  %v730_v5 = vsub.f32 %v5982_v8, %v6185_v32  ;;  %v731_v15 = vsub.f32 %v6024_v34, %v6185_v32  ;;  %v732_v23 = vsub.f32 %v6019_v30, %v6185_v32 }
 0x117   : > { %1627 = vmatpush.msra.mxu2 %v5963_v61  ;;  %v758_v57 = vmul.f32 1.442695, %v726_v43  ;;  %v760_v62 = vmul.f32 1.442695, %v727_v45  ;;  %v762_v6 = vmul.f32 1.442695, %v728_v55  ;;  %v734_v55 = vsub.f32 %v6058_v4, %v6185_v32 }
 0x118   : > { %v966_v12 = vpop.xlane.xlu1 %965  ;;  %1610 = vmatpush.msra.mxu1 %v5947_v53  ;;  %v927_v13 = vpop.xlane.xlu0 %926 }
 0x119   : > { %1628 = vmatpush.msra.mxu2 %v5930_v41  ;;  %v1034_v24 = vsub.f32 %v5923_v37, %v966_v12  ;;  %v1021_v26 = vsub.f32 %v5920_v36, %v927_v13 }
 0x11a   : > { %1611 = vmatpush.msra.mxu1 %v5933_v44 }
 0x11b   : > { %1629 = vmatpush.msra.mxu2 %v6014_v27  ;;  %v1079_v35 = vmul.f32 1.442695, %v1034_v24  ;;  %v1053_v38 = vmul.f32 1.442695, %v1021_v26 }
 0x11c   : > { %1612 = vmatpush.msra.mxu1 %v5920_v36 }
 0x11d   : > { %1630 = vmatpush.msra.mxu2 %v5997_v17  ;;  %5116 = vpow2.f32 %v1079_v35  ;;  %v766_v35 = vmul.f32 1.442695, %v730_v5 }
 0x11e   : > { %5118 = vpow2.f32 %v1053_v38  ;;  %v733_v38 = vsub.f32 %v6040_v49, %v6185_v32 }
 0x11f   : > { %1631 = vmatpush.msra.mxu2 %v6000_v18  ;;  %v987_v31 = vpop.xlane.xlu2 %986 }
 0x120   : > { %v6178_v19 = vpop.xlane.xlu1 %2333  ;;  %v6180_v21 = vpop.xlane.xlu0 %2330  ;;  %v1041_v39 = vsub.f32 %v5930_v41, %v987_v31  ;;  %v764_v31 = vmul.f32 1.442695, %v729_v60 }
 0x121   : > { %8818 = vst [vmem:[#allocation44_spill] sm:$0xff] %v6178_v19  ;;  %1632 = vmatpush.msra.mxu2 %v5985_v9 }
 0x122   : > { %8819 = vst [vmem:[#allocation45_spill] sm:$0xff] %v6180_v21  ;;  %v1093_v50 = vmul.f32 1.442695, %v1041_v39  ;;  %v768_v39 = vmul.f32 1.442695, %v731_v15 }
 0x123   : > { %v6197_v63 = vpop.eup %5116 }
 0x124   : > { %5120 = vpow2.f32 %v1093_v50  ;;  %v6201_v10 = vpop.eup %5118  ;;  %1175 = vrot.lane.b32.xlu0 %v6197_v63, %s5726_s21 }
 0x125   : > { %1149 = vrot.lane.b32.xlu2 %v6201_v10, %s5726_s21 }
 0x127   : > { %v969_v59 = vpop.xlane.xlu2 %968 }
 0x128   : > { %v933_v40 = vpop.xlane.xlu1 %932  ;;  %v930_v33 = vpop.xlane.xlu0 %929  ;;  %v1035_v16 = vsub.f32 %v5942_v48, %v969_v59 }
 0x129   : > { %v1022_v42 = vsub.f32 %v5933_v44, %v930_v33  ;;  %v1023_v43 = vsub.f32 %v5947_v53, %v933_v40 }
 0x12a   : > { %v6216_v33 = vpop.eup %5120 }
 0x12b   : > { %v1055_v56 = vmul.f32 1.442695, %v1022_v42  ;;  %v1081_v42 = vmul.f32 1.442695, %v1035_v16  ;;  %v736_v16 = vsub.f32 %v6082_v29, %v6185_v32 }
 0x12d   : > { %5122 = vpow2.f32 %v1055_v56  ;;  %v770_v56 = vmul.f32 1.442695, %v732_v23  ;;  %1189 = vrot.lane.b32.xlu2 %v6216_v33, %s5726_s21  ;;  %v774_v23 = vmul.f32 1.442695, %v734_v55  ;;  %v778_v19 = vmul.f32 1.442695, %v736_v16 }
 0x12e   : > { %5124 = vpow2.f32 %v758_v57  ;;  %v739_v16 = vsub.f32 %v5923_v37, %v6185_v32 }
 0x12f   : > { %5126 = vpow2.f32 %v760_v62  ;;  %v735_v62 = vsub.f32 %v6068_v14, %v6185_v32 }
 0x130   : > { %v993_v1 = vpop.xlane.xlu1 %992  ;;  %v990_v3 = vpop.xlane.xlu0 %989  ;;  %5128 = vpow2.f32 %v762_v6 }
 0x131   : > { %v1043_v12 = vsub.f32 %v5960_v58, %v993_v1  ;;  %v1042_v13 = vsub.f32 %v5963_v61, %v990_v3  ;;  %v772_v3 = vmul.f32 1.442695, %v733_v38 }
 0x133   : > { %v1097_v24 = vmul.f32 1.442695, %v1043_v12  ;;  %v1095_v26 = vmul.f32 1.442695, %v1042_v13  ;;  %v6219_v45 = vpop.eup %5122  ;;  %v1057_v12 = vmul.f32 1.442695, %v1023_v43 }
 0x134   : > { %v6225_v57 = vpop.eup %5124  ;;  %1151 = vrot.lane.b32.xlu0 %v6219_v45, %s5726_s21 }
 0x135   : > { %5130 = vpow2.f32 %v1097_v24  ;;  %v6229_v1 = vpop.eup %5126  ;;  %v822_v5 = vsel %vm656_vm3, %v6225_v57, 0.0 }
 0x136   : > { %5132 = vpow2.f32 %v1095_v26  ;;  %v6236_v6 = vpop.eup %5128  ;;  %v823_v13 = vsel %vm656_vm3, %v6229_v1, 0.0 }
 0x137   : > { %v6221_v50 = vpop.xlane.xlu2 %995  ;;  %5134 = vpow2.f32 %v764_v31  ;;  %v824_v24 = vadd.f32 %v823_v13, %v822_v5  ;;  %v825_v38 = vsel %vm656_vm3, %v6236_v6, 0.0  ;;  %v738_v13 = vsub.f32 %v6128_v28, %v6185_v32 }
 0x138   : > { %v936_v59 = vpop.xlane.xlu1 %935  ;;  %v972_v60 = vpop.xlane.xlu0 %971  ;;  %5136 = vpow2.f32 %v766_v35  ;;  %v737_v35 = vsub.f32 %v6100_v51, %v6185_v32 }
 0x139   : > { %v1024_v40 = vsub.f32 %v5970_v0, %v936_v59  ;;  %5138 = vpow2.f32 %v768_v39  ;;  %v826_v43 = vadd.f32 %v825_v38, %v824_v24  ;;  %v1036_v55 = vsub.f32 %v5950_v54, %v972_v60 }
 0x13a   : > { %5140 = vpow2.f32 %v1081_v42  ;;  %v776_v42 = vmul.f32 1.442695, %v735_v62  ;;  %v782_v53 = vmul.f32 1.442695, %v738_v13 }
 0x13b   : > { %v6242_v15 = vpop.eup %5130  ;;  %5142 = vpow2.f32 %v770_v56  ;;  %v1059_v31 = vmul.f32 1.442695, %v1024_v40 }
 0x13c   : > { %8820 = vst [vmem:[#allocation46_spill] sm:$0xff] %v6242_v15  ;;  %v6246_v26 = vpop.eup %5132  ;;  %5144 = vpow2.f32 %v772_v3  ;;  %1193 = vrot.lane.b32.xlu0 %v6242_v15, %s5726_s21 }
 0x13d   : > { %v6252_v39 = vpop.eup %5134  ;;  %1191 = vrot.lane.b32.xlu1 %v6246_v26, %s5726_s21  ;;  %5146 = vpow2.f32 %v1057_v12  ;;  %v780_v12 = vmul.f32 1.442695, %v737_v35  ;;  %v1083_v35 = vmul.f32 1.442695, %v1036_v55 }
 0x13e   : > { %v6256_v56 = vpop.eup %5136  ;;  %v827_v59 = vsel %vm656_vm3, %v6252_v39, 0.0  ;;  %5148 = vpow2.f32 %v774_v23 }
 0x13f   : > { %v6261_v40 = vpop.eup %5138  ;;  %v939_v5 = vpop.xlane.xlu2 %938  ;;  %v828_v44 = vadd.f32 %v827_v59, %v826_v43  ;;  %5150 = vpow2.f32 %v1059_v31  ;;  %v829_v60 = vsel %vm656_vm3, %v6256_v56, 0.0  ;;  %v1044_v31 = vsub.f32 %v5973_v2, %v6221_v50 }
 0x140   : > { %v6265_v3 = vpop.eup %5140  ;;  %v975_v62 = vpop.xlane.xlu1 %974  ;;  %5152 = vpow2.f32 %v776_v42  ;;  %v740_v43 = vsub.f32 %v5942_v48, %v6185_v32  ;;  %v831_v59 = vsel %vm656_vm3, %v6261_v40, 0.0 }
 0x141   : > { %v999_v24 = vpop.xlane.xlu0 %998  ;;  %v6269_v38 = vpop.eup %5142  ;;  %v1037_v36 = vsub.f32 %v5985_v9, %v975_v62  ;;  %v830_v23 = vadd.f32 %v829_v60, %v828_v44  ;;  %1177 = vrot.lane.b32.xlu2 %v6265_v3, %s5726_s21  ;;  %5154 = vpow2.f32 %v778_v19  ;;  %v1025_v60 = vsub.f32 %v5982_v8, %v939_v5 }
 0x142   : > { %v6284_v21 = vpop.eup %5144  ;;  %5156 = vpow2.f32 %v780_v12  ;;  %v833_v50 = vsel %vm656_vm3, %v6269_v38, 0.0  ;;  %v784_v19 = vmul.f32 1.442695, %v739_v16  ;;  %v1045_v5 = vsub.f32 %v5988_v11, %v999_v24 }
 0x143   : > { %v1085_v62 = vmul.f32 1.442695, %v1037_v36  ;;  %v832_v42 = vadd.f32 %v831_v59, %v830_v23  ;;  %v6286_v44 = vpop.eup %5146  ;;  %v741_v36 = vsub.f32 %v5950_v54, %v6185_v32  ;;  %v1099_v59 = vmul.f32 1.442695, %v1044_v31 }
 0x144   : > { %8821 = vst [vmem:[#allocation47_spill] sm:$0xff] %v6286_v44  ;;  %v6291_v55 = vpop.eup %5148  ;;  %v835_v12 = vsel %vm656_vm3, %v6284_v21, 0.0  ;;  %v786_v0 = vmul.f32 1.442695, %v740_v43  ;;  %v1061_v16 = vmul.f32 1.442695, %v1025_v60  ;;  %v743_v24 = vsub.f32 %v6000_v18, %v6185_v32 }
 0x145   : > { %5158 = vpow2.f32 %v1085_v62  ;;  %1153 = vrot.lane.b32.xlu1 %v6286_v44, %s5726_s21  ;;  %v834_v13 = vadd.f32 %v833_v50, %v832_v42  ;;  %v6297_v23 = vpop.eup %5150  ;;  %v742_v62 = vsub.f32 %v5985_v9, %v6185_v32  ;;  %v837_v31 = vsel %vm656_vm3, %v6291_v55, 0.0 }
 0x146   : > { %8822 = vst [vmem:[#allocation48_spill] sm:$0xff] %v6297_v23  ;;  %5160 = vpow2.f32 %v1083_v35  ;;  %v6302_v37 = vpop.eup %5152  ;;  %v788_v8 = vmul.f32 1.442695, %v741_v36  ;;  %v1101_v43 = vmul.f32 1.442695, %v1045_v5 }
 0x147   : > { %v978_v48 = vpop.xlane.xlu2 %977  ;;  %5162 = vpow2.f32 %v782_v53  ;;  %v836_v54 = vadd.f32 %v835_v12, %v834_v13  ;;  %v6308_v35 = vpop.eup %5154  ;;  %v744_v53 = vsub.f32 %v5997_v17, %v6185_v32  ;;  %v839_v60 = vsel %vm656_vm3, %v6302_v37, 0.0 }
 0x148   : > { %v1002_v42 = vpop.xlane.xlu1 %1001  ;;  %5164 = vpow2.f32 %v784_v19  ;;  %v6312_v44 = vpop.eup %5156  ;;  %v1038_v12 = vsub.f32 %v6000_v18, %v978_v48  ;;  %v790_v36 = vmul.f32 1.442695, %v742_v62  ;;  %v792_v9 = vmul.f32 1.442695, %v743_v24 }
 0x149   : > { %v981_v50 = vpop.xlane.xlu0 %980  ;;  %v838_v15 = vadd.f32 %v837_v31, %v836_v54  ;;  %5166 = vpow2.f32 %v1099_v59  ;;  %1155 = vrot.lane.b32.xlu2 %v6297_v23, %s5726_s21  ;;  %v745_v31 = vsub.f32 %v6014_v27, %v6185_v32  ;;  %v841_v59 = vsel %vm656_vm3, %v6308_v35, 0.0 }
 0x14a   : > { %5168 = vpow2.f32 %v786_v0  ;;  %v1046_v48 = vsub.f32 %v6003_v20, %v1002_v42  ;;  %v1039_v62 = vsub.f32 %v5997_v17, %v981_v50  ;;  %v746_v18 = vsub.f32 %v5930_v41, %v6185_v32 }
 0x14b   : > { %v6320_v13 = vpop.eup %5158  ;;  %v840_v54 = vadd.f32 %v839_v60, %v838_v15  ;;  %5170 = vpow2.f32 %v1061_v16  ;;  %v794_v15 = vmul.f32 1.442695, %v744_v53  ;;  %v843_v16 = vsel %vm656_vm3, %v6312_v44, 0.0 }
 0x14c   : > { %8823 = vst [vmem:[#allocation49_spill] sm:$0xff] %v6320_v13  ;;  %v6323_v19 = vpop.eup %5160  ;;  %1181 = vrot.lane.b32.xlu0 %v6320_v13, %s5726_s21  ;;  %5172 = vpow2.f32 %v788_v8  ;;  %v1087_v24 = vmul.f32 1.442695, %v1038_v12  ;;  %v796_v8 = vmul.f32 1.442695, %v745_v31 }
 0x14d   : > { %8824 = vst [vmem:[#allocation50_spill] sm:$0xff] %v6323_v19  ;;  %v6331_v5 = vpop.eup %5162  ;;  %1179 = vrot.lane.b32.xlu1 %v6323_v19, %s5726_s21  ;;  %v842_v0 = vadd.f32 %v841_v59, %v840_v54  ;;  %5174 = vpow2.f32 %v1101_v43  ;;  %v747_v59 = vsub.f32 %v5963_v61, %v6185_v32  ;;  %v1103_v17 = vmul.f32 1.442695, %v1046_v48 }
 0x14e   : > { %v6339_v60 = vpop.eup %5164  ;;  %5176 = vpow2.f32 %v790_v36  ;;  %v845_v50 = vsel %vm656_vm3, %v6331_v5, 0.0  ;;  %v748_v36 = vsub.f32 %v5960_v58, %v6185_v32  ;;  %v1089_v31 = vmul.f32 1.442695, %v1039_v62 }
 0x14f   : > { %v942_v13 = vpop.xlane.xlu2 %941  ;;  %v844_v42 = vadd.f32 %v843_v16, %v842_v0  ;;  %v6343_v23 = vpop.eup %5166  ;;  %5178 = vpow2.f32 %v792_v9  ;;  %v847_v0 = vsel %vm656_vm3, %v6339_v60, 0.0  ;;  %v798_v19 = vmul.f32 1.442695, %v746_v18 }
 0x150   : > { %v984_v54 = vpop.xlane.xlu1 %983  ;;  %v6347_v43 = vpop.eup %5168  ;;  %5180 = vpow2.f32 %v794_v15  ;;  %v1026_v9 = vsub.f32 %v6024_v34, %v942_v13  ;;  %v800_v58 = vmul.f32 1.442695, %v747_v59  ;;  %v802_v13 = vmul.f32 1.442695, %v748_v36 }
 0x151   : > { %v945_v53 = vpop.xlane.xlu0 %944  ;;  %v846_v41 = vadd.f32 %v845_v50, %v844_v42  ;;  %v6351_v12 = vpop.eup %5170  ;;  %1195 = vrot.lane.b32.xlu2 %v6343_v23, %s5726_s21  ;;  %5182 = vpow2.f32 %v1087_v24  ;;  %v749_v50 = vsub.f32 %v5973_v2, %v6185_v32  ;;  %v849_v15 = vsel %vm656_vm3, %v6347_v43, 0.0 }
 0x152   : > { %v6359_v16 = vpop.eup %5172  ;;  %5184 = vpow2.f32 %v796_v8  ;;  %v1040_v18 = vsub.f32 %v6014_v27, %v984_v54  ;;  %v1027_v24 = vsub.f32 %v6019_v30, %v945_v53  ;;  %v750_v2 = vsub.f32 %v5988_v11, %v6185_v32 }
 0x153   : > { %v848_v48 = vadd.f32 %v847_v0, %v846_v41  ;;  %v6362_v42 = vpop.eup %5174  ;;  %5186 = vpow2.f32 %v1103_v17  ;;  %v851_v8 = vsel %vm656_vm3, %v6359_v16, 0.0  ;;  %v1063_v17 = vmul.f32 1.442695, %v1026_v9 }
 0x154   : > { %8825 = vst [vmem:[#allocation51_spill] sm:$0xff] %v6362_v42  ;;  %1157 = vrot.lane.b32.xlu0 %v6351_v12, %s5726_s21  ;;  %v6370_v62 = vpop.eup %5176  ;;  %5188 = vpow2.f32 %v1089_v31  ;;  %v804_v27 = vmul.f32 1.442695, %v749_v50  ;;  %v751_v31 = vsub.f32 %v6003_v20, %v6185_v32  ;;  %v752_v9 = vsub.f32 %v6037_v47, %v6185_v32 }
 0x155   : > { %1197 = vrot.lane.b32.xlu1 %v6362_v42, %s5726_s21  ;;  %v850_v41 = vadd.f32 %v849_v15, %v848_v48  ;;  %v6378_v0 = vpop.eup %5178  ;;  %5190 = vpow2.f32 %v798_v19  ;;  %v853_v36 = vsel %vm656_vm3, %v6370_v62, 0.0  ;;  %v1091_v15 = vmul.f32 1.442695, %v1040_v18 }
 0x156   : > { %v6382_v61 = vpop.eup %5180  ;;  %5192 = vpow2.f32 %v800_v58  ;;  %v1065_v50 = vmul.f32 1.442695, %v1027_v24  ;;  %v806_v20 = vmul.f32 1.442695, %v750_v2  ;;  %v808_v30 = vmul.f32 1.442695, %v751_v31 }
 0x157   : > { %v1005_v59 = vpop.xlane.xlu2 %1004  ;;  %v852_v54 = vadd.f32 %v851_v8, %v850_v41  ;;  %v6386_v53 = vpop.eup %5182  ;;  %5194 = vpow2.f32 %v802_v13  ;;  %v855_v41 = vsel %vm656_vm3, %v6378_v0, 0.0  ;;  %v857_v13 = vsel %vm656_vm3, %v6382_v61, 0.0 }
 0x158   : > { %v948_v48 = vpop.xlane.xlu1 %947  ;;  %v6390_v19 = vpop.eup %5184  ;;  %5196 = vpow2.f32 %v1063_v17  ;;  %v1047_v58 = vsub.f32 %v6037_v47, %v1005_v59  ;;  %v810_v17 = vmul.f32 1.442695, %v752_v9  ;;  %v754_v47 = vsub.f32 %v6063_v7, %v6185_v32 }
 0x159   : > { %v1008_v34 = vpop.xlane.xlu0 %1007  ;;  %v854_v11 = vadd.f32 %v853_v36, %v852_v54  ;;  %1183 = vrot.lane.b32.xlu2 %v6386_v53, %s5726_s21  ;;  %v6398_v8 = vpop.eup %5186  ;;  %v753_v36 = vsub.f32 %v6045_v52, %v6185_v32  ;;  %5198 = vpow2.f32 %v804_v27  ;;  %v1028_v2 = vsub.f32 %v6040_v49, %v948_v48 }
 0x15a   : > { %8826 = vst [vmem:[#allocation52_spill] sm:$0xff] %v6398_v8  ;;  %v6401_v54 = vpop.eup %5188  ;;  %5200 = vpow2.f32 %v1091_v15  ;;  %v1048_v27 = vsub.f32 %v6045_v52, %v1008_v34  ;;  %v859_v59 = vsel %vm656_vm3, %v6390_v19, 0.0  ;;  %v1105_v31 = vmul.f32 1.442695, %v1047_v58 }
 0x15b   : > { %v856_v18 = vadd.f32 %v855_v41, %v854_v11  ;;  %8827 = vst [vmem:[#allocation53_spill] sm:$0xff] %v6401_v54  ;;  %v6409_v24 = vpop.eup %5190  ;;  %5202 = vpow2.f32 %v1065_v50  ;;  %v755_v50 = vsub.f32 %v6079_v25, %v6185_v32 }
 0x15c   : > { %1199 = vrot.lane.b32.xlu0 %v6398_v8, %s5726_s21  ;;  %v6417_v41 = vpop.eup %5192  ;;  %5204 = vpow2.f32 %v806_v20  ;;  %v861_v9 = vsel %vm656_vm3, %v6409_v24, 0.0  ;;  %v756_v20 = vsub.f32 %v6097_v46, %v6185_v32  ;;  %v1107_v58 = vmul.f32 1.442695, %v1048_v27 }
 0x15d   : > { %1185 = vrot.lane.b32.xlu1 %v6401_v54, %s5726_s21  ;;  %v858_v11 = vadd.f32 %v857_v13, %v856_v18  ;;  %v6421_v49 = vpop.eup %5194  ;;  %v812_v54 = vmul.f32 1.442695, %v753_v36  ;;  %5206 = vpow2.f32 %v808_v30  ;;  %v1067_v13 = vmul.f32 1.442695, %v1028_v2 }
 0x15e   : > { %v6425_v34 = vpop.eup %5196  ;;  %5208 = vpow2.f32 %v810_v17  ;;  %v863_v36 = vsel %vm656_vm3, %v6417_v41, 0.0  ;;  %v757_v17 = vsub.f32 %v6125_v22, %v6185_v32  ;;  %v865_v27 = vsel %vm656_vm3, %v6421_v49, 0.0 }
 0x15f   : > { %v951_v15 = vpop.xlane.xlu2 %950  ;;  %v860_v48 = vadd.f32 %v859_v59, %v858_v11  ;;  %v6429_v8 = vpop.eup %5198  ;;  %v814_v59 = vmul.f32 1.442695, %v754_v47  ;;  %5210 = vpow2.f32 %v1105_v31  ;;  %v816_v47 = vmul.f32 1.442695, %v755_v50 }
 0x160   : > { %v1011_v18 = vpop.xlane.xlu1 %1010  ;;  %v6437_v11 = vpop.eup %5200  ;;  %v1029_v30 = vsub.f32 %v6058_v4, %v951_v15  ;;  %5212 = vpow2.f32 %v812_v54  ;;  %v818_v15 = vmul.f32 1.442695, %v756_v20  ;;  %v867_v54 = vsel %vm656_vm3, %v6429_v8, 0.0 }
 0x161   : > { %v862_v52 = vadd.f32 %v861_v9, %v860_v48  ;;  %1159 = vrot.lane.b32.xlu2 %v6425_v34, %s5726_s21  ;;  %8828 = vst [vmem:[#allocation54_spill] sm:$0xff] %v6437_v11  ;;  %v954_v2 = vpop.xlane.xlu0 %953  ;;  %v6440_v9 = vpop.eup %5202  ;;  %5214 = vpow2.f32 %v1067_v13  ;;  %v1049_v31 = vsub.f32 %v6063_v7, %v1011_v18  ;;  %v820_v13 = vmul.f32 1.442695, %v757_v17 }
 0x162   : > { %v6448_v42 = vpop.eup %5204  ;;  %5216 = vpow2.f32 %v1107_v58  ;;  %v1030_v32 = vsub.f32 %v6068_v14, %v954_v2  ;;  %v1069_v4 = vmul.f32 1.442695, %v1029_v30 }
 0x163   : > { %v864_v48 = vadd.f32 %v863_v36, %v862_v52  ;;  %v6456_v36 = vpop.eup %5206  ;;  %5218 = vpow2.f32 %v814_v59  ;;  %v869_v18 = vsel %vm656_vm3, %v6448_v42, 0.0  ;;  %v1109_v20 = vmul.f32 1.442695, %v1049_v31 }
 0x164   : > { %1187 = vrot.lane.b32.xlu0 %v6437_v11, %s5726_s21  ;;  %v6458_v50 = vpop.eup %5208  ;;  %5220 = vpow2.f32 %v816_v47  ;;  %v871_v59 = vsel %vm656_vm3, %v6456_v36, 0.0  ;;  %v1071_v30 = vmul.f32 1.442695, %v1030_v32 }
 0x165   : > { %1161 = vrot.lane.b32.xlu1 %v6440_v9, %s5726_s21  ;;  %v866_v52 = vadd.f32 %v865_v27, %v864_v48  ;;  %v6462_v48 = vpop.eup %5210  ;;  %5222 = vpow2.f32 %v818_v15 }
 0x166   : > { %v6464_v2 = vpop.eup %5212  ;;  %5224 = vpow2.f32 %v1069_v4 }
 0x167   : > { %v868_v11 = vadd.f32 %v867_v54, %v866_v52  ;;  %v1014_v7 = vpop.xlane.xlu2 %1013  ;;  %v6470_v27 = vpop.eup %5214  ;;  %5226 = vpow2.f32 %v820_v13 }
 0x168   : > { %v957_v17 = vpop.xlane.xlu1 %956  ;;  %v1050_v52 = vsub.f32 %v6079_v25, %v1014_v7  ;;  %v6473_v47 = vpop.eup %5216  ;;  %5228 = vpow2.f32 %v1109_v20  ;;  %v875_v7 = vsel %vm656_vm3, %v6464_v2, 0.0 }
 0x169   : > { %v870_v58 = vadd.f32 %v869_v18, %v868_v11  ;;  %1201 = vrot.lane.b32.xlu2 %v6462_v48, %s5726_s21  ;;  %v873_v11 = vsel %vm656_vm3, %v6458_v50, 0.0  ;;  %v6479_v31 = vpop.eup %5218  ;;  %v1031_v15 = vsub.f32 %v6082_v29, %v957_v17  ;;  %5230 = vpow2.f32 %v1071_v30 }
 0x16a   : > { %v6486_v32 = vpop.eup %5220  ;;  %v1111_v13 = vmul.f32 1.442695, %v1050_v52  ;;  %v877_v20 = vsel %vm656_vm3, %v6479_v31, 0.0 }
 0x16b   : > { %v872_v54 = vadd.f32 %v871_v59, %v870_v58  ;;  %v6488_v59 = vpop.eup %5222  ;;  %v879_v52 = vsel %vm656_vm3, %v6486_v32, 0.0 }
 0x16c   : > { %1163 = vrot.lane.b32.xlu0 %v6470_v27, %s5726_s21  ;;  %v6493_v14 = vpop.eup %5224  ;;  %5232 = vpow2.f32 %v1111_v13 }
 0x16d   : > { %1203 = vrot.lane.b32.xlu1 %v6473_v47, %s5726_s21  ;;  %v874_v4 = vadd.f32 %v873_v11, %v872_v54  ;;  %v1073_v54 = vmul.f32 1.442695, %v1031_v15  ;;  %v6496_v30 = vpop.eup %5226  ;;  %v881_v15 = vsel %vm656_vm3, %v6488_v59, 0.0 }
 0x16f   : > { %v1017_v18 = vpop.xlane.xlu0 %1016  ;;  %v876_v58 = vadd.f32 %v875_v7, %v874_v4  ;;  %v6502_v7 = vpop.eup %5228  ;;  %5234 = vpow2.f32 %v1073_v54 }
 0x170   : > { %v1051_v17 = vsub.f32 %v6097_v46, %v1017_v18  ;;  %v960_v25 = vpop.xlane.xlu2 %959  ;;  %v6504_v46 = vpop.eup %5230 }
 0x171   : > { %v1032_v11 = vsub.f32 %v6100_v51, %v960_v25  ;;  %v878_v29 = vadd.f32 %v877_v20, %v876_v58  ;;  %1165 = vrot.lane.b32.xlu2 %v6493_v14, %s5726_s21  ;;  %v883_v20 = vsel %vm656_vm3, %v6496_v30, 0.0 }
 0x172   : > { %v1113_v4 = vmul.f32 1.442695, %v1051_v17 }
 0x173   : > { %v880_v18 = vadd.f32 %v879_v52, %v878_v29  ;;  %v1075_v25 = vmul.f32 1.442695, %v1032_v11  ;;  %v6514_v29 = vpop.eup %5232 }
 0x174   : > { %1205 = vrot.lane.b32.xlu0 %v6502_v7, %s5726_s21  ;;  %5236 = vpow2.f32 %v1113_v4 }
 0x175   : > { %1167 = vrot.lane.b32.xlu1 %v6504_v46, %s5726_s21  ;;  %v882_v58 = vadd.f32 %v881_v15, %v880_v18  ;;  %5238 = vpow2.f32 %v1075_v25  ;;  %v6518_v52 = vpop.eup %5234 }
 0x177   : > { %v884_v13 = vadd.f32 %v883_v20, %v882_v58 }
 0x179   : > { %v885_v17 = vrot.slane %v884_v13, 4  ;;  %1207 = vrot.lane.b32.xlu2 %v6514_v29, %s5726_s21 }
 0x17a   : > { %v6520_v11 = vpop.eup %5236 }
 0x17b   : > { %v886_v54 = vadd.f32 %v885_v17, %v884_v13  ;;  %8829 = vst [vmem:[#allocation55_spill] sm:$0xff] %v6520_v11  ;;  %v6526_v18 = vpop.eup %5238 }
 0x17c   : > { %1169 = vrot.lane.b32.xlu0 %v6518_v52, %s5726_s21  ;;  %8830 = vst [vmem:[#allocation56_spill] sm:$0xff] %v6526_v18 }
 0x17d   : > { %1209 = vrot.lane.b32.xlu1 %v6520_v11, %s5726_s21  ;;  %v887_v4 = vrot.slane %v886_v54, 2 }
 0x17f   : > { %v888_v15 = vadd.f32 %v887_v4, %v886_v54 }
 0x181   : > { %v889_v25 = vrot.slane %v888_v15, 1  ;;  %1171 = vrot.lane.b32.xlu2 %v6526_v18, %s5726_s21 }
 0x183   : > { %v890_v58 = vadd.f32 %v889_v25, %v888_v15 }
 0x185   : > { %5240 = vrcp.f32 %v890_v58 }
 0x18b   : > { %v6530_v20 = vpop.eup %5240 }
 0x18c   : > { %v896_v13 = vmul.f32 %v6530_v20, %v6256_v56  ;;  %v897_v17 = vmul.f32 %v6530_v20, %v6261_v40  ;;  %v894_v11 = vmul.f32 %v6530_v20, %v6236_v6  ;;  %v895_v54 = vmul.f32 %v6530_v20, %v6252_v39 }
 0x18d   : > { %v892_v4 = vmul.f32 %v6530_v20, %v6225_v57  ;;  %v893_v15 = vmul.f32 %v6530_v20, %v6229_v1  ;;  %v904_v6 = vmul.f32 %v6530_v20, %v6331_v5  ;;  %v908_v39 = vmul.f32 %v6530_v20, %v6370_v62 }
 0x18e   : > { %v4887_v25 = vpack.i.bf16 %v897_v17, %v896_v13  ;;  %v4882_v58 = vpack.i.bf16 %v895_v54, %v894_v11  ;;  %v900_v57 = vmul.f32 %v6530_v20, %v6291_v55  ;;  %v901_v1 = vmul.f32 %v6530_v20, %v6302_v37  ;;  %v963_v54 = vpop.xlane.xlu0 %962 }
 0x18f   : > { %v4877_v18 = vpack.i.bf16 %v893_v15, %v892_v4  ;;  %v898_v56 = vmul.f32 %v6530_v20, %v6269_v38  ;;  %v899_v40 = vmul.f32 %v6530_v20, %v6284_v21  ;;  %v915_v11 = vmul.f32 %v6530_v20, %v6429_v8 }
 0x190   : > { %4888 = vrot.lane.b32.xlu1 %v4887_v25, %s5727_s25  ;;  %4883 = vrot.lane.b32.xlu2 %v4882_v58, %s5727_s25  ;;  %v916_v5 = vmul.f32 %v6530_v20, %v6448_v42  ;;  %v4907_v62 = vpack.i.bf16 %v908_v39, %v904_v6  ;;  %v4897_v13 = vpack.i.bf16 %v901_v1, %v900_v57  ;;  %v1020_v58 = vpop.xlane.xlu1 %1019 }
 0x191   : > { %4878 = vrot.lane.b32.xlu0 %v4877_v18, %s5727_s25  ;;  %v4892_v17 = vpack.i.bf16 %v899_v40, %v898_v56  ;;  %v913_v37 = vmul.f32 %v6530_v20, %v6417_v41  ;;  %v914_v21 = vmul.f32 %v6530_v20, %v6421_v49  ;;  %v909_v38 = vmul.f32 %v6530_v20, %v6378_v0 }
 0x192   : > { %v4927_v18 = vpack.i.bf16 %v916_v5, %v915_v11  ;;  %v910_v55 = vmul.f32 %v6530_v20, %v6382_v61  ;;  %v902_v42 = vmul.f32 %v6530_v20, %v6308_v35  ;;  %v903_v8 = vmul.f32 %v6530_v20, %v6312_v44 }
 0x193   : > { %v4922_v4 = vpack.i.bf16 %v914_v21, %v913_v37  ;;  %v919_v49 = vmul.f32 %v6530_v20, %v6464_v2  ;;  %v920_v61 = vmul.f32 %v6530_v20, %v6479_v31  ;;  %v911_v35 = vmul.f32 %v6530_v20, %v6390_v19 }
 0x194   : > { %v4912_v15 = vpack.i.bf16 %v910_v55, %v909_v38  ;;  %v4902_v25 = vpack.i.bf16 %v903_v8, %v902_v42  ;;  %v912_v44 = vmul.f32 %v6530_v20, %v6409_v24  ;;  %v1033_v39 = vsub.f32 %v6128_v28, %v963_v54 }
 0x195   : > { %v4937_v41 = vpack.i.bf16 %v920_v61, %v919_v49  ;;  %v906_v2 = vmul.f32 %v6530_v20, %v6347_v43  ;;  %v907_v19 = vmul.f32 %v6530_v20, %v6359_v16  ;;  %v921_v24 = vmul.f32 %v6530_v20, %v6486_v32 }
 0x196   : > { %v1176_v0 = vpop.permute.xlu0 %1175  ;;  %v4917_v6 = vpack.i.bf16 %v912_v44, %v911_v35  ;;  %v922_v31 = vmul.f32 %v6530_v20, %v6488_v59  ;;  %v917_v57 = vmul.f32 %v6530_v20, %v6456_v36  ;;  %v918_v1 = vmul.f32 %v6530_v20, %v6458_v50 }
 0x197   : > { %v1077_v40 = vmul.f32 1.442695, %v1033_v39  ;;  %v4952_v11 = vpack.i.bf16 %v907_v19, %v906_v2  ;;  %v1052_v16 = vsub.f32 %v6125_v22, %v1020_v58  ;;  %v905_v36 = vmul.f32 %v6530_v20, %v6339_v60 }
 0x198   : > { %4908 = vrot.lane.b32.xlu1 %v4907_v62, %s5727_s25  ;;  %4898 = vrot.lane.b32.xlu2 %v4897_v13, %s5727_s25  ;;  %v4942_v5 = vpack.i.bf16 %v922_v31, %v921_v24  ;;  %v4932_v43 = vpack.i.bf16 %v918_v1, %v917_v57  ;;  %v1150_v62 = vpop.permute.xlu2 %1149  ;;  %v923_v50 = vmul.f32 %v6530_v20, %v6496_v30 }
 0x199   : > { %4893 = vrot.lane.b32.xlu0 %v4892_v17, %s5727_s25  ;;  %5242 = vpow2.f32 %v1077_v40  ;;  %v1115_v32 = vmul.f32 1.442695, %v1052_v16 }
 0x19a   : > { %v4947_v17 = vpack.i.bf16 %v923_v50, %v905_v36 }
 0x19b   : > { %5244 = vpow2.f32 %v1115_v32 }
 0x19f   : > { %v6613_v13 = vpop.eup %5242 }
 0x1a0   : > { %4923 = vrot.lane.b32.xlu1 %v4922_v4, %s5727_s25  ;;  %4913 = vrot.lane.b32.xlu2 %v4912_v15, %s5727_s25  ;;  %v1190_v21 = vpop.permute.xlu2 %1189 }
 0x1a1   : > { %4903 = vrot.lane.b32.xlu0 %v4902_v25, %s5727_s25  ;;  %v6618_v42 = vpop.eup %5244  ;;  %v1245_v25 = vsel %vm443_vm0, %v1150_v62, 0.0  ;;  %v1305_v24 = vsel %vm443_vm0, %v1190_v21, 0.0 }
 0x1a6   : > { %v1152_v56 = vpop.permute.xlu0 %1151 }
 0x1a7   : > { %v1248_v2 = vsel %vm443_vm0, %v1152_v56, 0.0 }
 0x1a8   : > { %4938 = vrot.lane.b32.xlu1 %v4937_v41, %s5727_s25  ;;  %4928 = vrot.lane.b32.xlu2 %v4927_v18, %s5727_s25  ;;  %v1178_v60 = vpop.permute.xlu2 %1177  ;;  %v1284_v41 = vsel %vm443_vm0, %v1176_v0, 0.0 }
 0x1a9   : > { %4918 = vrot.lane.b32.xlu0 %v4917_v6, %s5727_s25  ;;  %v1287_v40 = vsel %vm443_vm0, %v1178_v60, 0.0 }
 0x1ae   : > { %v1194_v59 = vpop.permute.xlu0 %1193 }
 0x1af   : > { %v1192_v18 = vpop.permute.xlu1 %1191  ;;  %v1311_v0 = vsel %vm443_vm0, %v1194_v59, 0.0 }
 0x1b0   : > { %4953 = vrot.lane.b32.xlu1 %v4952_v11, %s5727_s25  ;;  %4943 = vrot.lane.b32.xlu2 %v4942_v5, %s5727_s25  ;;  %v1156_v8 = vpop.permute.xlu2 %1155  ;;  %v1308_v44 = vsel %vm443_vm0, %v1192_v18, 0.0 }
 0x1b1   : > { %4933 = vrot.lane.b32.xlu0 %v4932_v43, %s5727_s25  ;;  %v1254_v1 = vsel %vm443_vm0, %v1156_v8, 0.0 }
 0x1b7   : > { %v1154_v37 = vpop.permute.xlu1 %1153 }
 0x1b8   : > { %1173 = vrot.lane.b32.xlu1 %v6613_v13, %s5726_s21  ;;  %v1196_v15 = vpop.permute.xlu2 %1195  ;;  %v1251_v62 = vsel %vm443_vm0, %v1154_v37, 0.0 }
 0x1b9   : > { %4948 = vrot.lane.b32.xlu0 %v4947_v17, %s5727_s25  ;;  %v1314_v59 = vsel %vm443_vm0, %v1196_v15, 0.0  ;;  %s378_s25 = scalar_lea.vmem [#allocation4], %s7711_s20 }
 0x1ba   : > { %s4394_s27 = sshll.u32 %s378_s25, 4  ;;  %s4395_s27 = int_to_ptr.vmem [resolvable:$true] %s4394_s27 }
 0x1be   : > { %v1182_v38 = vpop.permute.xlu0 %1181 }
 0x1bf   : > { %v1180_v55 = vpop.permute.xlu1 %1179  ;;  %v1293_v18 = vsel %vm443_vm0, %v1182_v38, 0.0 }
 0x1c0   : > { %v1184_v35 = vpop.permute.xlu2 %1183  ;;  %v1290_v39 = vsel %vm443_vm0, %v1180_v55, 0.0 }
 0x1c1   : > { %1211 = vrot.lane.b32.xlu0 %v6618_v42, %s5726_s21  ;;  %v1296_v60 = vsel %vm443_vm0, %v1184_v35, 0.0 }
 0x1c6   : > { %v1158_v20 = vpop.permute.xlu0 %1157 }
 0x1c7   : > { %v1198_v30 = vpop.permute.xlu1 %1197  ;;  %v1257_v50 = vsel %vm443_vm0, %v1158_v20, 0.0 }
 0x1c8   : > { %v1160_v19 = vpop.permute.xlu2 %1159  ;;  %v1317_v5 = vsel %vm443_vm0, %v1198_v30, 0.0 }
 0x1ce   : > { %v1200_v4 = vpop.permute.xlu0 %1199 }
 0x1cf   : > { %v1186_v54 = vpop.permute.xlu1 %1185  ;;  %v1320_v37 = vsel %vm443_vm0, %v1200_v4, 0.0 }
 0x1d0   : > { %v1202_v11 = vpop.permute.xlu2 %1201  ;;  %v1299_v36 = vsel %vm443_vm0, %v1186_v54, 0.0 }
 0x1d6   : > { %v1188_v61 = vpop.permute.xlu0 %1187 }
 0x1d7   : > { %v1162_v49 = vpop.permute.xlu1 %1161  ;;  %v1302_v8 = vsel %vm443_vm0, %v1188_v61, 0.0 }
 0x1d8   : > { %v1166_v16 = vpop.permute.xlu2 %1165  ;;  %v1263_v38 = vsel %vm443_vm0, %v1162_v49, 0.0 }
 0x1d9   : > { %1246 = vadd.xlane.f32.xlu2 %v1245_v25  ;;  %v1260_v25 = vsel %vm443_vm0, %v1160_v19, 0.0 }
 0x1de   : > { %v1164_v6 = vpop.permute.xlu0 %1163 }
 0x1df   : > { %v1204_v58 = vpop.permute.xlu1 %1203  ;;  %v1266_v35 = vsel %vm443_vm0, %v1164_v6, 0.0  ;;  %v1269_v6 = vsel %vm443_vm0, %v1166_v16, 0.0 }
 0x1e0   : > { %v1208_v21 = vpop.permute.xlu2 %1207  ;;  %v1326_v20 = vsel %vm443_vm0, %v1204_v58, 0.0 }
 0x1e1   : > { %1309 = vadd.xlane.f32.xlu2 %v1308_v44 }
 0x1e2   : > { %1285 = vadd.xlane.f32.xlu1 %v1284_v41  ;;  %v1323_v41 = vsel %vm443_vm0, %v1202_v11, 0.0 }
 0x1e6   : > { %v1206_v57 = vpop.permute.xlu0 %1205 }
 0x1e7   : > { %v1168_v31 = vpop.permute.xlu1 %1167 }
 0x1e8   : > { %v1172_v54 = vpop.permute.xlu2 %1171  ;;  %v1272_v49 = vsel %vm443_vm0, %v1168_v31, 0.0 }
 0x1e9   : > { %1291 = vadd.xlane.f32.xlu2 %v1290_v39 }
 0x1ea   : > { %1249 = vadd.xlane.f32.xlu1 %v1248_v2  ;;  %v1329_v2 = vsel %vm443_vm0, %v1206_v57, 0.0 }
 0x1eb   : > { %1306 = vadd.xlane.f32.xlu0 %v1305_v24 }
 0x1ee   : > { %v1170_v43 = vpop.permute.xlu0 %1169 }
 0x1ef   : > { %v1210_v56 = vpop.permute.xlu1 %1209 }
 0x1f0   : > { %v6662_v58 = vpop.permute.xlu2 %4883  ;;  %v1335_v39 = vsel %vm443_vm0, %v1210_v56, 0.0  ;;  %v1278_v56 = vsel %vm443_vm0, %v1172_v54, 0.0 }
 0x1f1   : > { %1255 = vadd.xlane.f32.xlu2 %v1254_v1  ;;  %v1275_v1 = vsel %vm443_vm0, %v1170_v43, 0.0 }
 0x1f2   : > { %1312 = vadd.xlane.f32.xlu1 %v1311_v0 }
 0x1f3   : > { %1288 = vadd.xlane.f32.xlu0 %v1287_v40  ;;  %v1332_v40 = vsel %vm443_vm0, %v1208_v21, 0.0 }
 0x1f8   : > { %v6671_v31 = vpop.permute.xlu2 %4898 }
 0x1f9   : > { %1318 = vadd.xlane.f32.xlu2 %v1317_v5 }
 0x1fa   : > { %1294 = vadd.xlane.f32.xlu1 %v1293_v18 }
 0x1fb   : > { %1252 = vadd.xlane.f32.xlu0 %v1251_v62 }
 0x200   : > { %v4914_v5 = vpop.permute.xlu2 %4913 }
 0x201   : > { %1300 = vadd.xlane.f32.xlu2 %v1299_v36 }
 0x202   : > { %1258 = vadd.xlane.f32.xlu1 %v1257_v50  ;;  %v6636_v32 = vpop.permute.xlu1 %4888 }
 0x203   : > { %1315 = vadd.xlane.f32.xlu0 %v1314_v59  ;;  %v6639_v17 = vpop.permute.xlu0 %4878 }
 0x204   : > { %v4880_v59 = vunpack.i.l.bf16 %v6639_v17 }
 0x208   : > { %v6680_v16 = vpop.permute.xlu2 %4928 }
 0x209   : > { %1264 = vadd.xlane.f32.xlu2 %v1263_v38 }
 0x20a   : > { %1321 = vadd.xlane.f32.xlu1 %v1320_v37  ;;  %v6643_v55 = vpop.permute.xlu1 %4908 }
 0x20b   : > { %1297 = vadd.xlane.f32.xlu0 %v1296_v60  ;;  %v6646_v30 = vpop.permute.xlu0 %4893  ;;  %v4911_v50 = vunpack.i.h.bf16 %v6643_v55 }
 0x20d   : > { %v4957_v38 = vpack.i.bf16 %v4911_v50, %v4880_v59 }
 0x210   : > { %v6682_v43 = vpop.permute.xlu2 %4943 }
 0x211   : > { %1327 = vadd.xlane.f32.xlu2 %v1326_v20  ;;  %v4881_v20 = vunpack.i.h.bf16 %v6639_v17 }
 0x212   : > { %1303 = vadd.xlane.f32.xlu1 %v1302_v8  ;;  %v6650_v15 = vpop.permute.xlu1 %4923  ;;  %v4915_v8 = vunpack.i.l.bf16 %v4914_v5 }
 0x213   : > { %1261 = vadd.xlane.f32.xlu0 %v1260_v25  ;;  %v6653_v4 = vpop.permute.xlu0 %4903 }
 0x214   : > { %v4959_v54 = vpack.i.bf16 %v4915_v8, %v4881_v20 }
 0x219   : > { %1273 = vadd.xlane.f32.xlu2 %v1272_v49 }
 0x21a   : > { %1267 = vadd.xlane.f32.xlu1 %v1266_v35  ;;  %v6657_v44 = vpop.permute.xlu1 %4938 }
 0x21b   : > { %1324 = vadd.xlane.f32.xlu0 %v1323_v41  ;;  %v6660_v61 = vpop.permute.xlu0 %4918 }
 0x221   : > { %1336 = vadd.xlane.f32.xlu2 %v1335_v39 }
 0x222   : > { %1330 = vadd.xlane.f32.xlu1 %v1329_v2  ;;  %v6666_v19 = vpop.permute.xlu1 %4953  ;;  %v4916_v2 = vunpack.i.h.bf16 %v4914_v5  ;;  %v4886_v5 = vunpack.i.h.bf16 %v6662_v58 }
 0x223   : > { %1270 = vadd.xlane.f32.xlu0 %v1269_v6  ;;  %v6669_v24 = vpop.permute.xlu0 %4933 }
 0x22a   : > { %1276 = vadd.xlane.f32.xlu1 %v1275_v1  ;;  %v1174_v0 = vpop.permute.xlu1 %1173 }
 0x22b   : > { %1333 = vadd.xlane.f32.xlu0 %v1332_v40  ;;  %v6675_v11 = vpop.permute.xlu0 %4948  ;;  %v1281_v57 = vsel %vm443_vm0, %v1174_v0, 0.0 }
 0x22c   : > { %1282 = vadd.xlane.f32.xlu2 %v1281_v57 }
 0x233   : > { %1279 = vadd.xlane.f32.xlu0 %v1278_v56  ;;  %v1212_v18 = vpop.permute.xlu0 %1211 }
 0x234   : > { %v1338_v62 = vsel %vm443_vm0, %v1212_v18, 0.0 }
 0x235   : > { %1339 = vadd.xlane.f32.xlu1 %v1338_v62 }
 0x24c   : > { %v1247_v36 = vpop.xlane.xlu2 %1246 }
 0x24d   : > { %5246 = vrcp.f32 %v1247_v36 }
 0x253   : > { %v5247_v21 = vpop.eup %5246 }
 0x254   : > { %v1373_v37 = vmul.f32 %v5247_v21, %v6201_v10  ;;  %v1310_v49 = vpop.xlane.xlu2 %1309  ;;  %v4885_v10 = vunpack.i.l.bf16 %v6662_v58  ;;  %v4921_v21 = vunpack.i.h.bf16 %v6660_v61  ;;  %v4890_v58 = vunpack.i.l.bf16 %v6636_v32 }
 0x255   : > { %v1286_v60 = vpop.xlane.xlu1 %1285  ;;  %4958 = vxpose.xlu2.b32.start [1/16] (narrow) %v4957_v38, 8 }
 0x256   : > { %5248 = vrcp.f32 %v1286_v60  ;;  %1669 = vrot.lane.b32.xlu0 %v1373_v37, %s5726_s21  ;;  %v4961_v6 = vpack.i.bf16 %v4916_v2, %v4885_v10  ;;  %v4965_v60 = vpack.i.bf16 %v4921_v21, %v4890_v58  ;;  %v8833_v10 = vld [vmem:[#allocation48_spill] sm:$0xff] }
 0x25c   : > { %v5249_v25 = vpop.eup %5248  ;;  %v1292_v56 = vpop.xlane.xlu2 %1291 }
 0x25d   : > { %v1250_v35 = vpop.xlane.xlu1 %1249  ;;  %4960 = vxpose.xlu2.b32.cont [2/16] (narrow) %v4959_v54, 8  ;;  %v1386_v41 = vmul.f32 %v5249_v25, %v6197_v63  ;;  %v4920_v63 = vunpack.i.l.bf16 %v6660_v61  ;;  %v4925_v61 = vunpack.i.l.bf16 %v6650_v15 }
 0x25e   : > { %5250 = vrcp.f32 %v1250_v35  ;;  %v1307_v39 = vpop.xlane.xlu0 %1306  ;;  %v4891_v35 = vunpack.i.h.bf16 %v6636_v32 }
 0x25f   : > { %5252 = vrcp.f32 %v1307_v39  ;;  %1695 = vrot.lane.b32.xlu1 %v1386_v41, %s5726_s21  ;;  %v4963_v62 = vpack.i.bf16 %v4920_v63, %v4886_v5 }
 0x260   : > { %5254 = vrcp.f32 %v1310_v49  ;;  %v4967_v2 = vpack.i.bf16 %v4925_v61, %v4891_v35  ;;  %v4901_v61 = vunpack.i.h.bf16 %v6671_v31 }
 0x264   : > { %v5251_v1 = vpop.eup %5250  ;;  %v1256_v38 = vpop.xlane.xlu2 %1255 }
 0x265   : > { %v5253_v17 = vpop.eup %5252  ;;  %4962 = vxpose.xlu2.b32.cont [3/16] (narrow) %v4961_v6, 8  ;;  %v1374_v0 = vmul.f32 %v5251_v1, %v6219_v45  ;;  %v1313_v50 = vpop.xlane.xlu1 %1312  ;;  %v8834_v1 = vld [vmem:[#allocation46_spill] sm:$0xff] }
 0x266   : > { %v1289_v40 = vpop.xlane.xlu0 %1288  ;;  %v1393_v57 = vmul.f32 %v5253_v17, %v6216_v33  ;;  %v5255_v18 = vpop.eup %5254 }
 0x267   : > { %5256 = vrcp.f32 %v1289_v40  ;;  %1671 = vrot.lane.b32.xlu1 %v1374_v0, %s5726_s21  ;;  %v1394_v45 = vmul.f32 %v5255_v18, %v6246_v26  ;;  %v8831_v26 = vld [vmem:[#allocation50_spill] sm:$0xff]  ;;  %v4926_v0 = vunpack.i.h.bf16 %v6650_v15  ;;  %v4896_v15 = vunpack.i.h.bf16 %v6646_v30 }
 0x268   : > { %1709 = vrot.lane.b32.xlu0 %v1393_v57, %s5726_s21  ;;  %5258 = vrcp.f32 %v1292_v56  ;;  %v4895_v57 = vunpack.i.l.bf16 %v6646_v30  ;;  %v4931_v30 = vunpack.i.h.bf16 %v6680_v16 }
 0x26a   : > { %v4969_v5 = vpack.i.bf16 %v4926_v0, %v4895_v57 }
 0x26d   : > { %v5257_v36 = vpop.eup %5256  ;;  %4964 = vxpose.xlu2.b32.cont [4/16] (narrow) %v4963_v62, 8  ;;  %v1295_v49 = vpop.xlane.xlu1 %1294 }
 0x26e   : > { %v1253_v59 = vpop.xlane.xlu0 %1252  ;;  %v1387_v33 = vmul.f32 %v5257_v36, %v6265_v3  ;;  %v5259_v37 = vpop.eup %5258  ;;  %v8832_v3 = vld [vmem:[#allocation47_spill] sm:$0xff]  ;;  %v8835_v36 = vld [vmem:[#allocation49_spill] sm:$0xff] }
 0x26f   : > { %5260 = vrcp.f32 %v1253_v59  ;;  %1711 = vrot.lane.b32.xlu1 %v1394_v45, %s5726_s21  ;;  %v1388_v8 = vmul.f32 %v5259_v37, %v8831_v26  ;;  %v1319_v62 = vpop.xlane.xlu2 %1318 }
 0x270   : > { %1697 = vrot.lane.b32.xlu0 %v1387_v33, %s5726_s21  ;;  %5262 = vrcp.f32 %v1256_v38 }
 0x271   : > { %5264 = vrcp.f32 %v1313_v50  ;;  %v4930_v50 = vunpack.i.l.bf16 %v6680_v16 }
 0x273   : > { %v4971_v58 = vpack.i.bf16 %v4930_v50, %v4896_v15 }
 0x275   : > { %v5261_v20 = vpop.eup %5260  ;;  %4966 = vxpose.xlu2.b32.cont [5/16] (narrow) %v4965_v60, 8  ;;  %v1259_v63 = vpop.xlane.xlu1 %1258 }
 0x276   : > { %v1316_v54 = vpop.xlane.xlu0 %1315  ;;  %v1375_v25 = vmul.f32 %v5261_v20, %v8832_v3  ;;  %v5263_v41 = vpop.eup %5262  ;;  %v4900_v20 = vunpack.i.l.bf16 %v6671_v31  ;;  %v4905_v31 = vunpack.i.l.bf16 %v6653_v4 }
 0x277   : > { %1699 = vrot.lane.b32.xlu1 %v1388_v8, %s5726_s21  ;;  %v5265_v39 = vpop.eup %5264  ;;  %5266 = vrcp.f32 %v1316_v54  ;;  %v1376_v6 = vmul.f32 %v5263_v41, %v8833_v10  ;;  %v1301_v60 = vpop.xlane.xlu2 %1300  ;;  %v8838_v10 = vld [vmem:[#allocation53_spill] sm:$0xff] }
 0x278   : > { %1673 = vrot.lane.b32.xlu0 %v1375_v25, %s5726_s21  ;;  %5268 = vrcp.f32 %v1295_v49  ;;  %v1395_v17 = vmul.f32 %v5265_v39, %v8834_v1  ;;  %v4973_v54 = vpack.i.bf16 %v4931_v30, %v4900_v20  ;;  %v4936_v1 = vunpack.i.h.bf16 %v6669_v24 }
 0x279   : > { %v4945_v30 = vunpack.i.l.bf16 %v6682_v43 }
 0x27d   : > { %4968 = vxpose.xlu2.b32.cont [6/16] (narrow) %v4967_v2, 8  ;;  %v5267_v32 = vpop.eup %5266  ;;  %v1322_v38 = vpop.xlane.xlu1 %1321  ;;  %v8837_v2 = vld [vmem:[#allocation52_spill] sm:$0xff] }
 0x27e   : > { %v1298_v40 = vpop.xlane.xlu0 %1297  ;;  %v5269_v56 = vpop.eup %5268  ;;  %v1396_v18 = vmul.f32 %v5267_v32, %v6343_v23  ;;  %v4977_v32 = vpack.i.bf16 %v4936_v1, %v4905_v31 }
 0x27f   : > { %1675 = vrot.lane.b32.xlu1 %v1376_v6, %s5726_s21  ;;  %5270 = vrcp.f32 %v1298_v40  ;;  %v1389_v45 = vmul.f32 %v5269_v56, %v8835_v36  ;;  %v1265_v35 = vpop.xlane.xlu2 %1264 }
 0x280   : > { %1713 = vrot.lane.b32.xlu0 %v1395_v17, %s5726_s21  ;;  %5272 = vrcp.f32 %v1259_v63  ;;  %v8839_v63 = vld [vmem:[#allocation54_spill] sm:$0xff] }
 0x285   : > { %4970 = vxpose.xlu2.b32.cont [7/16] (narrow) %v4969_v5, 8  ;;  %v5271_v33 = vpop.eup %5270  ;;  %v1304_v16 = vpop.xlane.xlu1 %1303 }
 0x286   : > { %v1262_v59 = vpop.xlane.xlu0 %1261  ;;  %v5273_v21 = vpop.eup %5272  ;;  %v1390_v23 = vmul.f32 %v5271_v33, %v6386_v53  ;;  %v8836_v53 = vld [vmem:[#allocation51_spill] sm:$0xff]  ;;  %v4941_v33 = vunpack.i.h.bf16 %v6657_v44 }
 0x287   : > { %1715 = vrot.lane.b32.xlu1 %v1396_v18, %s5726_s21  ;;  %5274 = vrcp.f32 %v1262_v59  ;;  %v1377_v37 = vmul.f32 %v5273_v21, %v6351_v12  ;;  %v4935_v12 = vunpack.i.l.bf16 %v6669_v24  ;;  %v4940_v24 = vunpack.i.l.bf16 %v6657_v44  ;;  %v1328_v18 = vpop.xlane.xlu2 %1327 }
 0x288   : > { %1701 = vrot.lane.b32.xlu0 %v1389_v45, %s5726_s21  ;;  %5276 = vrcp.f32 %v1319_v62  ;;  %v4906_v62 = vunpack.i.h.bf16 %v6653_v4  ;;  %v4910_v4 = vunpack.i.l.bf16 %v6643_v55  ;;  %v4950_v44 = vunpack.i.l.bf16 %v6675_v11 }
 0x289   : > { %5278 = vrcp.f32 %v1322_v38  ;;  %v4975_v39 = vpack.i.bf16 %v4935_v12, %v4901_v61 }
 0x28a   : > { %5280 = vrcp.f32 %v1301_v60  ;;  %v4979_v50 = vpack.i.bf16 %v4940_v24, %v4906_v62  ;;  %v8844_v24 = vld [vmem:[#allocation35_spill] sm:$0xff]  ;;  %v8845_v62 = vld [vmem:[#allocation33_spill] sm:$0xff] }
 0x28b   : > { %5282 = vrcp.f32 %v1304_v16 }
 0x28c   : > { %5284 = vrcp.f32 %v1265_v35 }
 0x28d   : > { %4972 = vxpose.xlu2.b32.cont [8/16] (narrow) %v4971_v58, 8  ;;  %v5275_v26 = vpop.eup %5274  ;;  %v1268_v0 = vpop.xlane.xlu1 %1267 }
 0x28e   : > { %v5277_v8 = vpop.eup %5276  ;;  %v1378_v3 = vmul.f32 %v5275_v26, %v6425_v34  ;;  %v1325_v17 = vpop.xlane.xlu0 %1324  ;;  %5286 = vrcp.f32 %v1268_v0 }
 0x28f   : > { %1703 = vrot.lane.b32.xlu1 %v1390_v23, %s5726_s21  ;;  %v1397_v25 = vmul.f32 %v5277_v8, %v8836_v53  ;;  %v5279_v49 = vpop.eup %5278  ;;  %5288 = vrcp.f32 %v1325_v17  ;;  %v1274_v58 = vpop.xlane.xlu2 %1273  ;;  %v4983_v8 = vpack.i.bf16 %v4945_v30, %v4950_v44  ;;  %v8841_v17 = vld [vmem:[#allocation21_spill] sm:$0xff] }
 0x290   : > { %1677 = vrot.lane.b32.xlu0 %v1377_v37, %s5726_s21  ;;  %v5281_v41 = vpop.eup %5280  ;;  %v1398_v34 = vmul.f32 %v5279_v49, %v8837_v2  ;;  %5290 = vrcp.f32 %v1328_v18  ;;  %v4981_v37 = vpack.i.bf16 %v4941_v33, %v4910_v4  ;;  %v2338_v31 = vsel %vm2328_vm2, %v8841_v17, -inf }
 0x291   : > { %v1391_v6 = vmul.f32 %v5281_v41, %v8838_v10  ;;  %v5283_v40 = vpop.eup %5282  ;;  %v2353_v18 = vsel %vm2328_vm2, %v8844_v24, -inf  ;;  %v2365_v4 = vsel %vm2328_vm2, %v6128_v28, -inf }
 0x292   : > { %v5285_v57 = vpop.eup %5284  ;;  %v1392_v56 = vmul.f32 %v5283_v40, %v8839_v63  ;;  %v8842_v40 = vld [vmem:[#allocation30_spill] sm:$0xff]  ;;  %v8843_v63 = vld [vmem:[#allocation31_spill] sm:$0xff] }
 0x293   : > { %v1379_v5 = vmul.f32 %v5285_v57, %v6440_v9  ;;  %v2347_v57 = vsel %vm2328_vm2, %v8842_v40, -inf }
 0x294   : > { %v5287_v36 = vpop.eup %5286 }
 0x295   : > { %4974 = vxpose.xlu2.b32.cont [9/16] (narrow) %v4973_v54, 8  ;;  %v5289_v15 = vpop.eup %5288  ;;  %v1380_v59 = vmul.f32 %v5287_v36, %v6470_v27  ;;  %v1331_v21 = vpop.xlane.xlu1 %1330  ;;  %v4955_v54 = vunpack.i.l.bf16 %v6666_v19  ;;  %v2350_v36 = vsel %vm2328_vm2, %v8845_v62, -inf }
 0x296   : > { %v1271_v45 = vpop.xlane.xlu0 %1270  ;;  %v1399_v9 = vmul.f32 %v5289_v15, %v6462_v48  ;;  %v5291_v38 = vpop.eup %5290 }
 0x297   : > { %1679 = vrot.lane.b32.xlu1 %v1378_v3, %s5726_s21  ;;  %5292 = vrcp.f32 %v1271_v45  ;;  %v1400_v27 = vmul.f32 %v5291_v38, %v6473_v47  ;;  %v4946_v3 = vunpack.i.h.bf16 %v6682_v43  ;;  %v1337_v41 = vpop.xlane.xlu2 %1336  ;;  %v2362_v38 = vsel %vm2328_vm2, %v6100_v51, -inf }
 0x298   : > { %1717 = vrot.lane.b32.xlu0 %v1397_v25, %s5726_s21  ;;  %5294 = vrcp.f32 %v1274_v58 }
 0x299   : > { %5296 = vrcp.f32 %v1331_v21  ;;  %v4985_v12 = vpack.i.bf16 %v4946_v3, %v4955_v54  ;;  %v8853_v3 = vld [vmem:[#allocation27_spill] sm:$0xff] }
 0x29d   : > { %4976 = vxpose.xlu2.b32.cont [10/16] (narrow) %v4975_v39, 8  ;;  %v5293_v23 = vpop.eup %5292  ;;  %v1277_v20 = vpop.xlane.xlu1 %1276 }
 0x29e   : > { %v1381_v48 = vmul.f32 %v5293_v23, %v6493_v14  ;;  %v1334_v55 = vpop.xlane.xlu0 %1333  ;;  %v5295_v60 = vpop.eup %5294 }
 0x29f   : > { %1719 = vrot.lane.b32.xlu1 %v1398_v34, %s5726_s21  ;;  %v5297_v26 = vpop.eup %5296  ;;  %5298 = vrcp.f32 %v1334_v55  ;;  %v1382_v47 = vmul.f32 %v5295_v60, %v6504_v46  ;;  %v4951_v46 = vunpack.i.h.bf16 %v6675_v11  ;;  %v8850_v55 = vld [vmem:[#allocation24_spill] sm:$0xff] }
 0x2a0   : > { %1705 = vrot.lane.b32.xlu0 %v1391_v6, %s5726_s21  ;;  %5300 = vrcp.f32 %v1277_v20  ;;  %v1401_v14 = vmul.f32 %v5297_v26, %v6502_v7  ;;  %v4956_v7 = vunpack.i.h.bf16 %v6666_v19  ;;  %v8840_v6 = vld [vmem:[#allocation23_spill] sm:$0xff]  ;;  %v2377_v60 = vsel %vm2328_vm2, %v8850_v55, -inf  ;;  %v8851_v26 = vld [vmem:[#allocation18_spill] sm:$0xff] }
 0x2a1   : > { %v2341_v1 = vsel %vm2328_vm2, %v8840_v6, -inf  ;;  %5302 = vrcp.f32 %v1337_v41  ;;  %v8859_v41 = vld [vmem:[#allocation56_spill] sm:$0xff] }
 0x2a2   : > { %v4987_v49 = vpack.i.bf16 %v4951_v46, %v4956_v7  ;;  %v8855_v46 = vld [vmem:[#allocation29_spill] sm:$0xff] }
 0x2a3   : > { %v2386_v7 = vsel %vm2328_vm2, %v8855_v46, -inf }
 0x2a5   : > { %4978 = vxpose.xlu2.b32.cont [11/16] (narrow) %v4977_v32, 8  ;;  %v5299_v53 = vpop.eup %5298 }
 0x2a6   : > { %v5301_v25 = vpop.eup %5300  ;;  %v1402_v16 = vmul.f32 %v5299_v53, %v6514_v29  ;;  %v6770_v35 = vpop.xlane.xlu0 %1279  ;;  %v2380_v53 = vsel %vm2328_vm2, %v8853_v3, -inf }
 0x2a7   : > { %1707 = vrot.lane.b32.xlu1 %v1392_v56, %s5726_s21  ;;  %v1383_v61 = vmul.f32 %v5301_v25, %v6518_v52  ;;  %v6778_v52 = vpop.xlane.xlu2 %1282  ;;  %v2344_v56 = vsel %vm2328_vm2, %v8843_v63, -inf  ;;  %5304 = vrcp.f32 %v6770_v35 }
 0x2a8   : > { %1681 = vrot.lane.b32.xlu0 %v1379_v5, %s5726_s21  ;;  %v6774_v39 = vpop.xlane.xlu1 %1339  ;;  %5306 = vrcp.f32 %v6778_v52 }
 0x2a9   : > { %5308 = vrcp.f32 %v6774_v39 }
 0x2ad   : > { %4980 = vxpose.xlu2.b32.cont [12/16] (narrow) %v4979_v50, 8  ;;  %v8846_v50 = vld [vmem:[#allocation39_spill] sm:$0xff] }
 0x2af   : > { %1683 = vrot.lane.b32.xlu1 %v1380_v59, %s5726_s21  ;;  %v2359_v59 = vsel %vm2328_vm2, %v8846_v50, -inf }
 0x2b0   : > { %1721 = vrot.lane.b32.xlu0 %v1399_v9, %s5726_s21  ;;  %v8847_v9 = vld [vmem:[#allocation37_spill] sm:$0xff] }
 0x2b1   : > { %v2356_v33 = vsel %vm2328_vm2, %v8847_v9, -inf }
 0x2b5   : > { %4982 = vxpose.xlu2.b32.cont [13/16] (narrow) %v4981_v37, 8  ;;  %v8848_v37 = vld [vmem:[#allocation16_spill] sm:$0xff] }
 0x2b7   : > { %1723 = vrot.lane.b32.xlu1 %v1400_v27, %s5726_s21  ;;  %v2371_v27 = vsel %vm2328_vm2, %v8848_v37, -inf }
 0x2b8   : > { %1685 = vrot.lane.b32.xlu0 %v1381_v48, %s5726_s21  ;;  %v8849_v48 = vld [vmem:[#allocation13_spill] sm:$0xff] }
 0x2b9   : > { %v2368_v44 = vsel %vm2328_vm2, %v8849_v48, -inf }
 0x2bd   : > { %4984 = vxpose.xlu2.b32.cont [14/16] (narrow) %v4983_v8, 8  ;;  %v2374_v8 = vsel %vm2328_vm2, %v8851_v26, -inf }
 0x2bf   : > { %1687 = vrot.lane.b32.xlu1 %v1382_v47, %s5726_s21 }
 0x2c0   : > { %1725 = vrot.lane.b32.xlu0 %v1401_v14, %s5726_s21  ;;  %v8852_v14 = vld [vmem:[#allocation26_spill] sm:$0xff] }
 0x2c1   : > { %v2383_v54 = vsel %vm2328_vm2, %v8852_v14, -inf }
 0x2c5   : > { %4986 = vxpose.xlu2.b32.cont [15/16] (narrow) %v4985_v12, 8 }
 0x2c7   : > { %1727 = vrot.lane.b32.xlu1 %v1402_v16, %s5726_s21  ;;  %v8854_v16 = vld [vmem:[#allocation14_spill] sm:$0xff] }
 0x2c8   : > { %1689 = vrot.lane.b32.xlu0 %v1383_v61, %s5726_s21  ;;  %v6772_v43 = vpop.permute.xlu0 %1669  ;;  %v2389_v61 = vsel %vm2328_vm2, %v8854_v16, -inf }
 0x2cd   : > { %4988 = vxpose.xlu2.b32.end [16/16] (narrow) %v4987_v49, 8 }
 0x2d1   : > { %v6780_v11 = vpop.permute.xlu1 %1695 }
 0x2d9   : > { %v6788_v0 = vpop.permute.xlu1 %1671 }
 0x2da   : > { %v6776_v29 = vpop.permute.xlu0 %1709 }
 0x2e1   : > { %v6796_v5 = vpop.permute.xlu1 %1711 }
 0x2e2   : > { %v6782_v34 = vpop.permute.xlu0 %1697 }
 0x2e9   : > { %v6804_v15 = vpop.permute.xlu1 %1699 }
 0x2ea   : > { %v6792_v32 = vpop.permute.xlu0 %1673 }
 0x2ee   : > { %v4989_v2 = vpop.trf.xlu2 }
 0x2ef   : > { %v4993_v10 = vunpack.i.h.bf16 %v4989_v2  ;;  %v4990_v19 = vunpack.i.l.bf16 %v4989_v2 }
 0x2f1   : > { %2342 = vmax.xlane.f32.xlu1 %v2341_v1  ;;  %1633 = vmatmul.f32.vlgmr.msra.gmra.mxu2 %v4993_v10  ;;  %v6814_v58 = vpop.permute.xlu1 %1675  ;;  %v8856_v10 = vld [vmem:[#allocation17_spill] sm:$0xff] }
 0x2f2   : > { %2339 = vmax.xlane.f32.xlu0 %v2338_v31  ;;  %1613 = vmatmul.f32.vlgmr.msra.gmra.mxu1 %v4990_v19  ;;  %v6802_v45 = vpop.permute.xlu0 %1713  ;;  %v2335_v19 = vsel %vm2328_vm2, %v8856_v10, -inf  ;;  %v5303_v31 = vpop.eup %5302 }
 0x2f9   : > { %2348 = vmax.xlane.f32.xlu1 %v2347_v57  ;;  %v6824_v30 = vpop.permute.xlu1 %1715 }
 0x2fa   : > { %2345 = vmax.xlane.f32.xlu0 %v2344_v56  ;;  %v6810_v21 = vpop.permute.xlu0 %1701  ;;  %v8857_v56 = vld [vmem:[#allocation55_spill] sm:$0xff] }
 0x301   : > { %2354 = vmax.xlane.f32.xlu1 %v2353_v18  ;;  %v6832_v47 = vpop.permute.xlu1 %1703  ;;  %v1403_v18 = vmul.f32 %v5303_v31, %v8857_v56 }
 0x302   : > { %2351 = vmax.xlane.f32.xlu0 %v2350_v36  ;;  %v6818_v23 = vpop.permute.xlu0 %1677  ;;  %v5305_v36 = vpop.eup %5304 }
 0x303   : > { %v1384_v35 = vmul.f32 %v5305_v36, %v8859_v41 }
 0x309   : > { %2360 = vmax.xlane.f32.xlu1 %v2359_v59  ;;  %v6840_v12 = vpop.permute.xlu1 %1679  ;;  %v8858_v59 = vld [vmem:[#allocation38_spill] sm:$0xff] }
 0x30a   : > { %2357 = vmax.xlane.f32.xlu0 %v2356_v33  ;;  %v6828_v20 = vpop.permute.xlu0 %1717  ;;  %v2416_v33 = vsel %vm2328_vm2, %v8858_v59, -inf }
 0x311   : > { %2366 = vmax.xlane.f32.xlu1 %v2365_v4  ;;  %v6848_v2 = vpop.permute.xlu1 %1719  ;;  %v5307_v4 = vpop.eup %5306 }
 0x312   : > { %2363 = vmax.xlane.f32.xlu0 %v2362_v38  ;;  %v6838_v25 = vpop.permute.xlu0 %1705  ;;  %v1385_v52 = vmul.f32 %v5307_v4, %v6613_v13 }
 0x319   : > { %2372 = vmax.xlane.f32.xlu1 %v2371_v27  ;;  %v6856_v57 = vpop.permute.xlu1 %1707  ;;  %v5309_v27 = vpop.eup %5308 }
 0x31a   : > { %2369 = vmax.xlane.f32.xlu0 %v2368_v44  ;;  %v6846_v49 = vpop.permute.xlu0 %1681 }
 0x321   : > { %2378 = vmax.xlane.f32.xlu1 %v2377_v60  ;;  %v6868_v44 = vpop.permute.xlu1 %1683  ;;  %v8860_v60 = vld [vmem:[#allocation45_spill] sm:$0xff] }
 0x322   : > { %2375 = vmax.xlane.f32.xlu0 %v2374_v8  ;;  %v6853_v1 = vpop.permute.xlu0 %1721  ;;  %v8861_v8 = vld [vmem:[#allocation12_spill] sm:$0xff] }
 0x329   : > { %2384 = vmax.xlane.f32.xlu1 %v2383_v54  ;;  %v2425_v54 = vsub.f32 %v8861_v8, %v8860_v60  ;;  %v8868_v60 = vld [vmem:[#allocation19_spill] sm:$0xff] }
 0x32a   : > { %2381 = vmax.xlane.f32.xlu0 %v2380_v53  ;;  %v6864_v38 = vpop.permute.xlu0 %1685  ;;  %v1404_v53 = vmul.f32 %v5309_v27, %v6618_v42 }
 0x32b   : > { %v2457_v39 = vmul.f32 1.442695, %v2425_v54  ;;  %v2395_v54 = vsel %vm2328_vm2, %v8868_v60, -inf }
 0x32d   : > { %5310 = vpow2.f32 %v2457_v39 }
 0x331   : > { %2390 = vmax.xlane.f32.xlu1 %v2389_v61 }
 0x332   : > { %2387 = vmax.xlane.f32.xlu0 %v2386_v7  ;;  %v6875_v61 = vpop.permute.xlu0 %1725  ;;  %v6877_v7 = vpop.permute.xlu1 %1723 }
 0x33a   : > { %v6881_v13 = vpop.permute.xlu0 %1689  ;;  %v6885_v31 = vpop.permute.xlu1 %1687 }
 0x33e   : > { %2336 = vmax.xlane.f32.xlu2 %v2335_v19  ;;  %v6879_v19 = vpop.eup %5310 }
 0x33f   : > { %8862 = vst [vmem:[#allocation50_spill] sm:$0xff] %v6879_v19 }
 0x342   : > { %v6889_v42 = vpop.permute.xlu1 %1727 }
 0x346   : > { %1729 = vrot.lane.b32.xlu0 %v1403_v18, %s5726_s21  ;;  %2417 = vmax.xlane.f32.xlu2 %v2416_v33 }
 0x34a   : > { %1691 = vrot.lane.b32.xlu1 %v1384_v35, %s5726_s21 }
 0x34e   : > { %1693 = vrot.lane.b32.xlu0 %v1385_v52, %s5726_s21  ;;  %v8867_v52 = vld [vmem:[#allocation20_spill] sm:$0xff] }
 0x34f   : > { %v2392_v27 = vsel %vm2328_vm2, %v8867_v52, -inf }
 0x352   : > { %1731 = vrot.lane.b32.xlu1 %v1404_v53, %s5726_s21  ;;  %s8777_s21 = scalar_lea.vmem [#allocation2], %s7711_s20 }
 0x35e   : > { %2553 = vrot.lane.b32.xlu2 %v6879_v19, %s5728_s26  ;;  %v8870_v19 = vld [vmem:[#allocation22_spill] sm:$0xff] }
 0x364   : > { %v6893_v33 = vpop.xlane.xlu1 %2342 }
 0x365   : > { %v6887_v56 = vpop.xlane.xlu0 %2339  ;;  %8865 = vst [vmem:[#allocation46_spill] sm:$0xff] %v6893_v33 }
 0x366   : > { %8863 = vst [vmem:[#allocation47_spill] sm:$0xff] %v6887_v56  ;;  %v2398_v56 = vsel %vm2328_vm2, %v8870_v19, -inf }
 0x36c   : > { %v6903_v53 = vpop.xlane.xlu1 %2348 }
 0x36d   : > { %v6891_v18 = vpop.xlane.xlu0 %2345  ;;  %8869 = vst [vmem:[#allocation51_spill] sm:$0xff] %v6903_v53 }
 0x36e   : > { %8864 = vst [vmem:[#allocation48_spill] sm:$0xff] %v6891_v18 }
 0x36f   : > { %v1614_v36 = vpop.f32.mrf.mxu1 }
 0x374   : > { %v1634_v41 = vpop.f32.mrf.mxu2 }
 0x375   : > { %v6895_v35 = vpop.xlane.xlu0 %2351  ;;  %v1635_v4 = vadd.f32 %v1634_v41, %v1614_v36  ;;  %v8871_v36 = vld [vmem:[#allocation25_spill] sm:$0xff] }
 0x376   : > { %8866 = vst [vmem:[#allocation49_spill] sm:$0xff] %v6895_v35  ;;  %v2401_v41 = vsel %vm2328_vm2, %v8871_v36, -inf }
 0x377   : > { %1812 = vmatpush.msrb.mxu3 %v1635_v4 }
 0x378   : > { %2393 = vmax.xlane.f32.xlu0 %v2392_v27  ;;  %4650 = vmatmul.msk.f32.vlgmr.msrb.gmra.mxu3 %vm443_vm0, %v6772_v43  ;;  %v8872_v43 = vld [vmem:[#allocation34_spill] sm:$0xff]  ;;  %v6915_v27 = vpop.xlane.xlu1 %2354 }
 0x379   : > { %v2891_v4 = vsel %vm2809_vm4, %v8872_v43, -inf  ;;  %8873 = vst [vmem:[#allocation52_spill] sm:$0xff] %v6915_v27  ;;  %v2410_v53 = vsel %vm2328_vm2, %v8872_v43, -inf }
 0x37c   : > { %2396 = vmax.xlane.f32.xlu1 %v2395_v54  ;;  %v8874_v54 = vld [vmem:[#allocation28_spill] sm:$0xff] }
 0x37d   : > { %v6905_v39 = vpop.xlane.xlu0 %2357  ;;  %v2404_v33 = vsel %vm2328_vm2, %v8874_v54, -inf }
 0x380   : > { %2399 = vmax.xlane.f32.xlu0 %v2398_v56  ;;  %4651 = vmatmul.msk.f32.gmra.mxu3 %vm443_vm0, %v6788_v0  ;;  %v8875_v0 = vld [vmem:[#allocation32_spill] sm:$0xff] }
 0x381   : > { %v2407_v18 = vsel %vm2328_vm2, %v8875_v0, -inf }
 0x384   : > { %2402 = vmax.xlane.f32.xlu1 %v2401_v41  ;;  %v2834_v41 = vsel %vm2809_vm4, %v8844_v24, -inf  ;;  %v8877_v24 = vld [vmem:[#allocation40_spill] sm:$0xff] }
 0x385   : > { %v6921_v56 = vpop.xlane.xlu0 %2363  ;;  %v2419_v27 = vsel %vm2328_vm2, %v8877_v24, -inf }
 0x387   : > { %2892 = vmax.xlane.f32.xlu2 %v2891_v4  ;;  %v8876_v4 = vld [vmem:[#allocation36_spill] sm:$0xff] }
 0x388   : > { %2405 = vmax.xlane.f32.xlu0 %v2404_v33  ;;  %4652 = vmatmul.msk.f32.gmra.mxu3 %vm443_vm0, %v6792_v32  ;;  %v6931_v33 = vpop.xlane.xlu1 %2360  ;;  %v2413_v35 = vsel %vm2328_vm2, %v8876_v4, -inf }
 0x38c   : > { %2408 = vmax.xlane.f32.xlu1 %v2407_v18  ;;  %v2831_v18 = vsel %vm2809_vm4, %v8845_v62, -inf  ;;  %v2897_v62 = vsel %vm2809_vm4, %v8858_v59, -inf }
 0x38d   : > { %v6933_v32 = vpop.xlane.xlu0 %2369 }
 0x38f   : > { %2835 = vmax.xlane.f32.xlu2 %v2834_v41 }
 0x390   : > { %2411 = vmax.xlane.f32.xlu0 %v2410_v53  ;;  %4653 = vmatmul.msk.f32.gmra.mxu3 %vm443_vm0, %v6814_v58  ;;  %v6943_v58 = vpop.xlane.xlu1 %2366  ;;  %v2422_v53 = vsel %vm2328_vm2, %v6125_v22, -inf }
 0x394   : > { %2414 = vmax.xlane.f32.xlu1 %v2413_v35  ;;  %v2903_v35 = vsel %vm2809_vm4, %v6125_v22, -inf }
 0x395   : > { %v2376_v41 = vpop.xlane.xlu0 %2375 }
 0x396   : > { %v2440_v43 = vsub.f32 %v8851_v26, %v2376_v41  ;;  %v2855_v41 = vsel %vm2809_vm4, %v8851_v26, -inf }
 0x397   : > { %2832 = vmax.xlane.f32.xlu2 %v2831_v18 }
 0x398   : > { %2420 = vmax.xlane.f32.xlu0 %v2419_v27  ;;  %4654 = vmatmul.msk.f32.gmra.mxu3 %vm443_vm0, %v6818_v23  ;;  %v2900_v27 = vsel %vm2809_vm4, %v8877_v24, -inf  ;;  %v2487_v23 = vmul.f32 1.442695, %v2440_v43  ;;  %v2373_v18 = vpop.xlane.xlu1 %2372  ;;  %v2894_v43 = vsel %vm2809_vm4, %v8876_v4, -inf }
 0x39a   : > { %5312 = vpow2.f32 %v2487_v23  ;;  %v2849_v23 = vsel %vm2809_vm4, %v8849_v48, -inf }
 0x39c   : > { %2423 = vmax.xlane.f32.xlu1 %v2422_v53  ;;  %v2439_v53 = vsub.f32 %v8848_v37, %v2373_v18 }
 0x39d   : > { %v2382_v18 = vpop.xlane.xlu0 %2381 }
 0x3a0   : > { %2904 = vmax.xlane.f32.xlu0 %v2903_v35  ;;  %4655 = vmatmul.msk.f32.gmra.mxu3 %vm443_vm0, %v6840_v12  ;;  %v2485_v12 = vmul.f32 1.442695, %v2439_v53  ;;  %v6961_v35 = vpop.eup %5312 }
 0x3a1   : > { %8878 = vst [vmem:[#allocation53_spill] sm:$0xff] %v6961_v35 }
 0x3a2   : > { %5314 = vpow2.f32 %v2485_v12  ;;  %v2885_v12 = vsel %vm2809_vm4, %v8874_v54, -inf }
 0x3a4   : > { %2901 = vmax.xlane.f32.xlu1 %v2900_v27 }
 0x3a8   : > { %2898 = vmax.xlane.f32.xlu0 %v2897_v62  ;;  %4656 = vmatmul.msk.f32.gmra.mxu3 %vm443_vm0, %v6846_v49  ;;  %v2379_v62 = vpop.xlane.xlu1 %2378  ;;  %v2852_v49 = vsel %vm2809_vm4, %v8848_v37, -inf  ;;  %v6971_v27 = vpop.eup %5314 }
 0x3a9   : > { %8879 = vst [vmem:[#allocation54_spill] sm:$0xff] %v6971_v27 }
 0x3ac   : > { %2856 = vmax.xlane.f32.xlu1 %v2855_v41  ;;  %v2846_v41 = vsel %vm2809_vm4, %v6128_v28, -inf }
 0x3af   : > { %2583 = vrot.lane.b32.xlu2 %v6961_v35, %s5728_s26 }
 0x3b0   : > { %2895 = vmax.xlane.f32.xlu0 %v2894_v43  ;;  %4657 = vmatmul.msk.f32.gmra.mxu3 %vm443_vm0, %v6868_v44  ;;  %v2888_v44 = vsel %vm2809_vm4, %v8875_v0, -inf  ;;  %v6981_v53 = vpop.xlane.xlu1 %2384  ;;  %v6989_v43 = vpop.xlane.xlu0 %2387 }
 0x3b4   : > { %2853 = vmax.xlane.f32.xlu1 %v2852_v49  ;;  %v2843_v49 = vsel %vm2809_vm4, %v6100_v51, -inf }
 0x3b7   : > { %2581 = vrot.lane.b32.xlu2 %v6971_v27, %s5728_s26 }
 0x3b8   : > { %2850 = vmax.xlane.f32.xlu0 %v2849_v23  ;;  %4658 = vmatmul.msk.f32.gmra.mxu3 %vm443_vm0, %v6864_v38  ;;  %v6991_v38 = vpop.xlane.xlu1 %2390  ;;  %v2882_v23 = vsel %vm2809_vm4, %v8871_v36, -inf }
 0x3bc   : > { %2889 = vmax.xlane.f32.xlu1 %v2888_v44 }
 0x3c0   : > { %2847 = vmax.xlane.f32.xlu0 %v2846_v41  ;;  %4659 = vmatmul.msk.f32.gmra.mxu3 %vm443_vm0, %v6885_v31  ;;  %v6999_v31 = vpop.permute.xlu0 %1729  ;;  %v1692_v44 = vpop.permute.xlu1 %1691  ;;  %v2840_v41 = vsel %vm2809_vm4, %v8846_v50, -inf }
 0x3c4   : > { %2886 = vmax.xlane.f32.xlu1 %v2885_v12  ;;  %v2879_v12 = vsel %vm2809_vm4, %v8870_v19, -inf }
 0x3c8   : > { %2844 = vmax.xlane.f32.xlu0 %v2843_v49  ;;  %4660 = vmatmul.msk.f32.gmra.mxu3 %vm443_vm0, %v6881_v13  ;;  %v1694_v49 = vpop.permute.xlu0 %1693  ;;  %v2837_v13 = vsel %vm2809_vm4, %v8847_v9, -inf }
 0x3cc   : > { %2883 = vmax.xlane.f32.xlu1 %v2882_v23  ;;  %v2876_v23 = vsel %vm2809_vm4, %v8868_v60, -inf }
 0x3d0   : > { %2841 = vmax.xlane.f32.xlu0 %v2840_v41  ;;  %4661 = vmatmul.msk.f32.gmra.mxu3 %vm443_vm0, %v1692_v44  ;;  %v654_v41 = vld [vmem:[%s8620_s3 + $0x8] sm:$0xff]  ;;  %v2873_v44 = vsel %vm2809_vm4, %v8867_v52, -inf }
 0x3d1   : > { %2024 = vmatpush.msra.mxu1 %v654_v41  ;;  %4039 = vmatpush.msrb.mxu0 %v654_v41  ;;  %v2822_v41 = vsel %vm2809_vm4, %v8840_v6, -inf }
 0x3d4   : > { %2880 = vmax.xlane.f32.xlu1 %v2879_v12  ;;  %v2825_v12 = vsel %vm2809_vm4, %v8843_v63, -inf }
 0x3d8   : > { %2838 = vmax.xlane.f32.xlu0 %v2837_v13  ;;  %4662 = vmatmul.msk.f32.gmra.mxu3 %vm443_vm0, %v1694_v49  ;;  %v653_v49 = vld [vmem:[%s8620_s3] sm:$0xff]  ;;  %v2441_v13 = vsub.f32 %v8850_v55, %v2379_v62 }
 0x3d9   : > { %2025 = vmatpush.msra.mxu1 %v653_v49  ;;  %4040 = vmatpush.msrb.mxu0 %v653_v49 }
 0x3dc   : > { %2877 = vmax.xlane.f32.xlu1 %v2876_v23  ;;  %v2870_v23 = vsel %vm2809_vm4, %v8854_v16, -inf }
 0x3e0   : > { %2874 = vmax.xlane.f32.xlu0 %v2873_v44  ;;  %2826 = vmax.xlane.f32.xlu2 %v2825_v12  ;;  %v2489_v44 = vmul.f32 1.442695, %v2441_v13  ;;  %v2442_v12 = vsub.f32 %v8853_v3, %v2382_v18 }
 0x3e1   : > { %4663 = vmatmul.msk.f32.gmra.mxu3 %vm443_vm0, %v6780_v11  ;;  %v2861_v11 = vsel %vm2809_vm4, %v8853_v3, -inf }
 0x3e2   : > { %5316 = vpow2.f32 %v2489_v44  ;;  %v2491_v62 = vmul.f32 1.442695, %v2442_v12  ;;  %v2434_v12 = vsub.f32 %v8847_v9, %v6905_v39  ;;  %v7070_v39 = vpop.permute.xlu1 %1731 }
 0x3e4   : > { %5318 = vpow2.f32 %v2491_v62 }
 0x3e8   : > { %2871 = vmax.xlane.f32.xlu0 %v2870_v23  ;;  %2823 = vmax.xlane.f32.xlu2 %v2822_v41  ;;  %v7035_v49 = vpop.eup %5316 }
 0x3e9   : > { %4664 = vmatmul.msk.f32.gmra.mxu3 %vm443_vm0, %v6782_v34  ;;  %8880 = vst [vmem:[#allocation55_spill] sm:$0xff] %v7035_v49  ;;  %v2819_v34 = vsel %vm2809_vm4, %v8841_v17, -inf }
 0x3ea   : > { %v7043_v18 = vpop.eup %5318 }
 0x3eb   : > { %8881 = vst [vmem:[#allocation56_spill] sm:$0xff] %v7043_v18 }
 0x3f0   : > { %2862 = vmax.xlane.f32.xlu2 %v2861_v11  ;;  %v2475_v11 = vmul.f32 1.442695, %v2434_v12  ;;  %v2437_v12 = vsub.f32 %v6128_v28, %v6943_v58 }
 0x3f1   : > { %4665 = vmatmul.msk.f32.gmra.mxu3 %vm443_vm0, %v6804_v15  ;;  %v2816_v15 = vsel %vm2809_vm4, %v8856_v10, -inf }
 0x3f5   : > { %2585 = vrot.lane.b32.xlu1 %v7035_v49, %s5728_s26 }
 0x3f8   : > { %2820 = vmax.xlane.f32.xlu2 %v2819_v34 }
 0x3f9   : > { %4666 = vmatmul.msk.f32.gmra.mxu3 %vm443_vm0, %v6810_v21  ;;  %v2435_v21 = vsub.f32 %v8846_v50, %v6931_v33 }
 0x3fb   : > { %v1814_v13 = vpop.f32.mrf.mxu3  ;;  %v2477_v44 = vmul.f32 1.442695, %v2435_v21 }
 0x3fc   : > { %2587 = vrot.lane.b32.xlu0 %v7043_v18, %s5728_s26  ;;  %4682 = vmatmul.msk.f32.vlgmr.msra.gmra.mxu1 %vm1913_vm5, %v1814_v13  ;;  %v7083_v13 = vpop.xlane.xlu1 %2396 }
 0x3fd   : > { %5320 = vpow2.f32 %v2477_v44  ;;  %v2443_v44 = vsub.f32 %v8852_v14, %v6981_v53 }
 0x3fe   : > { %5322 = vpow2.f32 %v2475_v11 }
 0x400   : > { %2817 = vmax.xlane.f32.xlu2 %v2816_v15  ;;  %v2864_v15 = vsel %vm2809_vm4, %v8852_v14, -inf }
 0x401   : > { %4667 = vmatmul.msk.f32.gmra.mxu3 %vm443_vm0, %v6832_v47 }
 0x403   : > { %v1817_v23 = vpop.f32.mrf.mxu3  ;;  %v7063_v62 = vpop.eup %5320 }
 0x404   : > { %4683 = vmatmul.msk.f32.gmra.mxu1 %vm1913_vm5, %v1817_v23  ;;  %8882 = vst [vmem:[#allocation45_spill] sm:$0xff] %v7063_v62  ;;  %v7074_v33 = vpop.eup %5322  ;;  %v2438_v23 = vsub.f32 %v8849_v48, %v6933_v32  ;;  %v2493_v32 = vmul.f32 1.442695, %v2443_v44 }
 0x405   : > { %8883 = vst [vmem:[#allocation57_spill] sm:$0xff] %v7074_v33 }
 0x406   : > { %v2483_v21 = vmul.f32 1.442695, %v2438_v23  ;;  %v2394_v23 = vpop.xlane.xlu0 %2393 }
 0x408   : > { %5324 = vpow2.f32 %v2483_v21 }
 0x409   : > { %4668 = vmatmul.msk.f32.gmra.mxu3 %vm443_vm0, %v6838_v25  ;;  %5326 = vpow2.f32 %v2493_v32 }
 0x40b   : > { %v1820_v41 = vpop.f32.mrf.mxu3 }
 0x40c   : > { %4684 = vmatmul.msk.f32.gmra.mxu1 %vm1913_vm5, %v1820_v41  ;;  %v7092_v41 = vpop.xlane.xlu1 %2402 }
 0x40e   : > { %v7101_v11 = vpop.eup %5324  ;;  %v2400_v32 = vpop.xlane.xlu0 %2399 }
 0x40f   : > { %8884 = vst [vmem:[#allocation58_spill] sm:$0xff] %v7101_v11 }
 0x411   : > { %4669 = vmatmul.msk.f32.gmra.mxu3 %vm443_vm0, %v6856_v57  ;;  %v2828_v57 = vsel %vm2809_vm4, %v8842_v40, -inf }
 0x413   : > { %v1823_v47 = vpop.f32.mrf.mxu3 }
 0x414   : > { %4685 = vmatmul.msk.f32.gmra.mxu1 %vm1913_vm5, %v1823_v47  ;;  %v2481_v47 = vmul.f32 1.442695, %v2437_v12  ;;  %v2409_v53 = vpop.xlane.xlu1 %2408 }
 0x416   : > { %5328 = vpow2.f32 %v2481_v47 }
 0x418   : > { %2573 = vrot.lane.b32.xlu2 %v7063_v62, %s5728_s26 }
 0x419   : > { %4670 = vmatmul.msk.f32.gmra.mxu3 %vm443_vm0, %v6776_v29  ;;  %v2867_v29 = vsel %vm2809_vm4, %v8855_v46, -inf }
 0x41b   : > { %v1826_v25 = vpop.f32.mrf.mxu3 }
 0x41c   : > { %4686 = vmatmul.msk.f32.gmra.mxu1 %vm1913_vm5, %v1826_v25  ;;  %v2444_v25 = vsub.f32 %v8855_v46, %v6989_v43  ;;  %v2436_v43 = vsub.f32 %v6100_v51, %v6921_v56  ;;  %v2810_v56 = vsel %vm2809_vm4, %v8861_v8, -inf }
 0x41e   : > { %v2495_v58 = vmul.f32 1.442695, %v2444_v25 }
 0x41f   : > { %2829 = vmax.xlane.f32.xlu1 %v2828_v57  ;;  %v7110_v57 = vpop.eup %5326 }
 0x420   : > { %2571 = vrot.lane.b32.xlu2 %v7074_v33, %s5728_s26  ;;  %5330 = vpow2.f32 %v2495_v58  ;;  %v2451_v58 = vsub.f32 %v8875_v0, %v2409_v53 }
 0x421   : > { %4671 = vmatmul.msk.f32.gmra.mxu3 %vm443_vm0, %v6796_v5 }
 0x423   : > { %v1829_v34 = vpop.f32.mrf.mxu3 }
 0x424   : > { %4687 = vmatmul.msk.f32.gmra.mxu1 %vm1913_vm5, %v1829_v34  ;;  %v7114_v34 = vpop.eup %5328 }
 0x425   : > { %8885 = vst [vmem:[#allocation59_spill] sm:$0xff] %v7114_v34 }
 0x426   : > { %2868 = vmax.xlane.f32.xlu0 %v2867_v29  ;;  %v2415_v29 = vpop.xlane.xlu1 %2414 }
 0x427   : > { %2865 = vmax.xlane.f32.xlu1 %v2864_v15  ;;  %v2479_v15 = vmul.f32 1.442695, %v2436_v43 }
 0x429   : > { %4672 = vmatmul.msk.f32.gmra.mxu3 %vm443_vm0, %v6802_v45  ;;  %5332 = vpow2.f32 %v2479_v15  ;;  %v7154_v15 = vpop.xlane.xlu0 %2405 }
 0x42b   : > { %v1832_v5 = vpop.f32.mrf.mxu3 }
 0x42c   : > { %4688 = vmatmul.msk.f32.gmra.mxu1 %vm1913_vm5, %v1832_v5  ;;  %v7123_v5 = vpop.eup %5330 }
 0x42e   : > { %v7134_v12 = vpop.xlane.xlu1 %2423 }
 0x431   : > { %4673 = vmatmul.msk.f32.gmra.mxu3 %vm443_vm0, %v6824_v30 }
 0x433   : > { %v1835_v45 = vpop.f32.mrf.mxu3 }
 0x434   : > { %4689 = vmatmul.msk.f32.gmra.mxu1 %vm1913_vm5, %v1835_v45  ;;  %v7136_v45 = vpop.eup %5332 }
 0x435   : > { %8886 = vst [vmem:[#allocation60_spill] sm:$0xff] %v7136_v45 }
 0x439   : > { %4674 = vmatmul.msk.f32.gmra.mxu3 %vm443_vm0, %v6828_v20 }
 0x43a   : > { %2579 = vrot.lane.b32.xlu0 %v7101_v11, %s5728_s26 }
 0x43b   : > { %v1838_v30 = vpop.f32.mrf.mxu3 }
 0x43c   : > { %4690 = vmatmul.msk.f32.gmra.mxu1 %vm1913_vm5, %v1838_v30  ;;  %v2902_v30 = vpop.xlane.xlu1 %2901 }
 0x440   : > { %2589 = vrot.lane.b32.xlu1 %v7110_v57, %s5728_s26 }
 0x441   : > { %4675 = vmatmul.msk.f32.gmra.mxu3 %vm443_vm0, %v6848_v2  ;;  %v2445_v2 = vsub.f32 %v8854_v16, %v6991_v38  ;;  %v2448_v38 = vsub.f32 %v8870_v19, %v2400_v32  ;;  %v2858_v32 = vsel %vm2809_vm4, %v8850_v55, -inf }
 0x442   : > { %2577 = vrot.lane.b32.xlu0 %v7114_v34, %s5728_s26 }
 0x443   : > { %v1841_v20 = vpop.f32.mrf.mxu3  ;;  %v2497_v44 = vmul.f32 1.442695, %v2445_v2  ;;  %v2503_v47 = vmul.f32 1.442695, %v2448_v38 }
 0x444   : > { %4691 = vmatmul.msk.f32.gmra.mxu1 %vm1913_vm5, %v1841_v20 }
 0x445   : > { %5334 = vpow2.f32 %v2497_v44  ;;  %v2453_v44 = vsub.f32 %v8876_v4, %v2415_v29 }
 0x446   : > { %5336 = vpow2.f32 %v2503_v47 }
 0x447   : > { %v2513_v47 = vmul.f32 1.442695, %v2453_v44  ;;  %v8893_v44 = vld [vmem:[#allocation35_spill] sm:$0xff] }
 0x448   : > { %2591 = vrot.lane.b32.xlu1 %v7123_v5, %s5728_s26 }
 0x449   : > { %4676 = vmatmul.msk.f32.gmra.mxu3 %vm443_vm0, %v6853_v1  ;;  %2811 = vmax.xlane.f32.xlu2 %v2810_v56  ;;  %v7161_v56 = vpop.xlane.xlu1 %2856 }
 0x44b   : > { %v1844_v21 = vpop.f32.mrf.mxu3  ;;  %v7144_v25 = vpop.eup %5334 }
 0x44c   : > { %4692 = vmatmul.msk.f32.gmra.mxu1 %vm1913_vm5, %v1844_v21  ;;  %8887 = vst [vmem:[#allocation61_spill] sm:$0xff] %v7144_v25  ;;  %v7152_v20 = vpop.eup %5336 }
 0x44d   : > { %8888 = vst [vmem:[#allocation62_spill] sm:$0xff] %v7152_v20 }
 0x450   : > { %2575 = vrot.lane.b32.xlu1 %v7136_v45, %s5728_s26 }
 0x451   : > { %4677 = vmatmul.msk.f32.gmra.mxu3 %vm443_vm0, %v6877_v7  ;;  %v2509_v7 = vmul.f32 1.442695, %v2451_v58  ;;  %v2854_v38 = vpop.xlane.xlu1 %2853 }
 0x452   : > { %v2920_v29 = vsub.f32 %v8848_v37, %v2854_v38 }
 0x453   : > { %v1847_v1 = vpop.f32.mrf.mxu3  ;;  %5338 = vpow2.f32 %v2509_v7 }
 0x454   : > { %4693 = vmatmul.msk.f32.gmra.mxu1 %vm1913_vm5, %v1847_v1 }
 0x458   : > { %2593 = vrot.lane.b32.xlu1 %v7144_v25, %s5728_s26 }
 0x459   : > { %4678 = vmatmul.msk.f32.gmra.mxu3 %vm443_vm0, %v6875_v61  ;;  %v2936_v61 = vsub.f32 %v8877_v24, %v2902_v30  ;;  %v7164_v21 = vpop.eup %5338 }
 0x45a   : > { %8889 = vst [vmem:[#allocation63_spill] sm:$0xff] %v7164_v21 }
 0x45b   : > { %v1850_v43 = vpop.f32.mrf.mxu3  ;;  %v2998_v2 = vmul.f32 1.442695, %v2936_v61  ;;  %v2966_v61 = vmul.f32 1.442695, %v2920_v29 }
 0x45c   : > { %4694 = vmatmul.msk.f32.gmra.mxu1 %vm1913_vm5, %v1850_v43 }
 0x45d   : > { %5340 = vpow2.f32 %v2998_v2  ;;  %v8892_v2 = vld [vmem:[#allocation52_spill] sm:$0xff] }
 0x45e   : > { %5342 = vpow2.f32 %v2513_v47 }
 0x461   : > { %4679 = vmatmul.msk.f32.gmra.mxu3 %vm443_vm0, %v6889_v42  ;;  %2599 = vrot.lane.b32.xlu2 %v7152_v20, %s5728_s26  ;;  %v7170_v42 = vpop.xlane.xlu0 %2411  ;;  %v8898_v20 = vld [vmem:[#allocation15_spill] sm:$0xff] }
 0x462   : > { %v2813_v45 = vsel %vm2809_vm4, %v8898_v20, -inf }
 0x463   : > { %v7176_v30 = vpop.eup %5340 }
 0x464   : > { %v1853_v53 = vpop.f32.mrf.mxu3  ;;  %8890 = vst [vmem:[#allocation64_spill] sm:$0xff] %v7176_v30 }
 0x465   : > { %4695 = vmatmul.msk.f32.gmra.mxu1 %vm1913_vm5, %v1853_v53  ;;  %v7187_v53 = vpop.xlane.xlu1 %2889 }
 0x469   : > { %4680 = vmatmul.msk.f32.gmra.mxu3 %vm443_vm0, %v6999_v31  ;;  %2605 = vrot.lane.b32.xlu2 %v7164_v21, %s5728_s26  ;;  %v2446_v31 = vsub.f32 %v8867_v52, %v2394_v23  ;;  %v7184_v58 = vpop.xlane.xlu0 %2420  ;;  %v7194_v23 = vpop.eup %5342 }
 0x46a   : > { %8891 = vst [vmem:[#allocation65_spill] sm:$0xff] %v7194_v23 }
 0x46b   : > { %v2499_v7 = vmul.f32 1.442695, %v2446_v31 }
 0x46c   : > { %2859 = vmax.xlane.f32.xlu0 %v2858_v32  ;;  %v1856_v1 = vpop.f32.mrf.mxu3  ;;  %v2433_v32 = vsub.f32 %v8893_v44, %v8892_v2 }
 0x46d   : > { %4696 = vmatmul.msk.f32.gmra.mxu1 %vm1913_vm5, %v1856_v1  ;;  %5344 = vpow2.f32 %v2499_v7  ;;  %v7214_v7 = vpop.xlane.xlu2 %2336  ;;  %v7218_v37 = vpop.xlane.xlu1 %2886 }
 0x46e   : > { %5346 = vpow2.f32 %v2966_v61  ;;  %v2473_v31 = vmul.f32 1.442695, %v2433_v32  ;;  %v8896_v61 = vld [vmem:[#allocation49_spill] sm:$0xff] }
 0x470   : > { %5348 = vpow2.f32 %v2473_v31 }
 0x471   : > { %4681 = vmatmul.msk.f32.gmra.mxu3 %vm443_vm0, %v7070_v39  ;;  %3094 = vrot.lane.b32.xlu2 %v7176_v30, %s5729_s12  ;;  %v7192_v39 = vld [vmem:[%s8621_s4] ss:$0 sm:$0xff]  ;;  %v7210_v29 = vpop.xlane.xlu0 %2904 }
 0x474   : > { %v1859_v43 = vpop.f32.mrf.mxu3 }
 0x475   : > { %4697 = vmatmul.msk.f32.gmra.mxu1 %vm1913_vm5, %v1859_v43  ;;  %v7212_v43 = vpop.eup %5344 }
 0x476   : > { %8894 = vst [vmem:[#allocation52_spill] sm:$0xff] %v7212_v43  ;;  %v7216_v2 = vpop.eup %5346 }
 0x477   : > { %8895 = vst [vmem:[#allocation66_spill] sm:$0xff] %v7216_v2  ;;  %v7236_v30 = vpop.eup %5348 }
 0x478   : > { %8899 = vst [vmem:[#allocation49_spill] sm:$0xff] %v7236_v30 }
 0x479   : > { %2609 = vrot.lane.b32.xlu2 %v7194_v23, %s5728_s26  ;;  %v2027_v38 = vpop.f32.mrf.mxu1 }
 0x47a   : > { %v2028_v1 = vadd.f32 %v7192_v39, %v2027_v38  ;;  %v8897_v38 = vld [vmem:[#allocation33_spill] sm:$0xff] }
 0x47b   : > { %v2432_v32 = vsub.f32 %v8897_v38, %v8896_v61 }
 0x47c   : > { %2123 = vst.msk [vmem:[%s7204_s29] sm:$0xff] %vm443_vm0, %v2028_v1  ;;  %v1862_v47 = vpop.f32.mrf.mxu3  ;;  %v2226_v25 = vmul.f32 %v2028_v1, %v2028_v1  ;;  %v2155_v23 = vsel %vm443_vm0, %v2028_v1, 0.0  ;;  %v8900_v1 = vld [vmem:[#allocation51_spill] sm:$0xff] }
 0x47d   : > { %4698 = vmatmul.msk.f32.gmra.mxu1 %vm1913_vm5, %v1862_v47  ;;  %v2471_v61 = vmul.f32 1.442695, %v2432_v32  ;;  %v7244_v32 = vpop.xlane.xlu2 %2417 }
 0x47f   : > { %5350 = vpow2.f32 %v2471_v61 }
 0x480   : > { %2595 = vrot.lane.b32.xlu0 %v7212_v43, %s5728_s26 }
 0x481   : > { %3062 = vrot.lane.b32.xlu2 %v7216_v2, %s5729_s12  ;;  %v2030_v47 = vpop.f32.mrf.mxu1  ;;  %v2258_v2 = vsel %vm443_vm0, %v2226_v25, 0.0 }
 0x482   : > { %v2031_v34 = vadd.f32 %v7192_v39, %v2030_v47  ;;  %2814 = vmax.xlane.f32.xlu1 %v2813_v45  ;;  %v7238_v47 = vpop.xlane.xlu0 %2898 }
 0x484   : > { %2124 = vst.msk [vmem:[%s7204_s29 + $0x8] sm:$0xff] %vm443_vm0, %v2031_v34  ;;  %v2156_v31 = vsel %vm443_vm0, %v2031_v34, 0.0  ;;  %v2227_v43 = vmul.f32 %v2031_v34, %v2031_v34  ;;  %v1865_v33 = vpop.f32.mrf.mxu3  ;;  %v2431_v34 = vsub.f32 %v8842_v40, %v8900_v1 }
 0x485   : > { %v2157_v21 = vadd.f32 %v2156_v31, %v2155_v23  ;;  %4699 = vmatmul.msk.f32.gmra.mxu1 %vm1913_vm5, %v1865_v33  ;;  %v7246_v33 = vpop.xlane.xlu1 %2883  ;;  %v7256_v1 = vpop.eup %5350 }
 0x486   : > { %v2259_v62 = vsel %vm443_vm0, %v2227_v43, 0.0  ;;  %v2447_v43 = vsub.f32 %v8868_v60, %v7083_v13  ;;  %8901 = vst [vmem:[#allocation51_spill] sm:$0xff] %v7256_v1  ;;  %v8902_v13 = vld [vmem:[#allocation48_spill] sm:$0xff] }
 0x487   : > { %v2260_v45 = vadd.f32 %v2259_v62, %v2258_v2  ;;  %v2430_v11 = vsub.f32 %v8843_v63, %v8902_v13 }
 0x488   : > { %2569 = vrot.lane.b32.xlu0 %v7236_v30, %s5728_s26  ;;  %v2469_v30 = vmul.f32 1.442695, %v2431_v34  ;;  %v7265_v34 = vpop.permute.xlu2 %2553 }
 0x489   : > { %v2033_v23 = vpop.f32.mrf.mxu1  ;;  %8903 = vst [vmem:[#allocation48_spill] sm:$0xff] %v7265_v34 }
 0x48a   : > { %v2034_v25 = vadd.f32 %v7192_v39, %v2033_v23  ;;  %v2501_v23 = vmul.f32 1.442695, %v2447_v43  ;;  %5352 = vpow2.f32 %v2469_v30  ;;  %v7262_v49 = vpop.xlane.xlu0 %2895 }
 0x48c   : > { %2125 = vst.msk [vmem:[%s7204_s29 + $0x10] sm:$0xff] %vm443_vm0, %v2034_v25  ;;  %v2158_v62 = vsel %vm443_vm0, %v2034_v25, 0.0  ;;  %v2228_v2 = vmul.f32 %v2034_v25, %v2034_v25  ;;  %v1868_v31 = vpop.f32.mrf.mxu3  ;;  %5354 = vpow2.f32 %v2501_v23 }
 0x48d   : > { %v2159_v27 = vadd.f32 %v2158_v62, %v2157_v21  ;;  %4700 = vmatmul.msk.f32.gmra.mxu1 %vm1913_vm5, %v1868_v31  ;;  %v2449_v62 = vsub.f32 %v8871_v36, %v7092_v41  ;;  %v2467_v31 = vmul.f32 1.442695, %v2430_v11  ;;  %v8905_v41 = vld [vmem:[#allocation46_spill] sm:$0xff] }
 0x48e   : > { %v2261_v61 = vsel %vm443_vm0, %v2228_v2, 0.0  ;;  %v2429_v34 = vsub.f32 %v8840_v6, %v8905_v41 }
 0x48f   : > { %v2262_v35 = vadd.f32 %v2261_v61, %v2260_v45  ;;  %v7269_v45 = vpop.xlane.xlu1 %2880  ;;  %5356 = vpow2.f32 %v2467_v31 }
 0x490   : > { %2567 = vrot.lane.b32.xlu0 %v7256_v1, %s5728_s26  ;;  %v2505_v1 = vmul.f32 1.442695, %v2449_v62  ;;  %v7285_v11 = vpop.xlane.xlu2 %2892 }
 0x491   : > { %v2036_v25 = vpop.f32.mrf.mxu1 }
 0x492   : > { %v2037_v21 = vadd.f32 %v7192_v39, %v2036_v25  ;;  %v7276_v25 = vpop.eup %5352  ;;  %5358 = vpow2.f32 %v2505_v1  ;;  %v7291_v62 = vpop.xlane.xlu0 %2850 }
 0x493   : > { %8904 = vst [vmem:[#allocation67_spill] sm:$0xff] %v7276_v25  ;;  %v7282_v18 = vpop.eup %5354 }
 0x494   : > { %2126 = vst.msk [vmem:[%s7204_s29 + $0x18] sm:$0xff] %vm443_vm0, %v2037_v21  ;;  %v2160_v30 = vsel %vm443_vm0, %v2037_v21, 0.0  ;;  %v2229_v43 = vmul.f32 %v2037_v21, %v2037_v21  ;;  %v1871_v2 = vpop.f32.mrf.mxu3 }
 0x495   : > { %v2161_v61 = vadd.f32 %v2160_v30, %v2159_v27  ;;  %4701 = vmatmul.msk.f32.gmra.mxu1 %vm1913_vm5, %v1871_v2  ;;  %8906 = vst [vmem:[#allocation46_spill] sm:$0xff] %v7282_v18  ;;  %v8907_v30 = vld [vmem:[#allocation47_spill] sm:$0xff] }
 0x496   : > { %v2263_v13 = vsel %vm443_vm0, %v2229_v43, 0.0 }
 0x497   : > { %v2264_v23 = vadd.f32 %v2263_v13, %v2262_v35  ;;  %v2428_v35 = vsub.f32 %v8841_v17, %v8907_v30  ;;  %v2465_v13 = vmul.f32 1.442695, %v2429_v34 }
 0x498   : > { %2565 = vrot.lane.b32.xlu0 %v7276_v25, %s5728_s26 }
 0x499   : > { %v2039_v21 = vpop.f32.mrf.mxu1  ;;  %v2463_v30 = vmul.f32 1.442695, %v2428_v35  ;;  %5360 = vpow2.f32 %v2465_v13 }
 0x49a   : > { %v2040_v27 = vadd.f32 %v7192_v39, %v2039_v21  ;;  %v7297_v21 = vpop.xlane.xlu1 %2877 }
 0x49b   : > { %2597 = vrot.lane.b32.xlu1 %v7282_v18, %s5728_s26  ;;  %v7300_v18 = vpop.eup %5356  ;;  %5362 = vpow2.f32 %v2463_v30 }
 0x49c   : > { %2127 = vst.msk [vmem:[%s7204_s29 + $0x20] sm:$0xff] %vm443_vm0, %v2040_v27  ;;  %v2162_v43 = vsel %vm443_vm0, %v2040_v27, 0.0  ;;  %v2230_v2 = vmul.f32 %v2040_v27, %v2040_v27  ;;  %v1874_v31 = vpop.f32.mrf.mxu3  ;;  %v2450_v27 = vsub.f32 %v8874_v54, %v7154_v15  ;;  %v7316_v15 = vpop.xlane.xlu2 %2835 }
 0x49d   : > { %v2163_v41 = vadd.f32 %v2162_v43, %v2161_v61  ;;  %4702 = vmatmul.msk.f32.gmra.mxu1 %vm1913_vm5, %v1874_v31  ;;  %8908 = vst [vmem:[#allocation47_spill] sm:$0xff] %v7300_v18  ;;  %v7306_v61 = vpop.eup %5358 }
 0x49e   : > { %v2265_v25 = vsel %vm443_vm0, %v2230_v2, 0.0  ;;  %8909 = vst [vmem:[#allocation68_spill] sm:$0xff] %v7306_v61  ;;  %v2507_v31 = vmul.f32 1.442695, %v2450_v27  ;;  %v2937_v27 = vsub.f32 %v6125_v22, %v7210_v29 }
 0x49f   : > { %v2266_v1 = vadd.f32 %v2265_v25, %v2264_v23  ;;  %v2427_v25 = vsub.f32 %v8856_v10, %v7214_v7 }
 0x4a0   : > { %2563 = vrot.lane.b32.xlu0 %v7300_v18, %s5728_s26  ;;  %5364 = vpow2.f32 %v2507_v31 }
 0x4a1   : > { %v2042_v34 = vpop.f32.mrf.mxu1  ;;  %v2461_v10 = vmul.f32 1.442695, %v2427_v25 }
 0x4a2   : > { %v2043_v43 = vadd.f32 %v7192_v39, %v2042_v34  ;;  %v7319_v34 = vpop.xlane.xlu0 %2847  ;;  %v2586_v18 = vpop.permute.xlu1 %2585 }
 0x4a3   : > { %2601 = vrot.lane.b32.xlu1 %v7306_v61, %s5728_s26  ;;  %v7322_v61 = vpop.eup %5360  ;;  %5366 = vpow2.f32 %v2461_v10 }
 0x4a4   : > { %2128 = vst.msk [vmem:[%s7204_s29 + $0x28] sm:$0xff] %vm443_vm0, %v2043_v43  ;;  %v2164_v23 = vsel %vm443_vm0, %v2043_v43, 0.0  ;;  %v2231_v35 = vmul.f32 %v2043_v43, %v2043_v43  ;;  %v1877_v2 = vpop.f32.mrf.mxu3  ;;  %v2697_v43 = vsel %vm1913_vm5, %v2586_v18, 0.0  ;;  %v7343_v8 = vpop.xlane.xlu2 %2832 }
 0x4a5   : > { %v2165_v13 = vadd.f32 %v2164_v23, %v2163_v41  ;;  %4703 = vmatmul.msk.f32.gmra.mxu1 %vm1913_vm5, %v1877_v2  ;;  %8910 = vst [vmem:[#allocation69_spill] sm:$0xff] %v7322_v61  ;;  %v7329_v23 = vpop.eup %5362 }
 0x4a6   : > { %v2267_v30 = vsel %vm443_vm0, %v2231_v35, 0.0  ;;  %8911 = vst [vmem:[#allocation70_spill] sm:$0xff] %v7329_v23 }
 0x4a7   : > { %v2268_v7 = vadd.f32 %v2267_v30, %v2266_v1  ;;  %v8912_v1 = vld [vmem:[#allocation44_spill] sm:$0xff]  ;;  %v3000_v30 = vmul.f32 1.442695, %v2937_v27 }
 0x4a8   : > { %2561 = vrot.lane.b32.xlu0 %v7322_v61, %s5728_s26  ;;  %v2426_v25 = vsub.f32 %v8898_v20, %v8912_v1 }
 0x4a9   : > { %v2045_v41 = vpop.f32.mrf.mxu1  ;;  %5368 = vpow2.f32 %v3000_v30 }
 0x4aa   : > { %v2046_v2 = vadd.f32 %v7192_v39, %v2045_v41  ;;  %2698 = vadd.xlane.f32.xlu2 %v2697_v43  ;;  %v7341_v43 = vpop.eup %5364  ;;  %v2459_v61 = vmul.f32 1.442695, %v2426_v25  ;;  %v2845_v10 = vpop.xlane.xlu0 %2844 }
 0x4ab   : > { %2559 = vrot.lane.b32.xlu1 %v7329_v23, %s5728_s26  ;;  %8913 = vst [vmem:[#allocation44_spill] sm:$0xff] %v7341_v43  ;;  %v7349_v27 = vpop.eup %5366 }
 0x4ac   : > { %2129 = vst.msk [vmem:[%s7204_s29 + $0x30] sm:$0xff] %vm443_vm0, %v2046_v2  ;;  %v2166_v35 = vsel %vm443_vm0, %v2046_v2, 0.0  ;;  %v2232_v29 = vmul.f32 %v2046_v2, %v2046_v2  ;;  %v1880_v31 = vpop.f32.mrf.mxu3  ;;  %v8914_v2 = vld [vmem:[#allocation34_spill] sm:$0xff]  ;;  %5370 = vpow2.f32 %v2459_v61 }
 0x4ad   : > { %v2167_v18 = vadd.f32 %v2166_v35, %v2165_v13  ;;  %4704 = vmatmul.msk.f32.gmra.mxu1 %vm1913_vm5, %v1880_v31  ;;  %v2452_v1 = vsub.f32 %v8914_v2, %v7170_v42  ;;  %8915 = vst [vmem:[#allocation71_spill] sm:$0xff] %v7349_v27 }
 0x4ae   : > { %v2269_v41 = vsel %vm443_vm0, %v2232_v29, 0.0  ;;  %v2917_v29 = vsub.f32 %v6100_v51, %v2845_v10 }
 0x4af   : > { %v2270_v23 = vadd.f32 %v2269_v41, %v2268_v7  ;;  %v2935_v7 = vsub.f32 %v8858_v59, %v7238_v47  ;;  %v2511_v30 = vmul.f32 1.442695, %v2452_v1  ;;  %v7362_v10 = vpop.eup %5368  ;;  %v2921_v47 = vsub.f32 %v8851_v26, %v7161_v56 }
 0x4b0   : > { %2603 = vrot.lane.b32.xlu0 %v7341_v43, %s5728_s26  ;;  %v2960_v51 = vmul.f32 1.442695, %v2917_v29 }
 0x4b1   : > { %v2048_v13 = vpop.f32.mrf.mxu1  ;;  %5372 = vpow2.f32 %v2511_v30 }
 0x4b2   : > { %v2049_v35 = vadd.f32 %v7192_v39, %v2048_v13  ;;  %v7368_v1 = vpop.eup %5370  ;;  %5374 = vpow2.f32 %v2960_v51 }
 0x4b3   : > { %2557 = vrot.lane.b32.xlu1 %v7349_v27, %s5728_s26  ;;  %v2996_v27 = vmul.f32 1.442695, %v2935_v7  ;;  %8916 = vst [vmem:[#allocation72_spill] sm:$0xff] %v7368_v1 }
 0x4b4   : > { %2130 = vst.msk [vmem:[%s7204_s29 + $0x38] sm:$0xff] %vm443_vm0, %v2049_v35  ;;  %v2168_v25 = vsel %vm443_vm0, %v2049_v35, 0.0  ;;  %v2233_v42 = vmul.f32 %v2049_v35, %v2049_v35  ;;  %v1883_v31 = vpop.f32.mrf.mxu3 }
 0x4b5   : > { %v2169_v41 = vadd.f32 %v2168_v25, %v2167_v18  ;;  %4705 = vmatmul.msk.f32.gmra.mxu1 %vm1913_vm5, %v1883_v31  ;;  %v7370_v18 = vpop.permute.xlu2 %2583  ;;  %5376 = vpow2.f32 %v2996_v27  ;;  %v2968_v31 = vmul.f32 1.442695, %v2921_v47 }
 0x4b6   : > { %v2271_v13 = vsel %vm443_vm0, %v2233_v42, 0.0  ;;  %v2456_v42 = vsub.f32 %v6125_v22, %v7134_v12 }
 0x4b7   : > { %v2272_v61 = vadd.f32 %v2271_v13, %v2270_v23  ;;  %v2934_v23 = vsub.f32 %v8876_v4, %v7262_v49  ;;  %v7384_v51 = vpop.eup %5372  ;;  %5378 = vpow2.f32 %v2968_v31 }
 0x4b8   : > { %3096 = vrot.lane.b32.xlu0 %v7362_v10, %s5729_s12  ;;  %v2519_v13 = vmul.f32 1.442695, %v2456_v42  ;;  %v7388_v49 = vpop.eup %5374 }
 0x4b9   : > { %v2051_v35 = vpop.f32.mrf.mxu1  ;;  %8917 = vst [vmem:[#allocation73_spill] sm:$0xff] %v7388_v49 }
 0x4ba   : > { %v2052_v25 = vadd.f32 %v7192_v39, %v2051_v35  ;;  %v2994_v35 = vmul.f32 1.442695, %v2934_v23  ;;  %5380 = vpow2.f32 %v2519_v13 }
 0x4bb   : > { %2555 = vrot.lane.b32.xlu1 %v7368_v1, %s5728_s26  ;;  %v7392_v47 = vpop.eup %5376 }
 0x4bc   : > { %2131 = vst.msk [vmem:[%s7204_s29 + $0x40] sm:$0xff] %vm443_vm0, %v2052_v25  ;;  %v2170_v56 = vsel %vm443_vm0, %v2052_v25, 0.0  ;;  %v2234_v29 = vmul.f32 %v2052_v25, %v2052_v25  ;;  %v1886_v7 = vpop.f32.mrf.mxu3  ;;  %v2933_v25 = vsub.f32 %v8914_v2, %v7285_v11  ;;  %5382 = vpow2.f32 %v2994_v35 }
 0x4bd   : > { %v2171_v30 = vadd.f32 %v2170_v56, %v2169_v41  ;;  %4706 = vmatmul.msk.f32.gmra.mxu1 %vm1913_vm5, %v1886_v7  ;;  %v7401_v42 = vpop.permute.xlu2 %2581  ;;  %v7408_v13 = vpop.eup %5378 }
 0x4be   : > { %v2273_v12 = vsel %vm443_vm0, %v2234_v29, 0.0  ;;  %v2992_v7 = vmul.f32 1.442695, %v2933_v25 }
 0x4bf   : > { %v2274_v27 = vadd.f32 %v2273_v12, %v2272_v61  ;;  %v2454_v61 = vsub.f32 %v8858_v59, %v7244_v32 }
 0x4c0   : > { %2607 = vrot.lane.b32.xlu0 %v7384_v51, %s5728_s26  ;;  %v7412_v35 = vpop.eup %5380  ;;  %5384 = vpow2.f32 %v2992_v7 }
 0x4c1   : > { %v2054_v41 = vpop.f32.mrf.mxu1  ;;  %v2515_v32 = vmul.f32 1.442695, %v2454_v61  ;;  %8918 = vst [vmem:[#allocation74_spill] sm:$0xff] %v7412_v35 }
 0x4c2   : > { %v2055_v56 = vadd.f32 %v7192_v39, %v2054_v41  ;;  %3056 = vrot.lane.b32.xlu2 %v7388_v49, %s5729_s12 }
 0x4c3   : > { %3092 = vrot.lane.b32.xlu1 %v7392_v47, %s5729_s12  ;;  %5386 = vpow2.f32 %v2515_v32 }
 0x4c4   : > { %2132 = vst.msk [vmem:[%s7204_s29 + $0x48] sm:$0xff] %vm443_vm0, %v2055_v56  ;;  %v2172_v11 = vsel %vm443_vm0, %v2055_v56, 0.0  ;;  %v2235_v23 = vmul.f32 %v2055_v56, %v2055_v56  ;;  %v1889_v29 = vpop.f32.mrf.mxu3  ;;  %v2919_v56 = vsub.f32 %v8849_v48, %v7291_v62 }
 0x4c5   : > { %v2173_v31 = vadd.f32 %v2172_v11, %v2171_v30  ;;  %4707 = vmatmul.msk.f32.gmra.mxu1 %vm1913_vm5, %v1889_v29  ;;  %v7416_v30 = vpop.eup %5382  ;;  %v7425_v61 = vpop.xlane.xlu2 %2826 }
 0x4c6   : > { %v2275_v12 = vsel %vm443_vm0, %v2235_v23, 0.0  ;;  %8919 = vst [vmem:[#allocation75_spill] sm:$0xff] %v7416_v30  ;;  %v2964_v7 = vmul.f32 1.442695, %v2919_v56  ;;  %v7432_v22 = vpop.eup %5384 }
 0x4c7   : > { %v2276_v41 = vadd.f32 %v2275_v12, %v2274_v27  ;;  %v2932_v27 = vsub.f32 %v8875_v0, %v7187_v53  ;;  %v2455_v53 = vsub.f32 %v8877_v24, %v7184_v58 }
 0x4c8   : > { %3064 = vrot.lane.b32.xlu0 %v7408_v13, %s5729_s12  ;;  %5388 = vpow2.f32 %v2964_v7 }
 0x4c9   : > { %v2057_v25 = vpop.f32.mrf.mxu1  ;;  %v2990_v59 = vmul.f32 1.442695, %v2932_v27 }
 0x4ca   : > { %v2058_v11 = vadd.f32 %v7192_v39, %v2057_v25  ;;  %2615 = vrot.lane.b32.xlu2 %v7412_v35, %s5728_s26 }
 0x4cb   : > { %3090 = vrot.lane.b32.xlu1 %v7416_v30, %s5729_s12  ;;  %5390 = vpow2.f32 %v2990_v59 }
 0x4cc   : > { %2133 = vst.msk [vmem:[%s7204_s29 + $0x50] sm:$0xff] %vm443_vm0, %v2058_v11  ;;  %v2174_v62 = vsel %vm443_vm0, %v2058_v11, 0.0  ;;  %v2236_v23 = vmul.f32 %v2058_v11, %v2058_v11  ;;  %v1892_v29 = vpop.f32.mrf.mxu3  ;;  %v7438_v11 = vpop.eup %5386 }
 0x4cd   : > { %v2175_v12 = vadd.f32 %v2174_v62, %v2173_v31  ;;  %4708 = vmatmul.msk.f32.gmra.mxu1 %vm1913_vm5, %v1892_v29  ;;  %8920 = vst [vmem:[#allocation76_spill] sm:$0xff] %v7438_v11  ;;  %v2517_v62 = vmul.f32 1.442695, %v2455_v53  ;;  %v7449_v29 = vpop.xlane.xlu2 %2823 }
 0x4ce   : > { %v2277_v25 = vsel %vm443_vm0, %v2236_v23, 0.0 }
 0x4cf   : > { %v2278_v32 = vadd.f32 %v2277_v25, %v2276_v41  ;;  %v2918_v41 = vsub.f32 %v6128_v28, %v7319_v34  ;;  %v7451_v25 = vpop.eup %5388  ;;  %5392 = vpow2.f32 %v2517_v62  ;;  %v2931_v34 = vsub.f32 %v8874_v54, %v7218_v37 }
 0x4d0   : > { %3088 = vrot.lane.b32.xlu0 %v7432_v22, %s5729_s12 }
 0x4d1   : > { %v2060_v56 = vpop.f32.mrf.mxu1  ;;  %v7458_v53 = vpop.eup %5390 }
 0x4d2   : > { %v2061_v31 = vadd.f32 %v7192_v39, %v2060_v56  ;;  %v2962_v56 = vmul.f32 1.442695, %v2918_v41  ;;  %8921 = vst [vmem:[#allocation77_spill] sm:$0xff] %v7458_v53 }
 0x4d3   : > { %2611 = vrot.lane.b32.xlu1 %v7438_v11, %s5728_s26 }
 0x4d4   : > { %v1895_v27 = vpop.f32.mrf.mxu3  ;;  %2134 = vst.msk [vmem:[%s7204_s29 + $0x58] sm:$0xff] %vm443_vm0, %v2061_v31  ;;  %v2176_v23 = vsel %vm443_vm0, %v2061_v31, 0.0  ;;  %v2237_v58 = vmul.f32 %v2061_v31, %v2061_v31  ;;  %5394 = vpow2.f32 %v2962_v56 }
 0x4d5   : > { %4709 = vmatmul.msk.f32.gmra.mxu1 %vm1913_vm5, %v1895_v27  ;;  %v2177_v7 = vadd.f32 %v2176_v23, %v2175_v12  ;;  %v7460_v27 = vpop.xlane.xlu1 %2829 }
 0x4d6   : > { %v2279_v59 = vsel %vm443_vm0, %v2237_v58, 0.0  ;;  %v7469_v58 = vpop.eup %5392 }
 0x4d7   : > { %v2280_v24 = vadd.f32 %v2279_v59, %v2278_v32  ;;  %v2988_v32 = vmul.f32 1.442695, %v2931_v34  ;;  %8922 = vst [vmem:[#allocation78_spill] sm:$0xff] %v7469_v58 }
 0x4d8   : > { %3060 = vrot.lane.b32.xlu0 %v7451_v25, %s5729_s12 }
 0x4d9   : > { %v2063_v31 = vpop.f32.mrf.mxu1  ;;  %5396 = vpow2.f32 %v2988_v32 }
 0x4da   : > { %v2064_v12 = vadd.f32 %v7192_v39, %v2063_v31  ;;  %v7472_v31 = vpop.xlane.xlu2 %2862  ;;  %v7476_v56 = vpop.eup %5394 }
 0x4db   : > { %3086 = vrot.lane.b32.xlu1 %v7458_v53, %s5729_s12  ;;  %8923 = vst [vmem:[#allocation79_spill] sm:$0xff] %v7476_v56 }
 0x4dc   : > { %v1898_v41 = vpop.f32.mrf.mxu3  ;;  %2135 = vst.msk [vmem:[%s7204_s29 + $0x60] sm:$0xff] %vm443_vm0, %v2064_v12  ;;  %v2178_v62 = vsel %vm443_vm0, %v2064_v12, 0.0  ;;  %v2238_v23 = vmul.f32 %v2064_v12, %v2064_v12 }
 0x4dd   : > { %4710 = vmatmul.msk.f32.gmra.mxu1 %vm1913_vm5, %v1898_v41  ;;  %v2179_v37 = vadd.f32 %v2178_v62, %v2177_v7  ;;  %v7481_v12 = vpop.xlane.xlu1 %2865 }
 0x4de   : > { %v2281_v59 = vsel %vm443_vm0, %v2238_v23, 0.0 }
 0x4df   : > { %v2282_v2 = vadd.f32 %v2281_v59, %v2280_v24  ;;  %v7487_v62 = vpop.eup %5396  ;;  %v7490_v59 = vpop.xlane.xlu0 %2841 }
 0x4e0   : > { %2613 = vrot.lane.b32.xlu0 %v7469_v58, %s5728_s26  ;;  %8924 = vst [vmem:[#allocation80_spill] sm:$0xff] %v7487_v62 }
 0x4e2   : > { %v2066_v34 = vpop.f32.mrf.mxu1  ;;  %v7494_v54 = vpop.xlane.xlu2 %2820 }
 0x4e3   : > { %v2067_v4 = vadd.f32 %v7192_v39, %v2066_v34  ;;  %3058 = vrot.lane.b32.xlu1 %v7476_v56, %s5729_s12 }
 0x4e4   : > { %v1901_v7 = vpop.f32.mrf.mxu3 }
 0x4e5   : > { %2136 = vst.msk [vmem:[%s7204_s29 + $0x68] sm:$0xff] %vm443_vm0, %v2067_v4  ;;  %v2180_v24 = vsel %vm443_vm0, %v2067_v4, 0.0  ;;  %v2239_v41 = vmul.f32 %v2067_v4, %v2067_v4  ;;  %4711 = vmatmul.msk.f32.gmra.mxu1 %vm1913_vm5, %v1901_v7  ;;  %v2590_v4 = vpop.permute.xlu1 %2589 }
 0x4e6   : > { %v2181_v32 = vadd.f32 %v2180_v24, %v2179_v37  ;;  %v2703_v1 = vsel %vm1913_vm5, %v2590_v4, 0.0 }
 0x4e7   : > { %v2283_v23 = vsel %vm443_vm0, %v2239_v41, 0.0 }
 0x4e8   : > { %v2284_v34 = vadd.f32 %v2283_v23, %v2282_v2  ;;  %3084 = vrot.lane.b32.xlu0 %v7487_v62, %s5729_s12  ;;  %v7502_v23 = vpop.xlane.xlu0 %2838 }
 0x4ea   : > { %v2069_v0 = vpop.f32.mrf.mxu1  ;;  %v7506_v58 = vpop.xlane.xlu2 %2817 }
 0x4eb   : > { %v2070_v26 = vadd.f32 %v7192_v39, %v2069_v0 }
 0x4ec   : > { %v1904_v48 = vpop.f32.mrf.mxu3 }
 0x4ed   : > { %2137 = vst.msk [vmem:[%s7204_s29 + $0x70] sm:$0xff] %vm443_vm0, %v2070_v26  ;;  %v2182_v37 = vsel %vm443_vm0, %v2070_v26, 0.0  ;;  %v2240_v7 = vmul.f32 %v2070_v26, %v2070_v26  ;;  %4712 = vmatmul.msk.f32.gmra.mxu1 %vm1913_vm5, %v1904_v48 }
 0x4ee   : > { %v2183_v24 = vadd.f32 %v2182_v37, %v2181_v32 }
 0x4ef   : > { %v2285_v2 = vsel %vm443_vm0, %v2240_v7, 0.0 }
 0x4f0   : > { %v2286_v41 = vadd.f32 %v2285_v2, %v2284_v34  ;;  %v2592_v34 = vpop.permute.xlu1 %2591  ;;  %v7515_v2 = vpop.xlane.xlu0 %2874 }
 0x4f2   : > { %v2072_v28 = vpop.f32.mrf.mxu1 }
 0x4f3   : > { %v2073_v0 = vadd.f32 %v7192_v39, %v2072_v28  ;;  %2704 = vadd.xlane.f32.xlu2 %v2703_v1  ;;  %v2706_v28 = vsel %vm1913_vm5, %v2592_v34, 0.0 }
 0x4f4   : > { %v1907_v35 = vpop.f32.mrf.mxu3 }
 0x4f5   : > { %2138 = vst.msk [vmem:[%s7204_s29 + $0x78] sm:$0xff] %vm443_vm0, %v2073_v0  ;;  %v2184_v48 = vsel %vm443_vm0, %v2073_v0, 0.0  ;;  %v2241_v26 = vmul.f32 %v2073_v0, %v2073_v0  ;;  %4713 = vmatmul.msk.f32.gmra.mxu1 %vm1913_vm5, %v1907_v35  ;;  %v7520_v35 = vpop.permute.xlu2 %2573 }
 0x4f6   : > { %v2185_v32 = vadd.f32 %v2184_v48, %v2183_v24 }
 0x4f7   : > { %v2287_v37 = vsel %vm443_vm0, %v2241_v26, 0.0 }
 0x4f8   : > { %v2288_v7 = vadd.f32 %v2287_v37, %v2286_v41  ;;  %v2914_v37 = vsub.f32 %v8893_v44, %v7316_v15  ;;  %v7529_v43 = vpop.xlane.xlu0 %2871  ;;  %v2694_v15 = vsel %vm1913_vm5, %v7370_v18, 0.0 }
 0x4fa   : > { %v2075_v4 = vpop.f32.mrf.mxu1 }
 0x4fb   : > { %v2076_v1 = vadd.f32 %v7192_v39, %v2075_v4  ;;  %2707 = vadd.xlane.f32.xlu2 %v2706_v28 }
 0x4fd   : > { %2139 = vst.msk [vmem:[%s7204_s29 + $0x80] sm:$0xff] %vm443_vm0, %v2076_v1  ;;  %v2186_v0 = vsel %vm443_vm0, %v2076_v1, 0.0  ;;  %v2242_v30 = vmul.f32 %v2076_v1, %v2076_v1 }
 0x4fe   : > { %v2187_v24 = vadd.f32 %v2186_v0, %v2185_v32  ;;  %v2954_v0 = vmul.f32 1.442695, %v2914_v37 }
 0x4ff   : > { %v2289_v48 = vsel %vm443_vm0, %v2242_v30, 0.0  ;;  %v7532_v30 = vpop.permute.xlu2 %2571 }
 0x500   : > { %v2290_v41 = vadd.f32 %v2289_v48, %v2288_v7  ;;  %5398 = vpow2.f32 %v2954_v0 }
 0x502   : > { %v2078_v26 = vpop.f32.mrf.mxu1 }
 0x503   : > { %v2079_v34 = vadd.f32 %v7192_v39, %v2078_v26 }
 0x505   : > { %2140 = vst.msk [vmem:[%s7204_s29 + $0x88] sm:$0xff] %vm443_vm0, %v2079_v34  ;;  %v2188_v4 = vsel %vm443_vm0, %v2079_v34, 0.0  ;;  %v2243_v28 = vmul.f32 %v2079_v34, %v2079_v34 }
 0x506   : > { %v2189_v1 = vadd.f32 %v2188_v4, %v2187_v24  ;;  %v2588_v24 = vpop.permute.xlu0 %2587  ;;  %v7544_v0 = vpop.eup %5398 }
 0x507   : > { %v2291_v32 = vsel %vm443_vm0, %v2243_v28, 0.0  ;;  %v7541_v28 = vpop.xlane.xlu2 %2811  ;;  %8925 = vst [vmem:[#allocation81_spill] sm:$0xff] %v7544_v0 }
 0x508   : > { %v2292_v7 = vadd.f32 %v2291_v32, %v2290_v41  ;;  %v2700_v32 = vsel %vm1913_vm5, %v2588_v24, 0.0  ;;  %v2691_v24 = vsel %vm1913_vm5, %v7401_v42, 0.0  ;;  %v2929_v42 = vsub.f32 %v8870_v19, %v7269_v45 }
 0x50a   : > { %v2081_v48 = vpop.f32.mrf.mxu1 }
 0x50b   : > { %v2082_v26 = vadd.f32 %v7192_v39, %v2081_v48 }
 0x50d   : > { %2141 = vst.msk [vmem:[%s7204_s29 + $0x90] sm:$0xff] %vm443_vm0, %v2082_v26  ;;  %v2190_v34 = vsel %vm443_vm0, %v2082_v26, 0.0  ;;  %v2244_v44 = vmul.f32 %v2082_v26, %v2082_v26  ;;  %2695 = vadd.xlane.f32.xlu1 %v2694_v15 }
 0x50e   : > { %v2191_v4 = vadd.f32 %v2190_v34, %v2189_v1 }
 0x50f   : > { %v2293_v37 = vsel %vm443_vm0, %v2244_v44, 0.0 }
 0x510   : > { %v2294_v41 = vadd.f32 %v2293_v37, %v2292_v7  ;;  %v2930_v7 = vsub.f32 %v8871_v36, %v7246_v33  ;;  %v7557_v37 = vpop.permute.xlu2 %2599  ;;  %v2916_v33 = vsub.f32 %v8846_v50, %v7490_v59 }
 0x512   : > { %2701 = vadd.xlane.f32.xlu0 %v2700_v32  ;;  %v2084_v18 = vpop.f32.mrf.mxu1 }
 0x513   : > { %v2085_v48 = vadd.f32 %v7192_v39, %v2084_v18  ;;  %3050 = vrot.lane.b32.xlu2 %v7544_v0, %s5729_s12  ;;  %v2986_v18 = vmul.f32 1.442695, %v2930_v7  ;;  %v2958_v7 = vmul.f32 1.442695, %v2916_v33 }
 0x515   : > { %2142 = vst.msk [vmem:[%s7204_s29 + $0x98] sm:$0xff] %vm443_vm0, %v2085_v48  ;;  %v2192_v1 = vsel %vm443_vm0, %v2085_v48, 0.0  ;;  %v2245_v44 = vmul.f32 %v2085_v48, %v2085_v48  ;;  %5400 = vpow2.f32 %v2986_v18 }
 0x516   : > { %v2193_v26 = vadd.f32 %v2192_v1, %v2191_v4  ;;  %5402 = vpow2.f32 %v2958_v7 }
 0x517   : > { %v2295_v15 = vsel %vm443_vm0, %v2245_v44, 0.0 }
 0x518   : > { %v2296_v34 = vadd.f32 %v2295_v15, %v2294_v41  ;;  %v7569_v36 = vpop.permute.xlu2 %2605 }
 0x51a   : > { %2692 = vadd.xlane.f32.xlu0 %v2691_v24  ;;  %v2087_v32 = vpop.f32.mrf.mxu1  ;;  %v2984_v24 = vmul.f32 1.442695, %v2929_v42 }
 0x51b   : > { %v2088_v0 = vadd.f32 %v7192_v39, %v2087_v32  ;;  %v7571_v62 = vpop.eup %5400 }
 0x51c   : > { %8926 = vst [vmem:[#allocation82_spill] sm:$0xff] %v7571_v62  ;;  %5404 = vpow2.f32 %v2984_v24  ;;  %v7586_v42 = vpop.eup %5402 }
 0x51d   : > { %2143 = vst.msk [vmem:[%s7204_s29 + $0xa0] sm:$0xff] %vm443_vm0, %v2088_v0  ;;  %v2194_v4 = vsel %vm443_vm0, %v2088_v0, 0.0  ;;  %v2246_v48 = vmul.f32 %v2088_v0, %v2088_v0 }
 0x51e   : > { %v2195_v41 = vadd.f32 %v2194_v4, %v2193_v26  ;;  %v2915_v26 = vsub.f32 %v8847_v9, %v7502_v23  ;;  %8927 = vst [vmem:[#allocation83_spill] sm:$0xff] %v7586_v42  ;;  %v2928_v23 = vsub.f32 %v8868_v60, %v7297_v21  ;;  %v2911_v60 = vsub.f32 %v8843_v63, %v7425_v61 }
 0x51f   : > { %v2297_v1 = vsel %vm443_vm0, %v2246_v48, 0.0 }
 0x520   : > { %v2298_v44 = vadd.f32 %v2297_v1, %v2296_v34  ;;  %v2956_v48 = vmul.f32 1.442695, %v2915_v26  ;;  %v7592_v1 = vpop.permute.xlu2 %3094  ;;  %v2982_v7 = vmul.f32 1.442695, %v2928_v23  ;;  %v2948_v9 = vmul.f32 1.442695, %v2911_v60 }
 0x522   : > { %v2090_v15 = vpop.f32.mrf.mxu1  ;;  %5406 = vpow2.f32 %v2956_v48 }
 0x523   : > { %v2091_v32 = vadd.f32 %v7192_v39, %v2090_v15  ;;  %5408 = vpow2.f32 %v2982_v7 }
 0x525   : > { %2144 = vst.msk [vmem:[%s7204_s29 + $0xa8] sm:$0xff] %vm443_vm0, %v2091_v32  ;;  %v2196_v59 = vsel %vm443_vm0, %v2091_v32, 0.0  ;;  %v2247_v0 = vmul.f32 %v2091_v32, %v2091_v32  ;;  %v2576_v32 = vpop.permute.xlu1 %2575 }
 0x526   : > { %v7576_v45 = vadd.f32 %v2196_v59, %v2195_v41  ;;  %3082 = vrot.lane.b32.xlu1 %v7571_v62, %s5729_s12  ;;  %v7588_v41 = vpop.eup %5404  ;;  %v2682_v21 = vsel %vm1913_vm5, %v2576_v32, 0.0 }
 0x527   : > { %v2299_v34 = vsel %vm443_vm0, %v2247_v0, 0.0  ;;  %8928 = vst [vmem:[#allocation84_spill] sm:$0xff] %v7588_v41 }
 0x528   : > { %v7583_v18 = vadd.f32 %v2299_v34, %v2298_v44  ;;  %v7601_v24 = vpop.eup %5406  ;;  %v7607_v59 = vpop.permute.xlu2 %2609 }
 0x529   : > { %8929 = vst [vmem:[#allocation85_spill] sm:$0xff] %v7601_v24  ;;  %v7611_v34 = vpop.eup %5408 }
 0x52a   : > { %v2093_v4 = vpop.f32.mrf.mxu1  ;;  %8930 = vst [vmem:[#allocation86_spill] sm:$0xff] %v7611_v34 }
 0x52b   : > { %v2094_v33 = vadd.f32 %v7192_v39, %v2093_v4  ;;  %v2869_v4 = vpop.xlane.xlu0 %2868 }
 0x52c   : > { %v2925_v7 = vsub.f32 %v8855_v46, %v2869_v4 }
 0x52d   : > { %2145 = vst.msk [vmem:[%s7204_s29 + $0xb0] sm:$0xff] %vm443_vm0, %v2094_v33  ;;  %v2248_v63 = vmul.f32 %v2094_v33, %v2094_v33 }
 0x52e   : > { %3054 = vrot.lane.b32.xlu0 %v7586_v42, %s5729_s12  ;;  %3080 = vrot.lane.b32.xlu1 %v7588_v41, %s5729_s12  ;;  %v2976_v32 = vmul.f32 1.442695, %v2925_v7 }
 0x52f   : > { %v2301_v41 = vsel %vm443_vm0, %v2248_v63, 0.0 }
 0x530   : > { %v7617_v48 = vpop.permute.xlu2 %3062  ;;  %5410 = vpow2.f32 %v2976_v32 }
 0x531   : > { %5412 = vpow2.f32 %v2948_v9  ;;  %v2198_v9 = vsel %vm443_vm0, %v2094_v33, 0.0 }
 0x532   : > { %v2096_v44 = vpop.f32.mrf.mxu1  ;;  %v2199_v62 = vadd.f32 %v2198_v9, %v7576_v45 }
 0x533   : > { %v2097_v15 = vadd.f32 %v7192_v39, %v2096_v44  ;;  %v2580_v46 = vpop.permute.xlu0 %2579 }
 0x534   : > { %v2688_v61 = vsel %vm1913_vm5, %v2580_v46, 0.0  ;;  %v2927_v46 = vsub.f32 %v8867_v52, %v7515_v2  ;;  %v2302_v2 = vadd.f32 %v2301_v41, %v7583_v18 }
 0x535   : > { %2146 = vst.msk [vmem:[%s7204_s29 + $0xb8] sm:$0xff] %vm443_vm0, %v2097_v15 }
 0x536   : > { %3052 = vrot.lane.b32.xlu0 %v7601_v24, %s5729_s12  ;;  %v7630_v50 = vpop.eup %5410  ;;  %v2980_v56 = vmul.f32 1.442695, %v2927_v46 }
 0x537   : > { %8931 = vst [vmem:[#allocation87_spill] sm:$0xff] %v7630_v50 }
 0x538   : > { %5414 = vpow2.f32 %v2980_v56 }
 0x53a   : > { %v2099_v0 = vpop.f32.mrf.mxu1 }
 0x53b   : > { %v2100_v26 = vadd.f32 %v7192_v39, %v2099_v0  ;;  %v7623_v0 = vpop.xlane.xlu2 %2698 }
 0x53c   : > { %2683 = vadd.xlane.f32.xlu2 %v2682_v21 }
 0x53d   : > { %2147 = vst.msk [vmem:[%s7204_s29 + $0xc0] sm:$0xff] %vm443_vm0, %v2100_v26  ;;  %v2250_v24 = vmul.f32 %v2100_v26, %v2100_v26  ;;  %v2202_v49 = vsel %vm443_vm0, %v2100_v26, 0.0 }
 0x53e   : > { %3078 = vrot.lane.b32.xlu0 %v7611_v34, %s5729_s12  ;;  %v2578_v34 = vpop.permute.xlu0 %2577 }
 0x53f   : > { %v2685_v11 = vsel %vm1913_vm5, %v2578_v34, 0.0 }
 0x542   : > { %v2102_v23 = vpop.f32.mrf.mxu1 }
 0x543   : > { %v2103_v44 = vadd.f32 %v7192_v39, %v2102_v23  ;;  %v7633_v7 = vpop.permute.xlu2 %3056 }
 0x545   : > { %2148 = vst.msk [vmem:[%s7204_s29 + $0xc8] sm:$0xff] %vm443_vm0, %v2103_v44  ;;  %v2251_v33 = vmul.f32 %v2103_v44, %v2103_v44  ;;  %v2204_v53 = vsel %vm443_vm0, %v2103_v44, 0.0 }
 0x547   : > { %v2307_v26 = vsel %vm443_vm0, %v2251_v33, 0.0 }
 0x54a   : > { %v2105_v21 = vpop.f32.mrf.mxu1 }
 0x54b   : > { %v2106_v19 = vadd.f32 %v7192_v39, %v2105_v21  ;;  %v7640_v21 = vpop.eup %5412 }
 0x54c   : > { %8932 = vst [vmem:[#allocation88_spill] sm:$0xff] %v7640_v21 }
 0x54d   : > { %2149 = vst.msk [vmem:[%s7204_s29 + $0xd0] sm:$0xff] %vm443_vm0, %v2106_v19  ;;  %v2206_v46 = vsel %vm443_vm0, %v2106_v19, 0.0 }
 0x552   : > { %v2108_v23 = vpop.f32.mrf.mxu1 }
 0x553   : > { %v2109_v4 = vadd.f32 %v7192_v39, %v2108_v23  ;;  %v7647_v23 = vpop.permute.xlu2 %2615 }
 0x554   : > { %3072 = vrot.lane.b32.xlu2 %v7630_v50, %s5729_s12  ;;  %v2249_v50 = vmul.f32 %v2097_v15, %v2097_v15 }
 0x555   : > { %2150 = vst.msk [vmem:[%s7204_s29 + $0xd8] sm:$0xff] %vm443_vm0, %v2109_v4  ;;  %v2253_v18 = vmul.f32 %v2109_v4, %v2109_v4  ;;  %v2208_v34 = vsel %vm443_vm0, %v2109_v4, 0.0 }
 0x556   : > { %v2303_v42 = vsel %vm443_vm0, %v2249_v50, 0.0  ;;  %v2913_v50 = vsub.f32 %v8897_v38, %v7343_v8 }
 0x557   : > { %v2304_v45 = vadd.f32 %v2303_v42, %v2302_v2  ;;  %v2311_v33 = vsel %vm443_vm0, %v2253_v18, 0.0 }
 0x558   : > { %2689 = vadd.xlane.f32.xlu1 %v2688_v61 }
 0x55a   : > { %v2111_v32 = vpop.f32.mrf.mxu1 }
 0x55b   : > { %v2112_v60 = vadd.f32 %v7192_v39, %v2111_v32  ;;  %v2200_v32 = vsel %vm443_vm0, %v2097_v15, 0.0  ;;  %v2305_v15 = vsel %vm443_vm0, %v2250_v24, 0.0 }
 0x55c   : > { %3044 = vrot.lane.b32.xlu2 %v7640_v21, %s5729_s12  ;;  %v2201_v52 = vadd.f32 %v2200_v32, %v2199_v62  ;;  %v2306_v62 = vadd.f32 %v2305_v15, %v2304_v45  ;;  %v2952_v32 = vmul.f32 1.442695, %v2913_v50  ;;  %v7680_v50 = vpop.eup %5414 }
 0x55d   : > { %2151 = vst.msk [vmem:[%s7204_s29 + $0xe0] sm:$0xff] %vm443_vm0, %v2112_v60  ;;  %v2254_v42 = vmul.f32 %v2112_v60, %v2112_v60 }
 0x55e   : > { %v2203_v9 = vadd.f32 %v2202_v49, %v2201_v52  ;;  %v2594_v49 = vpop.permute.xlu1 %2593 }
 0x55f   : > { %v2313_v4 = vsel %vm443_vm0, %v2254_v42, 0.0 }
 0x560   : > { %v2205_v41 = vadd.f32 %v2204_v53, %v2203_v9  ;;  %v2709_v9 = vsel %vm1913_vm5, %v2594_v49, 0.0 }
 0x562   : > { %v2114_v61 = vpop.f32.mrf.mxu1  ;;  %v2207_v8 = vadd.f32 %v2206_v46, %v2205_v41 }
 0x563   : > { %v2115_v21 = vadd.f32 %v7192_v39, %v2114_v61  ;;  %v2252_v61 = vmul.f32 %v2106_v19, %v2106_v19  ;;  %v2210_v19 = vsel %vm443_vm0, %v2112_v60, 0.0 }
 0x564   : > { %v2209_v56 = vadd.f32 %v2208_v34, %v2207_v8 }
 0x565   : > { %2152 = vst.msk [vmem:[%s7204_s29 + $0xe8] sm:$0xff] %vm443_vm0, %v2115_v21  ;;  %v2309_v44 = vsel %vm443_vm0, %v2252_v61, 0.0  ;;  %v2255_v2 = vmul.f32 %v2115_v21, %v2115_v21  ;;  %v7675_v61 = vpop.xlane.xlu0 %2859 }
 0x566   : > { %v2705_v63 = vpop.xlane.xlu2 %2704  ;;  %v2211_v46 = vadd.f32 %v2210_v19, %v2209_v56 }
 0x567   : > { %v2315_v60 = vsel %vm443_vm0, %v2255_v2, 0.0 }
 0x568   : > { %2686 = vadd.xlane.f32.xlu0 %v2685_v11  ;;  %v2308_v11 = vadd.f32 %v2307_v26, %v2306_v62 }
 0x56a   : > { %v2117_v24 = vpop.f32.mrf.mxu1  ;;  %v2310_v53 = vadd.f32 %v2309_v44, %v2308_v11  ;;  %v5566_v44 = vld [vmem:[%s8621_s4] ss:$0 sm:$0xff]  ;;  %v2926_v11 = vsub.f32 %v8854_v16, %v7529_v43 }
 0x56b   : > { %v2118_v52 = vadd.f32 %v7192_v39, %v2117_v24  ;;  %v2212_v39 = vsel %vm443_vm0, %v2115_v21, 0.0 }
 0x56c   : > { %v2312_v26 = vadd.f32 %v2311_v33, %v2310_v53  ;;  %v2213_v21 = vadd.f32 %v2212_v39, %v2211_v46  ;;  %v2978_v39 = vmul.f32 1.442695, %v2926_v11  ;;  %v2912_v46 = vsub.f32 %v8842_v40, %v7460_v27 }
 0x56d   : > { %2153 = vst.msk [vmem:[%s7204_s29 + $0xf0] sm:$0xff] %vm443_vm0, %v2118_v52  ;;  %v2256_v45 = vmul.f32 %v2118_v52, %v2118_v52  ;;  %v2214_v18 = vsel %vm443_vm0, %v2118_v52, 0.0  ;;  %v2596_v2 = vpop.permute.xlu0 %2595 }
 0x56e   : > { %v2708_v15 = vpop.xlane.xlu2 %2707  ;;  %v2314_v62 = vadd.f32 %v2313_v4, %v2312_v26  ;;  %v2215_v49 = vadd.f32 %v2214_v18, %v2213_v21  ;;  %v2950_v21 = vmul.f32 1.442695, %v2912_v46  ;;  %v2924_v46 = vsub.f32 %v8852_v14, %v7481_v12 }
 0x56f   : > { %5416 = vrcp.f32 %v2708_v15  ;;  %v2317_v24 = vsel %vm443_vm0, %v2256_v45, 0.0  ;;  %v2718_v12 = vsel %vm1913_vm5, %v7557_v37, 0.0 }
 0x570   : > { %2710 = vadd.xlane.f32.xlu0 %v2709_v9  ;;  %5418 = vpow2.f32 %v2952_v32  ;;  %v2316_v42 = vadd.f32 %v2315_v60, %v2314_v62 }
 0x571   : > { %3076 = vrot.lane.b32.xlu1 %v7680_v50, %s5729_s12  ;;  %5420 = vrcp.f32 %v2705_v63 }
 0x572   : > { %v2120_v41 = vpop.f32.mrf.mxu1  ;;  %v2318_v63 = vadd.f32 %v2317_v24, %v2316_v42  ;;  %5422 = vpow2.f32 %v2978_v39  ;;  %v2712_v39 = vsel %vm1913_vm5, %v2596_v2, 0.0 }
 0x573   : > { %v2121_v34 = vadd.f32 %v5566_v44, %v2120_v41  ;;  %5424 = vpow2.f32 %v2950_v21 }
 0x575   : > { %2154 = vst.msk [vmem:[%s7204_s29 + $0xf8] sm:$0xff] %vm443_vm0, %v2121_v34  ;;  %v2216_v52 = vsel %vm443_vm0, %v2121_v34, 0.0  ;;  %v2257_v8 = vmul.f32 %v2121_v34, %v2121_v34  ;;  %v5417_v32 = vpop.eup %5416 }
 0x576   : > { %v2217_v33 = vadd.f32 %v2216_v52, %v2215_v49  ;;  %v7695_v19 = vpop.eup %5418  ;;  %v7699_v43 = vmul.f32 %v5417_v32, %v7123_v5  ;;  %v2570_v5 = vpop.permute.xlu0 %2569  ;;  %v2922_v32 = vsub.f32 %v8850_v55, %v7675_v61 }
 0x577   : > { %v2319_v53 = vsel %vm443_vm0, %v2257_v8, 0.0  ;;  %v5421_v56 = vpop.eup %5420  ;;  %v2673_v27 = vsel %vm1913_vm5, %v2570_v5, 0.0  ;;  %v2815_v61 = vpop.xlane.xlu1 %2814 }
 0x578   : > { %v2218_v15 = vrot.slane %v2217_v33, 4  ;;  %v2320_v4 = vadd.f32 %v2319_v53, %v2318_v63  ;;  %v7704_v26 = vmul.f32 %v5421_v56, %v7110_v57  ;;  %v7713_v24 = vpop.eup %5422  ;;  %v2970_v63 = vmul.f32 1.442695, %v2922_v32 }
 0x579   : > { %3048 = vrot.lane.b32.xlu1 %v7695_v19, %s5729_s12  ;;  %v7726_v52 = vpop.eup %5424 }
 0x57a   : > { %v2219_v45 = vadd.f32 %v2218_v15, %v2217_v33  ;;  %v2321_v9 = vrot.slane %v2320_v4, 4  ;;  %5426 = vpow2.f32 %v2970_v63  ;;  %v2679_v15 = vsel %vm1913_vm5, %v7520_v35, 0.0 }
 0x57b   : > { %v2923_v35 = vsub.f32 %v8853_v3, %v7472_v31 }
 0x57c   : > { %v2220_v18 = vrot.slane %v2219_v45, 2  ;;  %v2322_v62 = vadd.f32 %v2321_v9, %v2320_v4  ;;  %v2676_v9 = vsel %vm1913_vm5, %v7532_v30, 0.0  ;;  %v2910_v30 = vsub.f32 %v8840_v6, %v7449_v29 }
 0x57d   : > { %v2972_v5 = vmul.f32 1.442695, %v2923_v35 }
 0x57e   : > { %v2323_v41 = vrot.slane %v2322_v62, 2  ;;  %v2221_v57 = vadd.f32 %v2220_v18, %v2219_v45  ;;  %v2568_v8 = vpop.permute.xlu0 %2567  ;;  %v2946_v31 = vmul.f32 1.442695, %v2910_v30 }
 0x57f   : > { %v2598_v18 = vpop.permute.xlu1 %2597 }
 0x580   : > { %v2324_v44 = vadd.f32 %v2323_v41, %v2322_v62  ;;  %v2222_v34 = vrot.slane %v2221_v57, 1  ;;  %v7732_v53 = vpop.eup %5426  ;;  %v2974_v62 = vmul.f32 1.442695, %v2924_v46  ;;  %v2715_v2 = vsel %vm1913_vm5, %v2598_v18, 0.0 }
 0x582   : > { %v2325_v42 = vrot.slane %v2324_v44, 1  ;;  %v2223_v49 = vadd.f32 %v2222_v34, %v2221_v57  ;;  %5428 = vpow2.f32 %v2974_v62  ;;  %v2909_v34 = vsub.f32 %v8841_v17, %v7494_v54 }
 0x583   : > { %5430 = vpow2.f32 %v2972_v5 }
 0x584   : > { %3074 = vrot.lane.b32.xlu0 %v7713_v24, %s5729_s12  ;;  %v2326_v11 = vadd.f32 %v2325_v42, %v2324_v44  ;;  %2225 = vst.msk [vmem:[%s8777_s21] sm:$0x1] %vm2224_vm6, %v2223_v49  ;;  %5432 = vpow2.f32 %v2946_v31  ;;  %v2944_v29 = vmul.f32 1.442695, %v2909_v34  ;;  %v8933_v49 = vld [vmem:[#allocation12_spill] sm:$0xff] }
 0x585   : > { %2674 = vadd.xlane.f32.xlu2 %v2673_v27 }
 0x586   : > { %2327 = vst.msk [vmem:[%s378_s25] sm:$0x1] %vm2224_vm6, %v2326_v11  ;;  %v2566_v33 = vpop.permute.xlu0 %2565  ;;  %v2906_v11 = vsub.f32 %v8933_v49, %v7541_v28  ;;  %5434 = vpow2.f32 %v2944_v29 }
 0x587   : > { %v2602_v41 = vpop.permute.xlu1 %2601  ;;  %v2667_v29 = vsel %vm1913_vm5, %v2566_v33, 0.0  ;;  %v3172_v33 = vsel %vm1913_vm5, %v7617_v48, 0.0 }
 0x588   : > { %v7752_v57 = vpop.eup %5428  ;;  %v2938_v63 = vmul.f32 1.442695, %v2906_v11 }
 0x589   : > { %v7762_v44 = vpop.eup %5430 }
 0x58a   : > { %v7772_v37 = vpop.eup %5432  ;;  %5436 = vpow2.f32 %v2938_v63 }
 0x58c   : > { %3046 = vrot.lane.b32.xlu0 %v7726_v52, %s5729_s12  ;;  %v7778_v54 = vpop.eup %5434 }
 0x58e   : > { %v7736_v56 = vpop.permute.xlu0 %2563 }
 0x58f   : > { %v7766_v42 = vpop.permute.xlu1 %2559  ;;  %v2664_v16 = vsel %vm1913_vm5, %v7736_v56, 0.0 }
 0x596   : > { %v7740_v4 = vpop.permute.xlu0 %2561 }
 0x597   : > { %v2661_v56 = vsel %vm1913_vm5, %v7740_v4, 0.0 }
 0x59d   : > { %3066 = vrot.lane.b32.xlu2 %v7732_v53, %s5729_s12 }
 0x59e   : > { %v7743_v45 = vpop.permute.xlu0 %2603 }
 0x5a3   : > { %2680 = vadd.xlane.f32.xlu1 %v2679_v15  ;;  %v2558_v15 = vpop.permute.xlu1 %2557 }
 0x5a6   : > { %v3097_v21 = vpop.permute.xlu0 %3096 }
 0x5a7   : > { %v3223_v63 = vsel %vm1913_vm5, %v3097_v21, 0.0 }
 0x5ab   : > { %2713 = vadd.xlane.f32.xlu1 %v2712_v39  ;;  %v2556_v28 = vpop.permute.xlu1 %2555 }
 0x5ae   : > { %v7760_v27 = vpop.permute.xlu0 %2607 }
 0x5b3   : > { %v7788_v18 = vpop.permute.xlu1 %3092 }
 0x5b6   : > { %2677 = vadd.xlane.f32.xlu0 %v2676_v9  ;;  %v7774_v32 = vpop.permute.xlu0 %3064  ;;  %v7784_v9 = vpop.eup %5436 }
 0x5bb   : > { %v7792_v35 = vpop.permute.xlu1 %3090 }
 0x5be   : > { %2716 = vadd.xlane.f32.xlu0 %v2715_v2  ;;  %v7782_v39 = vpop.permute.xlu0 %3088  ;;  %v2670_v2 = vsel %vm1913_vm5, %v2568_v8, 0.0  ;;  %v2907_v8 = vsub.f32 %v8898_v20, %v2815_v61  ;;  %v2721_v61 = vsel %vm1913_vm5, %v2602_v41, 0.0  ;;  %v8953_v20 = vld [vmem:[#allocation52_spill] sm:$0xff] }
 0x5c0   : > { %v2940_v3 = vmul.f32 1.442695, %v2907_v8 }
 0x5c3   : > { %v7797_v30 = vpop.permute.xlu1 %2611 }
 0x5c4   : > { %3070 = vrot.lane.b32.xlu1 %v7752_v57, %s5729_s12 }
 0x5c6   : > { %2719 = vadd.xlane.f32.xlu2 %v2718_v12  ;;  %v3061_v46 = vpop.permute.xlu0 %3060  ;;  %v8934_v12 = vld [vmem:[#allocation17_spill] sm:$0xff] }
 0x5c7   : > { %v2908_v31 = vsub.f32 %v8934_v12, %v7506_v58 }
 0x5c9   : > { %v2942_v11 = vmul.f32 1.442695, %v2908_v31 }
 0x5cb   : > { %v7803_v60 = vpop.permute.xlu1 %3086  ;;  %5438 = vpow2.f32 %v2942_v11 }
 0x5cc   : > { %3068 = vrot.lane.b32.xlu1 %v7762_v44, %s5729_s12  ;;  %5440 = vpow2.f32 %v2940_v3 }
 0x5ce   : > { %v7790_v62 = vpop.permute.xlu0 %2613 }
 0x5d1   : > { %v7810_v58 = vpop.eup %5438 }
 0x5d2   : > { %3042 = vrot.lane.b32.xlu0 %v7772_v37, %s5729_s12 }
 0x5d3   : > { %v3059_v21 = vpop.permute.xlu1 %3058 }
 0x5d4   : > { %v3166_v11 = vsel %vm1913_vm5, %v3059_v21, 0.0  ;;  %v2727_v21 = vsel %vm1913_vm5, %v7569_v36, 0.0  ;;  %v3220_v36 = vsel %vm1913_vm5, %v7592_v1, 0.0  ;;  %v2733_v1 = vsel %vm1913_vm5, %v7607_v59, 0.0 }
 0x5d6   : > { %v7795_v5 = vpop.permute.xlu0 %3084 }
 0x5da   : > { %3040 = vrot.lane.b32.xlu0 %v7778_v54, %s5729_s12 }
 0x5db   : > { %v7824_v48 = vpop.xlane.xlu1 %2695 }
 0x5de   : > { %3034 = vrot.lane.b32.xlu2 %v7784_v9, %s5729_s12  ;;  %v2702_v34 = vpop.xlane.xlu0 %2701 }
 0x5df   : > { %5442 = vrcp.f32 %v2702_v34  ;;  %v8936_v34 = vld [vmem:[#allocation55_spill] sm:$0xff] }
 0x5e0   : > { %5444 = vrcp.f32 %v7623_v0 }
 0x5e3   : > { %v3083_v41 = vpop.permute.xlu1 %3082 }
 0x5f6   : > { %2671 = vadd.xlane.f32.xlu1 %v2670_v2  ;;  %v7806_v2 = vpop.xlane.xlu0 %2692 }
 0x5fe   : > { %v7816_v31 = vpop.permute.xlu0 %3054 }
 0x604   : > { %2668 = vadd.xlane.f32.xlu0 %v2667_v29  ;;  %v7819_v29 = vpop.eup %5440 }
 0x606   : > { %v7828_v3 = vpop.permute.xlu0 %3052 }
 0x607   : > { %3224 = vadd.xlane.f32.xlu2 %v3223_v63  ;;  %v2724_v63 = vsel %vm1913_vm5, %v7743_v45, 0.0 }
 0x60c   : > { %2665 = vadd.xlane.f32.xlu0 %v2664_v16  ;;  %v3169_v16 = vsel %vm1913_vm5, %v3061_v46, 0.0  ;;  %v3202_v46 = vsel %vm1913_vm5, %v3083_v41, 0.0  ;;  %v2658_v41 = vsel %vm1913_vm5, %v7766_v42, 0.0  ;;  %v2730_v42 = vsel %vm1913_vm5, %v7760_v27, 0.0 }
 0x60e   : > { %v7834_v8 = vpop.permute.xlu0 %3078 }
 0x60f   : > { %3038 = vrot.lane.b32.xlu1 %v7810_v58, %s5729_s12  ;;  %3173 = vadd.xlane.f32.xlu2 %v3172_v33  ;;  %v3081_v33 = vpop.permute.xlu1 %3080 }
 0x610   : > { %v3199_v4 = vsel %vm1913_vm5, %v3081_v33, 0.0 }
 0x614   : > { %2722 = vadd.xlane.f32.xlu0 %v2721_v61  ;;  %v2655_v61 = vsel %vm1913_vm5, %v2558_v15, 0.0 }
 0x617   : > { %3036 = vrot.lane.b32.xlu1 %v7819_v29, %s5729_s12  ;;  %3170 = vadd.xlane.f32.xlu2 %v3169_v16  ;;  %v7838_v16 = vpop.xlane.xlu0 %2686  ;;  %v2690_v27 = vpop.xlane.xlu1 %2689 }
 0x618   : > { %5446 = vrcp.f32 %v2690_v27 }
 0x619   : > { %5448 = vrcp.f32 %v7824_v48 }
 0x61a   : > { %5450 = vrcp.f32 %v7806_v2 }
 0x61c   : > { %2662 = vadd.xlane.f32.xlu0 %v2661_v56  ;;  %v2652_v56 = vsel %vm1913_vm5, %v2556_v28, 0.0  ;;  %v8937_v28 = vld [vmem:[#allocation48_spill] sm:$0xff] }
 0x61f   : > { %3167 = vadd.xlane.f32.xlu2 %v3166_v11  ;;  %v7842_v45 = vpop.xlane.xlu0 %2710  ;;  %v5443_v11 = vpop.eup %5442 }
 0x620   : > { %v5445_v15 = vpop.eup %5444 }
 0x624   : > { %2725 = vadd.xlane.f32.xlu0 %v2724_v63  ;;  %v8935_v63 = vld [vmem:[#allocation56_spill] sm:$0xff] }
 0x627   : > { %3203 = vadd.xlane.f32.xlu2 %v3202_v46  ;;  %v2794_v46 = vmul.f32 %v5443_v11, %v8935_v63  ;;  %v7849_v33 = vpop.permute.xlu0 %3074  ;;  %v3214_v63 = vsel %vm1913_vm5, %v7792_v35, 0.0  ;;  %v3208_v35 = vsel %vm1913_vm5, %v7803_v60, 0.0 }
 0x62c   : > { %2656 = vadd.xlane.f32.xlu0 %v2655_v61  ;;  %v2793_v61 = vmul.f32 %v5445_v15, %v8936_v34  ;;  %v3175_v15 = vsel %vm1913_vm5, %v7774_v32, 0.0  ;;  %v3077_v34 = vpop.permute.xlu1 %3076 }
 0x62e   : > { %v4994_v0 = vpack.i.bf16 %v2794_v46, %v2793_v61  ;;  %v2739_v61 = vsel %vm1913_vm5, %v7790_v62, 0.0  ;;  %v2742_v62 = vsel %vm1913_vm5, %v7647_v23, 0.0  ;;  %v8938_v23 = vld [vmem:[#allocation58_spill] sm:$0xff] }
 0x62f   : > { %3200 = vadd.xlane.f32.xlu2 %v3199_v4  ;;  %v2649_v4 = vsel %vm1913_vm5, %v8937_v28, 0.0 }
 0x634   : > { %2728 = vadd.xlane.f32.xlu0 %v2727_v21  ;;  %v7857_v21 = vpop.permute.xlu0 %3046 }
 0x63c   : > { %2653 = vadd.xlane.f32.xlu0 %v2652_v56  ;;  %v3217_v56 = vsel %vm1913_vm5, %v7788_v18, 0.0  ;;  %v7865_v11 = vpop.xlane.xlu0 %2677  ;;  %v3211_v18 = vsel %vm1913_vm5, %v7782_v39, 0.0  ;;  %v3049_v39 = vpop.permute.xlu1 %3048 }
 0x641   : > { %2659 = vadd.xlane.f32.xlu1 %v2658_v41  ;;  %v3051_v41 = vpop.permute.xlu2 %3050 }
 0x644   : > { %3221 = vadd.xlane.f32.xlu0 %v3220_v36  ;;  %v7871_v46 = vpop.xlane.xlu0 %2716  ;;  %v2736_v36 = vsel %vm1913_vm5, %v7797_v30, 0.0  ;;  %v3205_v30 = vsel %vm1913_vm5, %v7795_v5, 0.0  ;;  %v2681_v60 = vpop.xlane.xlu1 %2680 }
 0x647   : > { %4995 = vrot.lane.b32.xlu2 %v4994_v0, %s5728_s26 }
 0x649   : > { %2650 = vadd.xlane.f32.xlu1 %v2649_v4  ;;  %v7875_v59 = vpop.xlane.xlu2 %2683 }
 0x64c   : > { %2731 = vadd.xlane.f32.xlu0 %v2730_v42  ;;  %v7879_v32 = vpop.permute.xlu0 %3042  ;;  %v3163_v42 = vsel %vm1913_vm5, %v7633_v7, 0.0  ;;  %v7900_v5 = vpop.xlane.xlu1 %2713  ;;  %v3157_v7 = vsel %vm1913_vm5, %v7828_v3, 0.0  ;;  %v3193_v3 = vsel %vm1913_vm5, %v3077_v34, 0.0  ;;  %v3148_v34 = vsel %vm1913_vm5, %v7857_v21, 0.0 }
 0x64d   : > { %v3142_v2 = vsel %vm1913_vm5, %v7879_v32, 0.0  ;;  %v8942_v32 = vld [vmem:[#allocation64_spill] sm:$0xff] }
 0x651   : > { %3218 = vadd.xlane.f32.xlu1 %v3217_v56  ;;  %v3073_v0 = vpop.permute.xlu2 %3072 }
 0x652   : > { %v3187_v28 = vsel %vm1913_vm5, %v3073_v0, 0.0 }
 0x654   : > { %2734 = vadd.xlane.f32.xlu0 %v2733_v1  ;;  %v7886_v4 = vpop.permute.xlu0 %3040  ;;  %v3160_v1 = vsel %vm1913_vm5, %v7816_v31, 0.0  ;;  %v3154_v31 = vsel %vm1913_vm5, %v3051_v41, 0.0  ;;  %v7910_v27 = vpop.permute.xlu1 %3070  ;;  %v3190_v41 = vsel %vm1913_vm5, %v7849_v33, 0.0 }
 0x659   : > { %3176 = vadd.xlane.f32.xlu1 %v3175_v15 }
 0x65c   : > { %3215 = vadd.xlane.f32.xlu0 %v3214_v63  ;;  %v5447_v63 = vpop.eup %5446 }
 0x661   : > { %3212 = vadd.xlane.f32.xlu1 %v3211_v18  ;;  %v3196_v18 = vsel %vm1913_vm5, %v7834_v8, 0.0  ;;  %v3151_v8 = vsel %vm1913_vm5, %v3049_v39, 0.0 }
 0x664   : > { %2737 = vadd.xlane.f32.xlu0 %v2736_v36  ;;  %v2790_v36 = vmul.f32 %v5447_v63, %v8938_v23  ;;  %v5449_v63 = vpop.eup %5448  ;;  %v8939_v23 = vld [vmem:[#allocation53_spill] sm:$0xff] }
 0x665   : > { %v5451_v21 = vpop.eup %5450 }
 0x669   : > { %3209 = vadd.xlane.f32.xlu1 %v3208_v35 }
 0x66c   : > { %2740 = vadd.xlane.f32.xlu0 %v2739_v61  ;;  %v7913_v61 = vpop.permute.xlu2 %3044 }
 0x670   : > { %3188 = vadd.xlane.f32.xlu2 %v3187_v28  ;;  %v7919_v28 = vpop.permute.xlu1 %3068 }
 0x671   : > { %3206 = vadd.xlane.f32.xlu1 %v3205_v30 }
 0x674   : > { %3164 = vadd.xlane.f32.xlu0 %v3163_v42  ;;  %v7921_v30 = vpop.xlane.xlu2 %2674 }
 0x677   : > { %v7892_v56 = vpop.xlane.xlu0 %2668 }
 0x679   : > { %2743 = vadd.xlane.f32.xlu1 %v2742_v62  ;;  %v7927_v62 = vpop.xlane.xlu1 %2671 }
 0x67c   : > { %3161 = vadd.xlane.f32.xlu0 %v3160_v1  ;;  %v7931_v1 = vpop.permute.xlu2 %3066 }
 0x67f   : > { %v7898_v15 = vpop.xlane.xlu0 %2665 }
 0x681   : > { %3158 = vadd.xlane.f32.xlu1 %v3157_v7  ;;  %v7936_v7 = vpop.permute.xlu1 %3038 }
 0x684   : > { %3197 = vadd.xlane.f32.xlu0 %v3196_v18  ;;  %v7939_v33 = vpop.xlane.xlu2 %2719 }
 0x687   : > { %v7907_v35 = vpop.xlane.xlu0 %2722 }
 0x688   : > { %3348 = vrot.lane.b32.xlu2 %v2790_v36, %s5728_s26  ;;  %v2792_v36 = vmul.f32 %v5449_v63, %v8939_v23 }
 0x689   : > { %3155 = vadd.xlane.f32.xlu1 %v3154_v31  ;;  %v7943_v31 = vpop.permute.xlu1 %3036 }
 0x68c   : > { %3194 = vadd.xlane.f32.xlu0 %v3193_v3  ;;  %v8940_v3 = vld [vmem:[#allocation54_spill] sm:$0xff]  ;;  %v7946_v48 = vpop.permute.xlu2 %3034 }
 0x68f   : > { %v7916_v0 = vpop.xlane.xlu0 %2662 }
 0x691   : > { %3152 = vadd.xlane.f32.xlu1 %v3151_v8  ;;  %v2791_v8 = vmul.f32 %v5451_v21, %v8940_v3 }
 0x694   : > { %3191 = vadd.xlane.f32.xlu0 %v3190_v41  ;;  %v3225_v23 = vpop.xlane.xlu2 %3224 }
 0x697   : > { %v7925_v42 = vpop.xlane.xlu0 %2725 }
 0x69c   : > { %3149 = vadd.xlane.f32.xlu0 %v3148_v34  ;;  %v8941_v34 = vpack.i.bf16 %v7699_v43, %v7704_v26 }
 0x69f   : > { %v7934_v39 = vpop.xlane.xlu0 %2656 }
 0x6a7   : > { %v2729_v18 = vpop.xlane.xlu0 %2728 }
 0x6aa   : > { %3352 = vrot.lane.b32.xlu1 %v2792_v36, %s5728_s26 }
 0x6af   : > { %v7948_v41 = vpop.xlane.xlu0 %2653 }
 0x6b0   : > { %3350 = vrot.lane.b32.xlu0 %v2791_v8, %s5728_s26 }
 0x6b1   : > { %3143 = vadd.xlane.f32.xlu2 %v3142_v2 }
 0x6b2   : > { %5000 = vrot.lane.b32.xlu1 %v8941_v34, %s5728_s26 }
 0x6b4   : > { %v7957_v63 = vpop.xlane.xlu1 %2659 }
 0x6b7   : > { %v3222_v36 = vpop.xlane.xlu0 %3221 }
 0x6b8   : > { %5452 = vrcp.f32 %v3222_v36 }
 0x6b9   : > { %5454 = vrcp.f32 %v3225_v23 }
 0x6ba   : > { %5456 = vrcp.f32 %v2681_v60  ;;  %v8943_v60 = vld [vmem:[#allocation45_spill] sm:$0xff] }
 0x6bc   : > { %v7959_v21 = vpop.xlane.xlu1 %2650 }
 0x6be   : > { %v5453_v3 = vpop.eup %5452 }
 0x6bf   : > { %v2732_v8 = vpop.xlane.xlu0 %2731  ;;  %v5455_v14 = vpop.eup %5454  ;;  %v7962_v2 = vmul.f32 %v5453_v3, %v8942_v32 }
 0x6c0   : > { %5458 = vrcp.f32 %v2732_v8  ;;  %v7965_v43 = vmul.f32 %v5455_v14, %v7362_v10  ;;  %v5457_v26 = vpop.eup %5456  ;;  %v7971_v8 = vpop.xlane.xlu2 %3173  ;;  %v8944_v14 = vld [vmem:[#allocation63_spill] sm:$0xff] }
 0x6c1   : > { %5460 = vrcp.f32 %v2729_v18  ;;  %v2787_v38 = vmul.f32 %v5457_v26, %v8943_v60  ;;  %v8945_v26 = vld [vmem:[#allocation57_spill] sm:$0xff] }
 0x6c2   : > { %5462 = vrcp.f32 %v7865_v11 }
 0x6c4   : > { %v3219_v34 = vpop.xlane.xlu1 %3218 }
 0x6c6   : > { %v5459_v23 = vpop.eup %5458 }
 0x6c7   : > { %v2735_v55 = vpop.xlane.xlu0 %2734  ;;  %v5461_v40 = vpop.eup %5460  ;;  %v7974_v3 = vmul.f32 %v5459_v23, %v7384_v51 }
 0x6c8   : > { %v7978_v10 = vmul.f32 %v5461_v40, %v8944_v14  ;;  %v5463_v18 = vpop.eup %5462  ;;  %v3171_v51 = vpop.xlane.xlu2 %3170 }
 0x6c9   : > { %3342 = vrot.lane.b32.xlu2 %v2787_v38, %s5728_s26  ;;  %v2786_v60 = vmul.f32 %v5463_v18, %v8945_v26 }
 0x6cc   : > { %v3177_v32 = vpop.xlane.xlu1 %3176 }
 0x6cd   : > { %5464 = vrcp.f32 %v3177_v32  ;;  %v3145_v32 = vsel %vm1913_vm5, %v7913_v61, 0.0 }
 0x6ce   : > { %5466 = vrcp.f32 %v3219_v34  ;;  %v3184_v34 = vsel %vm1913_vm5, %v7910_v27, 0.0  ;;  %v3181_v27 = vsel %vm1913_vm5, %v7919_v28, 0.0  ;;  %v8948_v28 = vld [vmem:[#allocation77_spill] sm:$0xff] }
 0x6cf   : > { %v7982_v11 = vpop.xlane.xlu0 %3215 }
 0x6d1   : > { %3340 = vrot.lane.b32.xlu2 %v2786_v60, %s5728_s26  ;;  %v3168_v60 = vpop.xlane.xlu2 %3167 }
 0x6d3   : > { %v5465_v23 = vpop.eup %5464 }
 0x6d4   : > { %v3213_v17 = vpop.xlane.xlu1 %3212  ;;  %v5467_v38 = vpop.eup %5466  ;;  %v7987_v40 = vmul.f32 %v5465_v23, %v7408_v13 }
 0x6d5   : > { %5468 = vrcp.f32 %v3213_v17  ;;  %v7992_v36 = vmul.f32 %v5467_v38, %v7392_v47  ;;  %v8946_v38 = vld [vmem:[#allocation76_spill] sm:$0xff] }
 0x6d6   : > { %5470 = vrcp.f32 %v3171_v51 }
 0x6d7   : > { %v2738_v14 = vpop.xlane.xlu0 %2737 }
 0x6d8   : > { %5472 = vrcp.f32 %v2738_v14 }
 0x6d9   : > { %5474 = vrcp.f32 %v2735_v55 }
 0x6da   : > { %3146 = vadd.xlane.f32.xlu0 %v3145_v32  ;;  %v8947_v32 = vld [vmem:[#allocation65_spill] sm:$0xff] }
 0x6db   : > { %v5469_v18 = vpop.eup %5468 }
 0x6dc   : > { %v3210_v26 = vpop.xlane.xlu1 %3209  ;;  %3185 = vadd.xlane.f32.xlu1 %v3184_v34  ;;  %v5471_v13 = vpop.eup %5470  ;;  %v7999_v61 = vmul.f32 %v5469_v18, %v7432_v22 }
 0x6dd   : > { %5476 = vrcp.f32 %v3210_v26  ;;  %v8006_v23 = vmul.f32 %v5471_v13, %v7451_v25  ;;  %v8949_v13 = vld [vmem:[#allocation79_spill] sm:$0xff] }
 0x6de   : > { %v5473_v51 = vpop.eup %5472  ;;  %5478 = vrcp.f32 %v3168_v60 }
 0x6df   : > { %v8001_v47 = vpop.xlane.xlu0 %2740  ;;  %v5475_v55 = vpop.eup %5474  ;;  %v8009_v14 = vmul.f32 %v5473_v51, %v8946_v38 }
 0x6e0   : > { %v8012_v34 = vmul.f32 %v5475_v55, %v8947_v32  ;;  %v3139_v55 = vsel %vm1913_vm5, %v7886_v4, 0.0  ;;  %v3178_v4 = vsel %vm1913_vm5, %v7931_v1, 0.0 }
 0x6e2   : > { %3182 = vadd.xlane.f32.xlu0 %v3181_v27  ;;  %v8952_v27 = vld [vmem:[#allocation59_spill] sm:$0xff] }
 0x6e3   : > { %v5477_v18 = vpop.eup %5476 }
 0x6e4   : > { %v3207_v26 = vpop.xlane.xlu1 %3206  ;;  %v5479_v17 = vpop.eup %5478  ;;  %v8019_v6 = vmul.f32 %v5477_v18, %v8948_v28 }
 0x6e5   : > { %v8023_v51 = vmul.f32 %v5479_v17, %v8949_v13  ;;  %v8951_v13 = vld [vmem:[#allocation80_spill] sm:$0xff] }
 0x6e7   : > { %v3165_v25 = vpop.xlane.xlu0 %3164 }
 0x6e8   : > { %5480 = vrcp.f32 %v3165_v25 }
 0x6e9   : > { %5482 = vrcp.f32 %v7838_v16  ;;  %v3204_v16 = vpop.xlane.xlu2 %3203 }
 0x6ea   : > { %5484 = vrcp.f32 %v3207_v26  ;;  %3140 = vadd.xlane.f32.xlu0 %v3139_v55  ;;  %v8950_v26 = vld [vmem:[#allocation73_spill] sm:$0xff] }
 0x6eb   : > { %5486 = vrcp.f32 %v7900_v5 }
 0x6ec   : > { %v8029_v38 = vpop.xlane.xlu1 %2743  ;;  %5488 = vrcp.f32 %v7842_v45 }
 0x6ee   : > { %v5481_v32 = vpop.eup %5480 }
 0x6ef   : > { %v5483_v18 = vpop.eup %5482  ;;  %v3162_v28 = vpop.xlane.xlu0 %3161  ;;  %v8036_v25 = vmul.f32 %v5481_v32, %v8950_v26 }
 0x6f0   : > { %v5485_v17 = vpop.eup %5484  ;;  %5490 = vrcp.f32 %v3162_v28  ;;  %v2789_v5 = vmul.f32 %v5483_v18, %v8952_v27  ;;  %v8956_v18 = vld [vmem:[#allocation82_spill] sm:$0xff] }
 0x6f1   : > { %5492 = vrcp.f32 %v3204_v16  ;;  %v8039_v55 = vmul.f32 %v5485_v17, %v8951_v13  ;;  %v5487_v22 = vpop.eup %5486  ;;  %v8954_v16 = vld [vmem:[#allocation61_spill] sm:$0xff]  ;;  %v3130_v17 = vsel %vm1913_vm5, %v7946_v48, 0.0  ;;  %v8955_v13 = vld [vmem:[#allocation83_spill] sm:$0xff] }
 0x6f2   : > { %3179 = vadd.xlane.f32.xlu0 %v3178_v4  ;;  %v5489_v45 = vpop.eup %5488  ;;  %v2798_v32 = vmul.f32 %v5487_v22, %v8953_v20  ;;  %5494 = vrcp.f32 %v7875_v59 }
 0x6f3   : > { %v2797_v4 = vmul.f32 %v5489_v45, %v8954_v16 }
 0x6f4   : > { %v8042_v60 = vpop.xlane.xlu1 %3158 }
 0x6f5   : > { %3346 = vrot.lane.b32.xlu1 %v2789_v5, %s5728_s26  ;;  %v5004_v28 = vpack.i.bf16 %v2798_v32, %v2797_v4  ;;  %v3201_v4 = vpop.xlane.xlu2 %3200 }
 0x6f6   : > { %v5491_v1 = vpop.eup %5490 }
 0x6f7   : > { %v5493_v26 = vpop.eup %5492  ;;  %v8052_v27 = vmul.f32 %v5491_v1, %v8955_v13  ;;  %v3198_v12 = vpop.xlane.xlu0 %3197  ;;  %v8957_v1 = vld [vmem:[#allocation60_spill] sm:$0xff] }
 0x6f8   : > { %v8056_v5 = vmul.f32 %v5493_v26, %v8956_v18  ;;  %v5495_v48 = vpop.eup %5494 }
 0x6f9   : > { %v2788_v59 = vmul.f32 %v5495_v48, %v8957_v1 }
 0x6fa   : > { %3131 = vadd.xlane.f32.xlu2 %v3130_v17 }
 0x6fc   : > { %v3156_v49 = vpop.xlane.xlu1 %3155 }
 0x6fd   : > { %5005 = vrot.lane.b32.xlu1 %v5004_v28, %s5728_s26  ;;  %5496 = vrcp.f32 %v3156_v49  ;;  %v8958_v28 = vld [vmem:[#allocation81_spill] sm:$0xff] }
 0x6fe   : > { %5498 = vrcp.f32 %v3198_v12  ;;  %v8959_v12 = vld [vmem:[#allocation86_spill] sm:$0xff] }
 0x6ff   : > { %5500 = vrcp.f32 %v7925_v42  ;;  %v3195_v26 = vpop.xlane.xlu0 %3194 }
 0x700   : > { %5502 = vrcp.f32 %v7907_v35  ;;  %v8960_v35 = vld [vmem:[#allocation44_spill] sm:$0xff] }
 0x703   : > { %v5497_v22 = vpop.eup %5496 }
 0x704   : > { %v3153_v45 = vpop.xlane.xlu1 %3152  ;;  %v5499_v16 = vpop.eup %5498  ;;  %v8066_v32 = vmul.f32 %v5497_v22, %v8958_v28 }
 0x705   : > { %5504 = vrcp.f32 %v3153_v45  ;;  %v5501_v49 = vpop.eup %5500  ;;  %v8069_v17 = vmul.f32 %v5499_v16, %v8959_v12  ;;  %v8961_v45 = vld [vmem:[#allocation68_spill] sm:$0xff]  ;;  %v8082_v28 = vpop.permute.xlu2 %4995 }
 0x706   : > { %3344 = vrot.lane.b32.xlu0 %v2788_v59, %s5728_s26  ;;  %5506 = vrcp.f32 %v3195_v26  ;;  %v5503_v42 = vpop.eup %5502  ;;  %v2802_v48 = vmul.f32 %v5501_v49, %v8960_v35  ;;  %v8963_v35 = vld [vmem:[#allocation75_spill] sm:$0xff]  ;;  %v8965_v49 = vld [vmem:[#allocation74_spill] sm:$0xff] }
 0x707   : > { %v5074_v13 = vpack.i.bf16 %v8066_v32, %v8069_v17  ;;  %v2801_v20 = vmul.f32 %v5503_v42, %v8961_v45  ;;  %5508 = vrcp.f32 %v7959_v21  ;;  %v3192_v59 = vpop.xlane.xlu0 %3191  ;;  %v8962_v21 = vld [vmem:[#allocation50_spill] sm:$0xff]  ;;  %v4997_v32 = vunpack.i.l.bf16 %v8082_v28 }
 0x708   : > { %5510 = vrcp.f32 %v7982_v11 }
 0x709   : > { %v5014_v26 = vpack.i.bf16 %v2802_v48, %v2801_v20  ;;  %5512 = vrcp.f32 %v7971_v8 }
 0x70a   : > { %5514 = vrcp.f32 %v8029_v38 }
 0x70b   : > { %v5505_v18 = vpop.eup %5504  ;;  %5516 = vrcp.f32 %v8001_v47  ;;  %v3136_v47 = vsel %vm1913_vm5, %v7936_v7, 0.0 }
 0x70c   : > { %v5507_v1 = vpop.eup %5506  ;;  %v8077_v22 = vmul.f32 %v5505_v18, %v7695_v19  ;;  %5518 = vrcp.f32 %v8042_v60 }
 0x70d   : > { %v8080_v16 = vmul.f32 %v5507_v1, %v7680_v50  ;;  %v5509_v12 = vpop.eup %5508  ;;  %v8090_v18 = vpop.xlane.xlu2 %3188  ;;  %v8964_v1 = vld [vmem:[#allocation66_spill] sm:$0xff]  ;;  %5520 = vrcp.f32 %v3201_v4  ;;  %v3133_v4 = vsel %vm1913_vm5, %v7943_v31, 0.0 }
 0x70e   : > { %v2777_v19 = vmul.f32 %v5509_v12, %v8962_v21  ;;  %v5511_v42 = vpop.eup %5510 }
 0x70f   : > { %v3150_v20 = vpop.xlane.xlu0 %3149  ;;  %v5513_v50 = vpop.eup %5512  ;;  %v3286_v48 = vmul.f32 %v5511_v42, %v8963_v35  ;;  %v8966_v42 = vld [vmem:[#allocation78_spill] sm:$0xff] }
 0x710   : > { %v3272_v45 = vmul.f32 %v5513_v50, %v8964_v1  ;;  %5522 = vrcp.f32 %v3150_v20  ;;  %v8967_v1 = vld [vmem:[#allocation85_spill] sm:$0xff] }
 0x711   : > { %5524 = vrcp.f32 %v3192_v59 }
 0x712   : > { %5015 = vrot.lane.b32.xlu2 %v5014_v26, %s5728_s26  ;;  %v5039_v8 = vpack.i.bf16 %v3272_v45, %v3286_v48  ;;  %v5515_v26 = vpop.eup %5514  ;;  %v8968_v45 = vld [vmem:[#allocation84_spill] sm:$0xff]  ;;  %5526 = vrcp.f32 %v7921_v30 }
 0x713   : > { %v5517_v21 = vpop.eup %5516  ;;  %v2808_v38 = vmul.f32 %v5515_v26, %v8965_v49  ;;  %5528 = vrcp.f32 %v7939_v33  ;;  %v8972_v33 = vld [vmem:[#allocation51_spill] sm:$0xff] }
 0x714   : > { %v2807_v35 = vmul.f32 %v5517_v21, %v8966_v42  ;;  %v5519_v48 = vpop.eup %5518  ;;  %5530 = vrcp.f32 %v7871_v46  ;;  %v8970_v42 = vld [vmem:[#allocation49_spill] sm:$0xff] }
 0x715   : > { %v3267_v60 = vmul.f32 %v5519_v48, %v8967_v1  ;;  %5532 = vrcp.f32 %v7927_v62  ;;  %v8973_v62 = vld [vmem:[#allocation67_spill] sm:$0xff] }
 0x716   : > { %v5054_v50 = vpack.i.bf16 %v2808_v38, %v2807_v35  ;;  %v8969_v38 = vld [vmem:[#allocation62_spill] sm:$0xff]  ;;  %5534 = vrcp.f32 %v7892_v56 }
 0x717   : > { %v8971_v35 = vld [vmem:[#allocation46_spill] sm:$0xff]  ;;  %5536 = vrcp.f32 %v7898_v15  ;;  %v8975_v15 = vld [vmem:[#allocation69_spill] sm:$0xff] }
 0x718   : > { %5538 = vrcp.f32 %v7916_v0 }
 0x719   : > { %5540 = vrcp.f32 %v7957_v63  ;;  %v8977_v63 = vld [vmem:[#allocation71_spill] sm:$0xff] }
 0x71a   : > { %3322 = vrot.lane.b32.xlu2 %v2777_v19, %s5728_s26  ;;  %v3349_v19 = vpop.permute.xlu2 %3348  ;;  %5542 = vrcp.f32 %v7934_v39 }
 0x71c   : > { %v3353_v11 = vpop.permute.xlu1 %3352 }
 0x71d   : > { %4793 = vmatpush.lsf.msrb.mxu1 %v3353_v11  ;;  %v5521_v11 = vpop.eup %5520 }
 0x71e   : > { %v5523_v7 = vpop.eup %5522 }
 0x71f   : > { %v5525_v26 = vpop.eup %5524 }
 0x720   : > { %v3278_v20 = vmul.f32 %v5525_v26, %v7713_v24  ;;  %v5527_v21 = vpop.eup %5526 }
 0x721   : > { %v5529_v31 = vpop.eup %5528  ;;  %v2785_v30 = vmul.f32 %v5527_v21, %v8970_v42  ;;  %v8979_v42 = vpack.i.bf16 %v7962_v2, %v7965_v43  ;;  %v8983_v43 = vpack.i.bf16 %v8006_v23, %v7999_v61  ;;  %v8986_v61 = vpack.i.bf16 %v8052_v27, %v8056_v5 }
 0x722   : > { %v3351_v12 = vpop.permute.xlu0 %3350  ;;  %5040 = vrot.lane.b32.xlu2 %v5039_v8, %s5729_s12  ;;  %v3281_v8 = vmul.f32 %v5521_v11, %v8968_v45 }
 0x723   : > { %4794 = vmatpush.lsf.msrb.mxu1 %v3351_v12  ;;  %v3264_v12 = vmul.f32 %v5523_v7, %v7726_v52  ;;  %v8976_v7 = vld [vmem:[#allocation70_spill] sm:$0xff] }
 0x724   : > { %v5069_v49 = vpack.i.bf16 %v3267_v60, %v3281_v8  ;;  %v8974_v60 = vld [vmem:[#allocation47_spill] sm:$0xff] }
 0x725   : > { %4795 = vmatpush.lsf.msrb.mxu1 %v3349_v19  ;;  %v5084_v59 = vpack.i.bf16 %v3264_v12, %v3278_v20  ;;  %v5531_v19 = vpop.eup %5530  ;;  %v8135_v20 = vpop.permute.xlu1 %5000 }
 0x726   : > { %v2799_v52 = vmul.f32 %v5531_v19, %v8971_v35  ;;  %v5533_v46 = vpop.eup %5532  ;;  %v8980_v35 = vld [vmem:[#allocation72_spill] sm:$0xff] }
 0x727   : > { %3137 = vadd.xlane.f32.xlu1 %v3136_v47  ;;  %v2800_v47 = vmul.f32 %v5529_v31, %v8969_v38  ;;  %v5535_v48 = vpop.eup %5534  ;;  %v8978_v31 = vpack.i.bf16 %v7974_v3, %v7978_v10  ;;  %v8981_v3 = vpack.i.bf16 %v7987_v40, %v7992_v36  ;;  %v8985_v40 = vpack.i.bf16 %v8036_v25, %v8039_v55  ;;  %v8988_v25 = vld [vmem:[#allocation87_spill] sm:$0xff] }
 0x728   : > { %v2783_v11 = vmul.f32 %v5535_v48, %v8973_v62  ;;  %v5537_v1 = vpop.eup %5536 }
 0x729   : > { %v5009_v24 = vpack.i.bf16 %v2800_v47, %v2799_v52  ;;  %v2782_v45 = vmul.f32 %v5537_v1, %v8974_v60  ;;  %v5539_v8 = vpop.eup %5538 }
 0x72a   : > { %5055 = vrot.lane.b32.xlu2 %v5054_v50, %s5728_s26  ;;  %v2784_v50 = vmul.f32 %v5533_v46, %v8972_v33  ;;  %v3144_v33 = vpop.xlane.xlu2 %3143 }
 0x730   : > { %3134 = vadd.xlane.f32.xlu0 %v3133_v4  ;;  %v2781_v4 = vmul.f32 %v5539_v8, %v8975_v15 }
 0x732   : > { %5070 = vrot.lane.b32.xlu2 %v5069_v49, %s5729_s12  ;;  %v5541_v49 = vpop.eup %5540 }
 0x733   : > { %v2780_v26 = vmul.f32 %v5541_v49, %v8976_v7  ;;  %v5543_v12 = vpop.eup %5542 }
 0x73a   : > { %5085 = vrot.lane.b32.xlu2 %v5084_v59, %s5729_s12  ;;  %v2779_v59 = vmul.f32 %v5543_v12, %v8977_v63  ;;  %v8991_v63 = vld [vmem:[#allocation17_spill] sm:$0xff] }
 0x740   : > { %3338 = vrot.lane.b32.xlu1 %v2785_v30, %s5728_s26 }
 0x744   : > { %5010 = vrot.lane.b32.xlu0 %v5009_v24, %s5728_s26 }
 0x748   : > { %3336 = vrot.lane.b32.xlu1 %v2784_v50, %s5728_s26  ;;  %v8984_v50 = vpack.i.bf16 %v8023_v51, %v8019_v6 }
 0x74c   : > { %3334 = vrot.lane.b32.xlu0 %v2783_v11, %s5728_s26  ;;  %v4998_v11 = vunpack.i.h.bf16 %v8082_v28  ;;  %v5003_v28 = vunpack.i.h.bf16 %v8135_v20 }
 0x74d   : > { %v3147_v56 = vpop.xlane.xlu0 %3146 }
 0x74f   : > { %v3186_v21 = vpop.xlane.xlu1 %3185 }
 0x750   : > { %3332 = vrot.lane.b32.xlu1 %v2782_v45, %s5728_s26 }
 0x754   : > { %3330 = vrot.lane.b32.xlu0 %v2781_v4, %s5728_s26 }
 0x755   : > { %v3183_v0 = vpop.xlane.xlu0 %3182 }
 0x756   : > { %5544 = vrcp.f32 %v3183_v0 }
 0x757   : > { %5546 = vrcp.f32 %v7948_v41 }
 0x758   : > { %3328 = vrot.lane.b32.xlu1 %v2780_v26, %s5728_s26 }
 0x75c   : > { %3326 = vrot.lane.b32.xlu0 %v2779_v59, %s5728_s26  ;;  %v5545_v19 = vpop.eup %5544 }
 0x75d   : > { %v3141_v39 = vpop.xlane.xlu0 %3140  ;;  %v5547_v38 = vpop.eup %5546  ;;  %v3275_v30 = vmul.f32 %v5545_v19, %v7762_v44  ;;  %v8982_v44 = vpack.i.bf16 %v8009_v14, %v8012_v34  ;;  %v8987_v14 = vld [vmem:[#allocation88_spill] sm:$0xff] }
 0x75e   : > { %5548 = vrcp.f32 %v3141_v39  ;;  %v2778_v52 = vmul.f32 %v5547_v38, %v8980_v35 }
 0x75f   : > { %5550 = vrcp.f32 %v3147_v56 }
 0x760   : > { %5020 = vrot.lane.b32.xlu1 %v8978_v31, %s5728_s26  ;;  %5552 = vrcp.f32 %v8090_v18  ;;  %v8989_v18 = vpack.i.bf16 %v8077_v22, %v8080_v16  ;;  %v8994_v31 = vld [vmem:[#allocation21_spill] sm:$0xff] }
 0x761   : > { %5554 = vrcp.f32 %v3186_v21  ;;  %v8993_v21 = vld [vmem:[#allocation23_spill] sm:$0xff] }
 0x762   : > { %5556 = vrcp.f32 %v3144_v33  ;;  %v8998_v33 = vld [vmem:[#allocation33_spill] sm:$0xff] }
 0x764   : > { %v5549_v47 = vpop.eup %5548  ;;  %5025 = vrot.lane.b32.xlu0 %v8979_v42, %s5729_s12  ;;  %v8995_v42 = vld [vmem:[#allocation30_spill] sm:$0xff] }
 0x765   : > { %v3261_v41 = vmul.f32 %v5549_v47, %v7778_v54  ;;  %v3180_v2 = vpop.xlane.xlu0 %3179  ;;  %v3343_v54 = vpop.permute.xlu2 %3342 }
 0x766   : > { %v5551_v6 = vpop.eup %5550  ;;  %5558 = vrcp.f32 %v3180_v2 }
 0x767   : > { %v3347_v24 = vpop.permute.xlu1 %3346  ;;  %v5099_v46 = vpack.i.bf16 %v3261_v41, %v3275_v30  ;;  %v5553_v23 = vpop.eup %5552  ;;  %v3263_v34 = vmul.f32 %v5551_v6, %v8987_v14  ;;  %v8996_v30 = vld [vmem:[#allocation31_spill] sm:$0xff] }
 0x768   : > { %3324 = vrot.lane.b32.xlu1 %v2778_v52, %s5728_s26  ;;  %4796 = vmatpush.lsf.msrb.mxu1 %v3347_v24  ;;  %v5555_v51 = vpop.eup %5554  ;;  %v3277_v55 = vmul.f32 %v5553_v23, %v8988_v25  ;;  %v9001_v14 = vld [vmem:[#allocation43_spill] sm:$0xff] }
 0x769   : > { %5100 = vrot.lane.b32.xlu2 %v5099_v46, %s5729_s12  ;;  %v5557_v27 = vpop.eup %5556  ;;  %v3276_v5 = vmul.f32 %v5555_v51, %v7752_v57  ;;  %v5002_v57 = vunpack.i.l.bf16 %v8135_v20  ;;  %v8997_v46 = vld [vmem:[#allocation35_spill] sm:$0xff]  ;;  %v9002_v51 = vld [vmem:[#allocation41_spill] sm:$0xff] }
 0x76a   : > { %v5089_v48 = vpack.i.bf16 %v3263_v34, %v3277_v55  ;;  %v3262_v62 = vmul.f32 %v5557_v27, %v7772_v37 }
 0x76c   : > { %5030 = vrot.lane.b32.xlu0 %v8981_v3, %s5729_s12  ;;  %v5094_v17 = vpack.i.bf16 %v3262_v62, %v3276_v5  ;;  %v5559_v16 = vpop.eup %5558 }
 0x76d   : > { %v3341_v36 = vpop.permute.xlu2 %3340  ;;  %v3274_v56 = vmul.f32 %v5559_v16, %v7732_v53  ;;  %v8990_v53 = vld [vmem:[#allocation12_spill] sm:$0xff] }
 0x770   : > { %5035 = vrot.lane.b32.xlu1 %v8982_v44, %s5728_s26  ;;  %s5730_s26 = smov 96  }
 0x774   : > { %5045 = vrot.lane.b32.xlu0 %v8983_v43, %s5729_s12  ;;  %v8999_v43 = vld [vmem:[#allocation39_spill] sm:$0xff] }
 0x775   : > { %v3132_v1 = vpop.xlane.xlu2 %3131 }
 0x778   : > { %v3345_v10 = vpop.permute.xlu0 %3344  ;;  %5050 = vrot.lane.b32.xlu1 %v8984_v50, %s5729_s12 }
 0x779   : > { %4797 = vmatpush.lsf.msrb.mxu1 %v3345_v10  ;;  %v9000_v10 = vld [vmem:[#allocation37_spill] sm:$0xff] }
 0x77b   : > { %4798 = vmatpush.lsf.msrb.mxu1 %v3343_v54 }
 0x77c   : > { %5060 = vrot.lane.b32.xlu0 %v8985_v40, %s5729_s12 }
 0x77d   : > { %4799 = vmatpush.lsf.msrb.mxu1 %v3341_v36  ;;  %v5016_v41 = vpop.permute.xlu2 %5015 }
 0x77e   : > { %v5017_v52 = vunpack.i.l.bf16 %v5016_v41  ;;  %v5018_v44 = vunpack.i.h.bf16 %v5016_v41 }
 0x780   : > { %5065 = vrot.lane.b32.xlu1 %v8986_v61, %s5729_s12 }
 0x784   : > { %5075 = vrot.lane.b32.xlu0 %v5074_v13, %s5729_s12  ;;  %v5006_v13 = vpop.permute.xlu1 %5005 }
 0x785   : > { %v5007_v7 = vunpack.i.l.bf16 %v5006_v13  ;;  %v5008_v12 = vunpack.i.h.bf16 %v5006_v13  ;;  %v3323_v3 = vpop.permute.xlu2 %3322  ;;  %v9004_v13 = vld [vmem:[#allocation13_spill] sm:$0xff] }
 0x788   : > { %5080 = vrot.lane.b32.xlu1 %v8989_v18, %s5729_s12 }
 0x78c   : > { %5090 = vrot.lane.b32.xlu0 %v5089_v48, %s5729_s12 }
 0x78d   : > { %v5041_v61 = vpop.permute.xlu2 %5040 }
 0x78e   : > { %v5043_v55 = vunpack.i.h.bf16 %v5041_v61  ;;  %v5042_v18 = vunpack.i.l.bf16 %v5041_v61 }
 0x78f   : > { %3450 = vxpose.xlu2.b32.start [1/16] (narrow) %v4997_v32, 16  ;;  %v9003_v32 = vld [vmem:[#allocation16_spill] sm:$0xff] }
 0x790   : > { %5095 = vrot.lane.b32.xlu1 %v5094_v17, %s5729_s12 }
 0x795   : > { %v8229_v5 = vpop.permute.xlu2 %5055 }
 0x797   : > { %3451 = vxpose.xlu2.b32.cont [2/16] (narrow) %v4998_v11, 16 }
 0x79a   : > { %v3138_v22 = vpop.xlane.xlu1 %3137 }
 0x79b   : > { %5560 = vrcp.f32 %v3138_v22 }
 0x79c   : > { %5562 = vrcp.f32 %v3132_v1 }
 0x79f   : > { %3452 = vxpose.xlu2.b32.cont [3/16] (narrow) %v5002_v57, 16 }
 0x7a1   : > { %v5561_v37 = vpop.eup %5560 }
 0x7a2   : > { %v3260_v60 = vmul.f32 %v5561_v37, %v7810_v58  ;;  %v5563_v15 = vpop.eup %5562 }
 0x7a3   : > { %v3135_v45 = vpop.xlane.xlu0 %3134  ;;  %v3258_v49 = vmul.f32 %v5563_v15, %v7784_v9  ;;  %v8992_v9 = vld [vmem:[#allocation15_spill] sm:$0xff] }
 0x7a4   : > { %5564 = vrcp.f32 %v3135_v45  ;;  %v5104_v8 = vpack.i.bf16 %v3260_v60, %v3274_v56  ;;  %v9005_v56 = vld [vmem:[#allocation24_spill] sm:$0xff]  ;;  %v9006_v45 = vld [vmem:[#allocation18_spill] sm:$0xff] }
 0x7a6   : > { %5105 = vrot.lane.b32.xlu0 %v5104_v8, %s5729_s12 }
 0x7a7   : > { %3453 = vxpose.xlu2.b32.cont [4/16] (narrow) %v5003_v28, 16  ;;  %v5071_v28 = vpop.permute.xlu2 %5070 }
 0x7aa   : > { %v5565_v4 = vpop.eup %5564 }
 0x7ab   : > { %v3259_v0 = vmul.f32 %v5565_v4, %v7819_v29 }
 0x7ad   : > { %v5109_v26 = vpack.i.bf16 %v3258_v49, %v3259_v0  ;;  %v5073_v0 = vunpack.i.h.bf16 %v5071_v28 }
 0x7ae   : > { %3688 = vrot.lane.b32.xlu0 %v8990_v53, %s5730_s26  ;;  %v9007_v53 = vld [vmem:[#allocation26_spill] sm:$0xff] }
 0x7af   : > { %5110 = vrot.lane.b32.xlu1 %v5109_v26, %s5729_s12  ;;  %3454 = vxpose.xlu2.b32.cont [5/16] (narrow) %v5007_v7, 16  ;;  %s8329_s12 = scalar_lea.vmem %s8623_s6, %s5842_s28  ;;  %s4356_s28 = sand.u32 1, %s5808_s17  }
 0x7b0   : > { %s8449_s18 = scalar_lea.sflag [#allocation5], %s4356_s28 }
 0x7b2   : > { %v3339_v58 = vpop.permute.xlu1 %3338 }
 0x7b3   : > { %4800 = vmatpush.lsf.msrb.mxu1 %v3339_v58  ;;  %v5072_v58 = vunpack.i.l.bf16 %v5071_v28 }
 0x7b6   : > { %v5011_v20 = vpop.permute.xlu0 %5010  ;;  %3692 = vrot.lane.b32.xlu0 %v8991_v63, %s5730_s26 }
 0x7b7   : > { %3690 = vrot.lane.b32.xlu1 %v8992_v9, %s5730_s26  ;;  %3455 = vxpose.xlu2.b32.cont [6/16] (narrow) %v5008_v12, 16  ;;  %v5012_v59 = vunpack.i.l.bf16 %v5011_v20  ;;  %v5013_v38 = vunpack.i.h.bf16 %v5011_v20  ;;  %v9008_v20 = vld [vmem:[#allocation27_spill] sm:$0xff]  ;;  %v5086_v9 = vpop.permute.xlu2 %5085 }
 0x7ba   : > { %v3337_v29 = vpop.permute.xlu1 %3336 }
 0x7bb   : > { %4801 = vmatpush.lsf.msrb.mxu1 %v3337_v29 }
 0x7be   : > { %v3335_v39 = vpop.permute.xlu0 %3334  ;;  %3696 = vrot.lane.b32.xlu0 %v8993_v21, %s5730_s26  ;;  %v5088_v21 = vunpack.i.h.bf16 %v5086_v9 }
 0x7bf   : > { %4802 = vmatpush.lsf.msrb.mxu1 %v3335_v39  ;;  %3694 = vrot.lane.b32.xlu1 %v8994_v31, %s5730_s26  ;;  %v5057_v31 = vunpack.i.l.bf16 %v8229_v5 }
 0x7c0   : > { %3456 = vxpose.xlu2.b32.cont [7/16] (narrow) %v5012_v59, 16 }
 0x7c2   : > { %v3333_v19 = vpop.permute.xlu1 %3332 }
 0x7c3   : > { %4803 = vmatpush.lsf.msrb.mxu1 %v3333_v19 }
 0x7c6   : > { %v3331_v47 = vpop.permute.xlu0 %3330  ;;  %3700 = vrot.lane.b32.xlu0 %v8995_v42, %s5730_s26 }
 0x7c7   : > { %4804 = vmatpush.lsf.msrb.mxu1 %v3331_v47  ;;  %3698 = vrot.lane.b32.xlu1 %v8996_v30, %s5730_s26  ;;  %v5087_v47 = vunpack.i.l.bf16 %v5086_v9  ;;  %v9010_v30 = vld [vmem:[#allocation29_spill] sm:$0xff] }
 0x7c8   : > { %3457 = vxpose.xlu2.b32.cont [8/16] (narrow) %v5013_v38, 16  ;;  %v9009_v38 = vld [vmem:[#allocation14_spill] sm:$0xff] }
 0x7ca   : > { %v3329_v35 = vpop.permute.xlu1 %3328 }
 0x7cb   : > { %4805 = vmatpush.lsf.msrb.mxu1 %v3329_v35  ;;  %v5101_v35 = vpop.permute.xlu2 %5100 }
 0x7ce   : > { %v3327_v24 = vpop.permute.xlu0 %3326  ;;  %3704 = vrot.lane.b32.xlu0 %v8997_v46, %s5730_s26 }
 0x7cf   : > { %4806 = vmatpush.lsf.msrb.mxu1 %v3327_v24  ;;  %3702 = vrot.lane.b32.xlu1 %v8998_v33, %s5730_s26  ;;  %v5103_v33 = vunpack.i.h.bf16 %v5101_v35 }
 0x7d0   : > { %3458 = vxpose.xlu2.b32.cont [9/16] (narrow) %v5017_v52, 16 }
 0x7d2   : > { %v5021_v2 = vpop.permute.xlu1 %5020 }
 0x7d3   : > { %v5022_v6 = vunpack.i.l.bf16 %v5021_v2  ;;  %v5023_v48 = vunpack.i.h.bf16 %v5021_v2  ;;  %v9011_v2 = vld [vmem:[#allocation19_spill] sm:$0xff] }
 0x7d6   : > { %v5026_v54 = vpop.permute.xlu0 %5025  ;;  %3708 = vrot.lane.b32.xlu0 %v8999_v43, %s5730_s26  ;;  %v9013_v43 = vld [vmem:[#allocation25_spill] sm:$0xff] }
 0x7d7   : > { %3706 = vrot.lane.b32.xlu1 %v9000_v10, %s5730_s26  ;;  %v5027_v50 = vunpack.i.l.bf16 %v5026_v54  ;;  %v5028_v36 = vunpack.i.h.bf16 %v5026_v54  ;;  %v9012_v54 = vld [vmem:[#allocation20_spill] sm:$0xff]  ;;  %v9014_v10 = vld [vmem:[#allocation22_spill] sm:$0xff] }
 0x7d8   : > { %3459 = vxpose.xlu2.b32.cont [10/16] (narrow) %v5018_v44, 16  ;;  %v5102_v44 = vunpack.i.l.bf16 %v5101_v35 }
 0x7d9   : > { %3633 = vmatpush.msrb.mxu2 %v5027_v50  ;;  %v9015_v50 = vld [vmem:[#allocation32_spill] sm:$0xff] }
 0x7da   : > { %v3325_v40 = vpop.permute.xlu1 %3324 }
 0x7db   : > { %3634 = vmatpush.msrb.mxu2 %v5028_v36  ;;  %4807 = vmatpush.lsf.msrb.mxu1 %v3325_v40  ;;  %v9016_v36 = vld [vmem:[#allocation28_spill] sm:$0xff] }
 0x7dd   : > { %4808 = vmatpush.lsf.msrb.mxu1 %v3323_v3  ;;  %v5058_v3 = vunpack.i.h.bf16 %v8229_v5  ;;  %v9021_v5 = vld [vmem:[#allocation42_spill] sm:$0xff] }
 0x7de   : > { %v5031_v23 = vpop.permute.xlu0 %5030  ;;  %3712 = vrot.lane.b32.xlu0 %v9001_v14, %s5730_s26  ;;  %4809 = vllmr.2.mxu1  ;;  %v9018_v14 = vld [vmem:[#allocation34_spill] sm:$0xff] }
 0x7df   : > { %v5033_v34 = vunpack.i.h.bf16 %v5031_v23  ;;  %3710 = vrot.lane.b32.xlu1 %v9002_v51, %s5730_s26  ;;  %v5032_v25 = vunpack.i.l.bf16 %v5031_v23  ;;  %v9017_v23 = vld [vmem:[#allocation36_spill] sm:$0xff] }
 0x7e0   : > { %3460 = vxpose.xlu2.b32.cont [11/16] (narrow) %v5022_v6, 16 }
 0x7e1   : > { %3610 = vmatpush.msra.mxu1 %v5033_v34  ;;  %3635 = vmatpush.msrb.mxu2 %v5032_v25 }
 0x7e2   : > { %v5036_v27 = vpop.permute.xlu1 %5035 }
 0x7e3   : > { %3611 = vmatpush.msra.mxu1 %v5043_v55  ;;  %3636 = vmatpush.msrb.mxu2 %v5042_v18  ;;  %v5037_v1 = vunpack.i.l.bf16 %v5036_v27  ;;  %v5038_v7 = vunpack.i.h.bf16 %v5036_v27  ;;  %v9019_v55 = vld [vmem:[#allocation40_spill] sm:$0xff]  ;;  %v9020_v18 = vld [vmem:[#allocation38_spill] sm:$0xff] }
 0x7e6   : > { %v5046_v62 = vpop.permute.xlu0 %5045  ;;  %3716 = vrot.lane.b32.xlu0 %v9003_v32, %s5730_s26 }
 0x7e7   : > { %v5048_v17 = vunpack.i.h.bf16 %v5046_v62  ;;  %3714 = vrot.lane.b32.xlu1 %v9004_v13, %s5730_s26  ;;  %v5047_v11 = vunpack.i.l.bf16 %v5046_v62 }
 0x7e8   : > { %3461 = vxpose.xlu2.b32.cont [12/16] (narrow) %v5023_v48, 16 }
 0x7e9   : > { %3612 = vmatpush.msra.mxu1 %v5048_v17  ;;  %3637 = vmatpush.msrb.mxu2 %v5047_v11 }
 0x7ea   : > { %v5051_v22 = vpop.permute.xlu1 %5050 }
 0x7eb   : > { %v5053_v57 = vunpack.i.h.bf16 %v5051_v22  ;;  %v5052_v16 = vunpack.i.l.bf16 %v5051_v22 }
 0x7ed   : > { %3613 = vmatpush.msra.mxu1 %v5053_v57  ;;  %3638 = vmatpush.msrb.mxu2 %v5052_v16  ;;  %v5567_v16 = vld [vmem:[%s8620_s3 + $0x8] sm:$0xff] }
 0x7ee   : > { %v5061_v37 = vpop.permute.xlu0 %5060  ;;  %3720 = vrot.lane.b32.xlu0 %v9005_v56, %s5730_s26 }
 0x7ef   : > { %v5063_v60 = vunpack.i.h.bf16 %v5061_v37  ;;  %3718 = vrot.lane.b32.xlu1 %v9006_v45, %s5730_s26  ;;  %v5062_v8 = vunpack.i.l.bf16 %v5061_v37 }
 0x7f0   : > { %3462 = vxpose.xlu2.b32.cont [13/16] (narrow) %v5037_v1, 16  ;;  %v5568_v1 = vld [vmem:[%s8620_s3] sm:$0xff] }
 0x7f1   : > { %3614 = vmatpush.msra.mxu1 %v5063_v60  ;;  %3639 = vmatpush.msrb.mxu2 %v5062_v8 }
 0x7f2   : > { %v5066_v15 = vpop.permute.xlu1 %5065 }
 0x7f3   : > { %v5068_v4 = vunpack.i.h.bf16 %v5066_v15  ;;  %v5067_v49 = vunpack.i.l.bf16 %v5066_v15 }
 0x7f5   : > { %3615 = vmatpush.msra.mxu1 %v5068_v4  ;;  %3640 = vmatpush.msrb.mxu2 %v5067_v49 }
 0x7f6   : > { %v5076_v26 = vpop.permute.xlu0 %5075  ;;  %3724 = vrot.lane.b32.xlu0 %v9007_v53, %s5730_s26 }
 0x7f7   : > { %v5078_v12 = vunpack.i.h.bf16 %v5076_v26  ;;  %3722 = vrot.lane.b32.xlu1 %v9008_v20, %s5730_s26  ;;  %3616 = vmatpush.msra.mxu1 %v5073_v0  ;;  %v5077_v63 = vunpack.i.l.bf16 %v5076_v26 }
 0x7f8   : > { %3463 = vxpose.xlu2.b32.cont [14/16] (narrow) %v5038_v7, 16  ;;  %3641 = vmatpush.msrb.mxu2 %v5072_v58 }
 0x7f9   : > { %3617 = vmatpush.msra.mxu1 %v5078_v12 }
 0x7fa   : > { %3642 = vmatpush.msrb.mxu2 %v5077_v63  ;;  %v5081_v29 = vpop.permute.xlu1 %5080 }
 0x7fb   : > { %v5083_v59 = vunpack.i.h.bf16 %v5081_v29  ;;  %v5082_v39 = vunpack.i.l.bf16 %v5081_v29 }
 0x7fd   : > { %3618 = vmatpush.msra.mxu1 %v5083_v59  ;;  %3643 = vmatpush.msrb.mxu2 %v5082_v39 }
 0x7fe   : > { %v5091_v19 = vpop.permute.xlu0 %5090  ;;  %3728 = vrot.lane.b32.xlu0 %v9009_v38, %s5730_s26 }
 0x7ff   : > { %v5093_v42 = vunpack.i.h.bf16 %v5091_v19  ;;  %3726 = vrot.lane.b32.xlu1 %v9010_v30, %s5730_s26  ;;  %3619 = vmatpush.msra.mxu1 %v5088_v21  ;;  %v5092_v41 = vunpack.i.l.bf16 %v5091_v19 }
 0x800   : > { %3464 = vxpose.xlu2.b32.cont [15/16] (narrow) %v5057_v31, 16  ;;  %3644 = vmatpush.msrb.mxu2 %v5087_v47 }
 0x801   : > { %3620 = vmatpush.msra.mxu1 %v5093_v42 }
 0x802   : > { %3645 = vmatpush.msrb.mxu2 %v5092_v41  ;;  %v5096_v52 = vpop.permute.xlu1 %5095 }
 0x803   : > { %v5098_v24 = vunpack.i.h.bf16 %v5096_v52  ;;  %v5097_v46 = vunpack.i.l.bf16 %v5096_v52 }
 0x805   : > { %3621 = vmatpush.msra.mxu1 %v5098_v24  ;;  %3646 = vmatpush.msrb.mxu2 %v5097_v46 }
 0x806   : > { %3732 = vrot.lane.b32.xlu0 %v9011_v2, %s5730_s26 }
 0x807   : > { %3730 = vrot.lane.b32.xlu1 %v9012_v54, %s5730_s26  ;;  %3622 = vmatpush.msra.mxu1 %v5103_v33 }
 0x808   : > { %3465 = vxpose.xlu2.b32.end [16/16] (narrow) %v5058_v3, 16  ;;  %3647 = vmatpush.msrb.mxu2 %v5102_v44 }
 0x80e   : > { %3736 = vrot.lane.b32.xlu0 %v9013_v43, %s5730_s26 }
 0x80f   : > { %3734 = vrot.lane.b32.xlu1 %v9014_v10, %s5730_s26 }
 0x816   : > { %3740 = vrot.lane.b32.xlu0 %v9015_v50, %s5730_s26 }
 0x817   : > { %3738 = vrot.lane.b32.xlu1 %v9016_v36, %s5730_s26 }
 0x818   : > { %v5106_v40 = vpop.permute.xlu0 %5105 }
 0x819   : > { %v5108_v61 = vunpack.i.h.bf16 %v5106_v40  ;;  %v5107_v6 = vunpack.i.l.bf16 %v5106_v40 }
 0x81b   : > { %3623 = vmatpush.msra.mxu1 %v5108_v61  ;;  %3648 = vmatpush.msrb.mxu2 %v5107_v6 }
 0x81e   : > { %3744 = vrot.lane.b32.xlu0 %v9017_v23, %s5730_s26 }
 0x81f   : > { %3742 = vrot.lane.b32.xlu1 %v9018_v14, %s5730_s26 }
 0x820   : > { %v3689_v57 = vpop.permute.xlu0 %3688 }
 0x821   : > { %v5111_v34 = vpop.permute.xlu1 %5110 }
 0x822   : > { %v5112_v51 = vunpack.i.l.bf16 %v5111_v34  ;;  %v5113_v25 = vunpack.i.h.bf16 %v5111_v34 }
 0x824   : > { %3624 = vmatpush.msra.mxu1 %v5112_v51  ;;  %v8334_v51 = vld [vmem:[%s8621_s4] ss:$0 sm:$0xff] }
 0x826   : > { %3625 = vmatpush.msra.mxu1 %v5113_v25  ;;  %3748 = vrot.lane.b32.xlu0 %v9019_v55, %s5730_s26 }
 0x827   : > { %3746 = vrot.lane.b32.xlu1 %v9020_v18, %s5730_s26  ;;  %4810 = vmatmul.lmr.bf16.vlgmr.msra.gmra.2.mxu1 }
 0x828   : > { %v3693_v56 = vpop.permute.xlu0 %3692 }
 0x829   : > { %v3466_v27 = vpop.trf.xlu2  ;;  %v3691_v37 = vpop.permute.xlu1 %3690 }
 0x82a   : > { %3649 = vmatmul.f32.vlgmr.msrb.gmra.mxu2 %v3466_v27 }
 0x82f   : > { %3750 = vrot.lane.b32.xlu1 %v9021_v5, %s5730_s26  ;;  %4811 = vmatmul.lmr.bf16.gmra.2.mxu1  ;;  %s4392_s26 = scalar_lea.hbm %s8625_s8, %s5808_s17 }
 0x830   : > { %v3697_v45 = vpop.permute.xlu0 %3696  ;;  %s4396_s29 = sshll.u32 %s4392_s26, 4  ;;  %s4397_s29 = int_to_ptr.hbm [resolvable:$true] %s4396_s29 }
 0x831   : > { %v3467_v48 = vpop.trf.xlu2  ;;  %v3695_v60 = vpop.permute.xlu1 %3694  ;;  %s5584_s21 = sshra.s32 %s4397_s29, 4  ;;  %s5585_s21 = int_to_ptr.hbm [resolvable:$true] %s5584_s21 }
 0x832   : > { %3652 = vmatmul.f32.gmra.mxu2 %v3467_v48  ;;  %s5586_s0 = scalar_lea.hbm %s5585_s21, 1  ;;  %p5591_p0 = scmp.lt.s32.totalorder %s5585_s21, %s8625_s8 }
 0x833   : > { %p5587_p11 = scmp.ne.s32.totalorder %s5585_s21, %s5586_s0  ;;  %p5592_p1 = scmp.lt.s32.totalorder %s5590_s1, %s5586_s0 }
 0x835   : > { %p5588_p12 = pnand %p5587_p11, %p5827_p5  ;;  %p5593_p2 = por %p5592_p1, %p5591_p0 }
 0x837   : > { %p5589_p13 = pneg %p5588_p12 }
 0x838   : > { %v3701_v28 = vpop.permute.xlu0 %3700 }
 0x839   : > { %v3699_v8 = vpop.permute.xlu1 %3698  ;;  %p5594_p3 = pnand %p5593_p2, %p5589_p13 }
 0x840   : > { %v3705_v4 = vpop.permute.xlu0 %3704 }
 0x841   : > { %v3703_v15 = vpop.permute.xlu1 %3702 }
 0x848   : > { %v3709_v0 = vpop.permute.xlu0 %3708 }
 0x849   : > { %v3707_v49 = vpop.permute.xlu1 %3706 }
 0x850   : > { %v3713_v26 = vpop.permute.xlu0 %3712 }
 0x851   : > { %v3711_v7 = vpop.permute.xlu1 %3710 }
 0x858   : > { %v3717_v58 = vpop.permute.xlu0 %3716 }
 0x859   : > { %v3715_v53 = vpop.permute.xlu1 %3714 }
 0x860   : > { %v3721_v20 = vpop.permute.xlu0 %3720 }
 0x861   : > { %v3719_v12 = vpop.permute.xlu1 %3718 }
 0x868   : > { %v3725_v59 = vpop.permute.xlu0 %3724 }
 0x869   : > { %v3723_v9 = vpop.permute.xlu1 %3722 }
 0x870   : > { %v3729_v19 = vpop.permute.xlu0 %3728 }
 0x871   : > { %v3727_v21 = vpop.permute.xlu1 %3726 }
 0x878   : > { %v3733_v30 = vpop.permute.xlu0 %3732 }
 0x879   : > { %v3731_v47 = vpop.permute.xlu1 %3730 }
 0x880   : > { %v3737_v24 = vpop.permute.xlu0 %3736 }
 0x881   : > { %v3735_v35 = vpop.permute.xlu1 %3734 }
 0x888   : > { %v3741_v2 = vpop.permute.xlu0 %3740 }
 0x889   : > { %v3739_v33 = vpop.permute.xlu1 %3738 }
 0x890   : > { %v3745_v10 = vpop.permute.xlu0 %3744 }
 0x891   : > { %v3743_v54 = vpop.permute.xlu1 %3742 }
 0x898   : > { %v3749_v61 = vpop.permute.xlu0 %3748 }
 0x899   : > { %v3747_v36 = vpop.permute.xlu1 %3746 }
 0x8a1   : > { %v3751_v23 = vpop.permute.xlu1 %3750 }
 0x8a4   : > { %v3627_v62 = vpop.f32.mrf.mxu1 }
 0x8ac   : > { %v3630_v17 = vpop.f32.mrf.mxu1 }
 0x8ad   : > { %v3650_v32 = vpop.f32.mrf.mxu2 }
 0x8ae   : > { %v3651_v22 = vadd.f32 %v3650_v32, %v3627_v62 }
 0x8b5   : > { %v3653_v13 = vpop.f32.mrf.mxu2 }
 0x8b6   : > { %v3654_v11 = vadd.f32 %v3653_v13, %v3630_v17 }
 0x8b8   : > { %3830 = vmatpush.msra.mxu2 %v3654_v11 }
 0x8ba   : > { %3831 = vmatpush.msra.mxu2 %v3651_v22 }
 0x8bb   : > { %4714 = vmatmul.msk.f32.vlgmr.msra.gmra.mxu2 %vm1913_vm5, %v3689_v57 }
 0x8bc   : > { %4785 = vmatpush.msrb.mxu2 %v5567_v16 }
 0x8be   : > { %4786 = vmatpush.msrb.mxu2 %v5568_v1 }
 0x8c3   : > { %4715 = vmatmul.msk.f32.gmra.mxu2 %vm1913_vm5, %v3691_v37 }
 0x8cb   : > { %4716 = vmatmul.msk.f32.gmra.mxu2 %vm1913_vm5, %v3693_v56 }
 0x8d3   : > { %4717 = vmatmul.msk.f32.gmra.mxu2 %vm1913_vm5, %v3695_v60 }
 0x8db   : > { %4718 = vmatmul.msk.f32.gmra.mxu2 %vm1913_vm5, %v3697_v45 }
 0x8e3   : > { %4719 = vmatmul.msk.f32.gmra.mxu2 %vm1913_vm5, %v3699_v8 }
 0x8eb   : > { %4720 = vmatmul.msk.f32.gmra.mxu2 %vm1913_vm5, %v3701_v28 }
 0x8f3   : > { %4721 = vmatmul.msk.f32.gmra.mxu2 %vm1913_vm5, %v3703_v15 }
 0x8fb   : > { %4722 = vmatmul.msk.f32.gmra.mxu2 %vm1913_vm5, %v3705_v4 }
 0x903   : > { %4723 = vmatmul.msk.f32.gmra.mxu2 %vm1913_vm5, %v3707_v49 }
 0x90b   : > { %4724 = vmatmul.msk.f32.gmra.mxu2 %vm1913_vm5, %v3709_v0 }
 0x913   : > { %4725 = vmatmul.msk.f32.gmra.mxu2 %vm1913_vm5, %v3711_v7 }
 0x91b   : > { %4726 = vmatmul.msk.f32.gmra.mxu2 %vm1913_vm5, %v3713_v26 }
 0x923   : > { %4727 = vmatmul.msk.f32.gmra.mxu2 %vm1913_vm5, %v3715_v53 }
 0x92b   : > { %4728 = vmatmul.msk.f32.gmra.mxu2 %vm1913_vm5, %v3717_v58 }
 0x933   : > { %4729 = vmatmul.msk.f32.gmra.mxu2 %vm1913_vm5, %v3719_v12 }
 0x93b   : > { %4730 = vmatmul.msk.f32.gmra.mxu2 %vm1913_vm5, %v3721_v20 }
 0x93e   : > { %v3833_v63 = vpop.f32.mrf.mxu2 }
 0x93f   : > { %4746 = vmatmul.msk.f32.vlgmr.msrb.gmra.mxu0 %vm1913_vm5, %v3833_v63 }
 0x943   : > { %4731 = vmatmul.msk.f32.gmra.mxu2 %vm1913_vm5, %v3723_v9 }
 0x946   : > { %v3836_v29 = vpop.f32.mrf.mxu2 }
 0x947   : > { %4747 = vmatmul.msk.f32.gmra.mxu0 %vm1913_vm5, %v3836_v29 }
 0x94b   : > { %4732 = vmatmul.msk.f32.gmra.mxu2 %vm1913_vm5, %v3725_v59 }
 0x94e   : > { %v3839_v39 = vpop.f32.mrf.mxu2 }
 0x94f   : > { %4748 = vmatmul.msk.f32.gmra.mxu0 %vm1913_vm5, %v3839_v39 }
 0x953   : > { %4733 = vmatmul.msk.f32.gmra.mxu2 %vm1913_vm5, %v3727_v21 }
 0x956   : > { %v3842_v31 = vpop.f32.mrf.mxu2 }
 0x957   : > { %4749 = vmatmul.msk.f32.gmra.mxu0 %vm1913_vm5, %v3842_v31 }
 0x95b   : > { %4734 = vmatmul.msk.f32.gmra.mxu2 %vm1913_vm5, %v3729_v19 }
 0x95e   : > { %v3845_v38 = vpop.f32.mrf.mxu2 }
 0x95f   : > { %4750 = vmatmul.msk.f32.gmra.mxu0 %vm1913_vm5, %v3845_v38 }
 0x963   : > { %4735 = vmatmul.msk.f32.gmra.mxu2 %vm1913_vm5, %v3731_v47 }
 0x966   : > { %v3848_v42 = vpop.f32.mrf.mxu2 }
 0x967   : > { %4751 = vmatmul.msk.f32.gmra.mxu0 %vm1913_vm5, %v3848_v42 }
 0x96b   : > { %4736 = vmatmul.msk.f32.gmra.mxu2 %vm1913_vm5, %v3733_v30 }
 0x96e   : > { %v3851_v41 = vpop.f32.mrf.mxu2 }
 0x96f   : > { %4752 = vmatmul.msk.f32.gmra.mxu0 %vm1913_vm5, %v3851_v41 }
 0x973   : > { %4737 = vmatmul.msk.f32.gmra.mxu2 %vm1913_vm5, %v3735_v35 }
 0x976   : > { %v3854_v52 = vpop.f32.mrf.mxu2 }
 0x977   : > { %4753 = vmatmul.msk.f32.gmra.mxu0 %vm1913_vm5, %v3854_v52 }
 0x97b   : > { %4738 = vmatmul.msk.f32.gmra.mxu2 %vm1913_vm5, %v3737_v24 }
 0x97e   : > { %v3857_v46 = vpop.f32.mrf.mxu2 }
 0x97f   : > { %4754 = vmatmul.msk.f32.gmra.mxu0 %vm1913_vm5, %v3857_v46 }
 0x983   : > { %4739 = vmatmul.msk.f32.gmra.mxu2 %vm1913_vm5, %v3739_v33 }
 0x986   : > { %v3860_v3 = vpop.f32.mrf.mxu2 }
 0x987   : > { %4755 = vmatmul.msk.f32.gmra.mxu0 %vm1913_vm5, %v3860_v3 }
 0x98b   : > { %4740 = vmatmul.msk.f32.gmra.mxu2 %vm1913_vm5, %v3741_v2 }
 0x98e   : > { %v3863_v44 = vpop.f32.mrf.mxu2 }
 0x98f   : > { %4756 = vmatmul.msk.f32.gmra.mxu0 %vm1913_vm5, %v3863_v44 }
 0x993   : > { %4741 = vmatmul.msk.f32.gmra.mxu2 %vm1913_vm5, %v3743_v54 }
 0x996   : > { %v3866_v43 = vpop.f32.mrf.mxu2 }
 0x997   : > { %4757 = vmatmul.msk.f32.gmra.mxu0 %vm1913_vm5, %v3866_v43 }
 0x99b   : > { %4742 = vmatmul.msk.f32.gmra.mxu2 %vm1913_vm5, %v3745_v10 }
 0x99e   : > { %v3869_v50 = vpop.f32.mrf.mxu2 }
 0x99f   : > { %4758 = vmatmul.msk.f32.gmra.mxu0 %vm1913_vm5, %v3869_v50 }
 0x9a3   : > { %4743 = vmatmul.msk.f32.gmra.mxu2 %vm1913_vm5, %v3747_v36 }
 0x9a6   : > { %v3872_v40 = vpop.f32.mrf.mxu2 }
 0x9a7   : > { %4759 = vmatmul.msk.f32.gmra.mxu0 %vm1913_vm5, %v3872_v40 }
 0x9ab   : > { %4744 = vmatmul.msk.f32.gmra.mxu2 %vm1913_vm5, %v3749_v61 }
 0x9ae   : > { %v3875_v6 = vpop.f32.mrf.mxu2 }
 0x9af   : > { %4760 = vmatmul.msk.f32.gmra.mxu0 %vm1913_vm5, %v3875_v6 }
 0x9b3   : > { %4745 = vmatmul.msk.f32.gmra.mxu2 %vm1913_vm5, %v3751_v23 }
 0x9b6   : > { %v3878_v14 = vpop.f32.mrf.mxu2 }
 0x9b7   : > { %4761 = vmatmul.msk.f32.gmra.mxu0 %vm1913_vm5, %v3878_v14 }
 0x9bc   : > { %v4042_v34 = vpop.f32.mrf.mxu0 }
 0x9bd   : > { %v4043_v25 = vadd.f32 %v8334_v51, %v4042_v34 }
 0x9be   : > { %v3881_v55 = vpop.f32.mrf.mxu2 }
 0x9bf   : > { %4138 = vst.msk [vmem:[%s8329_s12] sm:$0xff] %vm443_vm0, %v4043_v25  ;;  %4762 = vmatmul.msk.f32.gmra.mxu0 %vm1913_vm5, %v3881_v55  ;;  %v4240_v27 = vmul.f32 %v4043_v25, %v4043_v25  ;;  %v4170_v62 = vsel %vm443_vm0, %v4043_v25, 0.0 }
 0x9c1   : > { %v4272_v11 = vsel %vm443_vm0, %v4240_v27, 0.0 }
 0x9c4   : > { %v4045_v18 = vpop.f32.mrf.mxu0 }
 0x9c5   : > { %v4046_v5 = vadd.f32 %v8334_v51, %v4045_v18 }
 0x9c6   : > { %v3884_v48 = vpop.f32.mrf.mxu2 }
 0x9c7   : > { %4139 = vst.msk [vmem:[%s8329_s12 + $0x8] sm:$0xff] %vm443_vm0, %v4046_v5  ;;  %v4171_v32 = vsel %vm443_vm0, %v4046_v5, 0.0  ;;  %v4241_v17 = vmul.f32 %v4046_v5, %v4046_v5  ;;  %4763 = vmatmul.msk.f32.gmra.mxu0 %vm1913_vm5, %v3884_v48 }
 0x9c8   : > { %v4172_v13 = vadd.f32 %v4171_v32, %v4170_v62 }
 0x9c9   : > { %v4273_v22 = vsel %vm443_vm0, %v4241_v17, 0.0 }
 0x9ca   : > { %v4274_v57 = vadd.f32 %v4273_v22, %v4272_v11 }
 0x9cc   : > { %v4048_v16 = vpop.f32.mrf.mxu0 }
 0x9cd   : > { %v4049_v1 = vadd.f32 %v8334_v51, %v4048_v16 }
 0x9ce   : > { %v3887_v37 = vpop.f32.mrf.mxu2 }
 0x9cf   : > { %4140 = vst.msk [vmem:[%s8329_s12 + $0x10] sm:$0xff] %vm443_vm0, %v4049_v1  ;;  %v4173_v56 = vsel %vm443_vm0, %v4049_v1, 0.0  ;;  %v4242_v60 = vmul.f32 %v4049_v1, %v4049_v1  ;;  %4764 = vmatmul.msk.f32.gmra.mxu0 %vm1913_vm5, %v3887_v37 }
 0x9d0   : > { %v4174_v45 = vadd.f32 %v4173_v56, %v4172_v13 }
 0x9d1   : > { %v4275_v8 = vsel %vm443_vm0, %v4242_v60, 0.0 }
 0x9d2   : > { %v4276_v28 = vadd.f32 %v4275_v8, %v4274_v57 }
 0x9d4   : > { %v4051_v15 = vpop.f32.mrf.mxu0 }
 0x9d5   : > { %v4052_v4 = vadd.f32 %v8334_v51, %v4051_v15 }
 0x9d6   : > { %v3890_v49 = vpop.f32.mrf.mxu2 }
 0x9d7   : > { %4141 = vst.msk [vmem:[%s8329_s12 + $0x18] sm:$0xff] %vm443_vm0, %v4052_v4  ;;  %v4175_v0 = vsel %vm443_vm0, %v4052_v4, 0.0  ;;  %v4243_v7 = vmul.f32 %v4052_v4, %v4052_v4  ;;  %4765 = vmatmul.msk.f32.gmra.mxu0 %vm1913_vm5, %v3890_v49 }
 0x9d8   : > { %v4176_v26 = vadd.f32 %v4175_v0, %v4174_v45 }
 0x9d9   : > { %v4277_v53 = vsel %vm443_vm0, %v4243_v7, 0.0 }
 0x9da   : > { %v4278_v58 = vadd.f32 %v4277_v53, %v4276_v28 }
 0x9dc   : > { %v4054_v12 = vpop.f32.mrf.mxu0 }
 0x9dd   : > { %v4055_v20 = vadd.f32 %v8334_v51, %v4054_v12 }
 0x9de   : > { %v3893_v63 = vpop.f32.mrf.mxu2 }
 0x9df   : > { %4142 = vst.msk [vmem:[%s8329_s12 + $0x20] sm:$0xff] %vm443_vm0, %v4055_v20  ;;  %v4177_v9 = vsel %vm443_vm0, %v4055_v20, 0.0  ;;  %v4244_v29 = vmul.f32 %v4055_v20, %v4055_v20  ;;  %4766 = vmatmul.msk.f32.gmra.mxu0 %vm1913_vm5, %v3893_v63 }
 0x9e0   : > { %v4178_v59 = vadd.f32 %v4177_v9, %v4176_v26 }
 0x9e1   : > { %v4279_v39 = vsel %vm443_vm0, %v4244_v29, 0.0 }
 0x9e2   : > { %v4280_v21 = vadd.f32 %v4279_v39, %v4278_v58 }
 0x9e4   : > { %v4057_v31 = vpop.f32.mrf.mxu0 }
 0x9e5   : > { %v4058_v19 = vadd.f32 %v8334_v51, %v4057_v31 }
 0x9e6   : > { %v3896_v38 = vpop.f32.mrf.mxu2 }
 0x9e7   : > { %4143 = vst.msk [vmem:[%s8329_s12 + $0x28] sm:$0xff] %vm443_vm0, %v4058_v19  ;;  %v4179_v47 = vsel %vm443_vm0, %v4058_v19, 0.0  ;;  %v4245_v42 = vmul.f32 %v4058_v19, %v4058_v19  ;;  %4767 = vmatmul.msk.f32.gmra.mxu0 %vm1913_vm5, %v3896_v38 }
 0x9e8   : > { %v4180_v30 = vadd.f32 %v4179_v47, %v4178_v59 }
 0x9e9   : > { %v4281_v41 = vsel %vm443_vm0, %v4245_v42, 0.0 }
 0x9ea   : > { %v4282_v35 = vadd.f32 %v4281_v41, %v4280_v21 }
 0x9ec   : > { %v4060_v52 = vpop.f32.mrf.mxu0 }
 0x9ed   : > { %v4061_v24 = vadd.f32 %v8334_v51, %v4060_v52 }
 0x9ee   : > { %v3899_v46 = vpop.f32.mrf.mxu2 }
 0x9ef   : > { %4144 = vst.msk [vmem:[%s8329_s12 + $0x30] sm:$0xff] %vm443_vm0, %v4061_v24  ;;  %v4181_v33 = vsel %vm443_vm0, %v4061_v24, 0.0  ;;  %v4246_v3 = vmul.f32 %v4061_v24, %v4061_v24  ;;  %4768 = vmatmul.msk.f32.gmra.mxu0 %vm1913_vm5, %v3899_v46 }
 0x9f0   : > { %v4182_v2 = vadd.f32 %v4181_v33, %v4180_v30 }
 0x9f1   : > { %v4283_v44 = vsel %vm443_vm0, %v4246_v3, 0.0 }
 0x9f2   : > { %v4284_v54 = vadd.f32 %v4283_v44, %v4282_v35 }
 0x9f4   : > { %v4063_v43 = vpop.f32.mrf.mxu0 }
 0x9f5   : > { %v4064_v10 = vadd.f32 %v8334_v51, %v4063_v43 }
 0x9f6   : > { %v3902_v50 = vpop.f32.mrf.mxu2 }
 0x9f7   : > { %4145 = vst.msk [vmem:[%s8329_s12 + $0x38] sm:$0xff] %vm443_vm0, %v4064_v10  ;;  %v4183_v36 = vsel %vm443_vm0, %v4064_v10, 0.0  ;;  %v4247_v40 = vmul.f32 %v4064_v10, %v4064_v10  ;;  %4769 = vmatmul.msk.f32.gmra.mxu0 %vm1913_vm5, %v3902_v50 }
 0x9f8   : > { %v4184_v61 = vadd.f32 %v4183_v36, %v4182_v2 }
 0x9f9   : > { %v4285_v6 = vsel %vm443_vm0, %v4247_v40, 0.0 }
 0x9fa   : > { %v4286_v23 = vadd.f32 %v4285_v6, %v4284_v54 }
 0x9fc   : > { %v4066_v14 = vpop.f32.mrf.mxu0 }
 0x9fd   : > { %v4067_v34 = vadd.f32 %v8334_v51, %v4066_v14 }
 0x9fe   : > { %v3905_v25 = vpop.f32.mrf.mxu2 }
 0x9ff   : > { %4146 = vst.msk [vmem:[%s8329_s12 + $0x40] sm:$0xff] %vm443_vm0, %v4067_v34  ;;  %v4185_v55 = vsel %vm443_vm0, %v4067_v34, 0.0  ;;  %v4248_v18 = vmul.f32 %v4067_v34, %v4067_v34  ;;  %4770 = vmatmul.msk.f32.gmra.mxu0 %vm1913_vm5, %v3905_v25 }
 0xa00   : > { %v4186_v27 = vadd.f32 %v4185_v55, %v4184_v61 }
 0xa01   : > { %v4287_v5 = vsel %vm443_vm0, %v4248_v18, 0.0 }
 0xa02   : > { %v4288_v48 = vadd.f32 %v4287_v5, %v4286_v23 }
 0xa04   : > { %v4069_v62 = vpop.f32.mrf.mxu0 }
 0xa05   : > { %v4070_v32 = vadd.f32 %v8334_v51, %v4069_v62 }
 0xa06   : > { %v3908_v17 = vpop.f32.mrf.mxu2 }
 0xa07   : > { %4147 = vst.msk [vmem:[%s8329_s12 + $0x48] sm:$0xff] %vm443_vm0, %v4070_v32  ;;  %v4187_v13 = vsel %vm443_vm0, %v4070_v32, 0.0  ;;  %v4249_v11 = vmul.f32 %v4070_v32, %v4070_v32  ;;  %4771 = vmatmul.msk.f32.gmra.mxu0 %vm1913_vm5, %v3908_v17 }
 0xa08   : > { %v4188_v22 = vadd.f32 %v4187_v13, %v4186_v27 }
 0xa09   : > { %v4289_v57 = vsel %vm443_vm0, %v4249_v11, 0.0 }
 0xa0a   : > { %v4290_v16 = vadd.f32 %v4289_v57, %v4288_v48 }
 0xa0c   : > { %v4072_v1 = vpop.f32.mrf.mxu0 }
 0xa0d   : > { %v4073_v37 = vadd.f32 %v8334_v51, %v4072_v1 }
 0xa0e   : > { %v3911_v56 = vpop.f32.mrf.mxu2 }
 0xa0f   : > { %4148 = vst.msk [vmem:[%s8329_s12 + $0x50] sm:$0xff] %vm443_vm0, %v4073_v37  ;;  %v4189_v60 = vsel %vm443_vm0, %v4073_v37, 0.0  ;;  %v4250_v45 = vmul.f32 %v4073_v37, %v4073_v37  ;;  %4772 = vmatmul.msk.f32.gmra.mxu0 %vm1913_vm5, %v3911_v56 }
 0xa10   : > { %v4190_v8 = vadd.f32 %v4189_v60, %v4188_v22 }
 0xa11   : > { %v4291_v28 = vsel %vm443_vm0, %v4250_v45, 0.0 }
 0xa12   : > { %v4292_v15 = vadd.f32 %v4291_v28, %v4290_v16 }
 0xa14   : > { %v4075_v4 = vpop.f32.mrf.mxu0 }
 0xa15   : > { %v4076_v49 = vadd.f32 %v8334_v51, %v4075_v4 }
 0xa16   : > { %v3914_v0 = vpop.f32.mrf.mxu2 }
 0xa17   : > { %4149 = vst.msk [vmem:[%s8329_s12 + $0x58] sm:$0xff] %vm443_vm0, %v4076_v49  ;;  %v4191_v7 = vsel %vm443_vm0, %v4076_v49, 0.0  ;;  %v4251_v26 = vmul.f32 %v4076_v49, %v4076_v49  ;;  %4773 = vmatmul.msk.f32.gmra.mxu0 %vm1913_vm5, %v3914_v0 }
 0xa18   : > { %v4192_v53 = vadd.f32 %v4191_v7, %v4190_v8 }
 0xa19   : > { %v4293_v58 = vsel %vm443_vm0, %v4251_v26, 0.0 }
 0xa1a   : > { %v4294_v12 = vadd.f32 %v4293_v58, %v4292_v15 }
 0xa1c   : > { %v4078_v20 = vpop.f32.mrf.mxu0 }
 0xa1d   : > { %v4079_v63 = vadd.f32 %v8334_v51, %v4078_v20 }
 0xa1e   : > { %v3917_v9 = vpop.f32.mrf.mxu2 }
 0xa1f   : > { %4150 = vst.msk [vmem:[%s8329_s12 + $0x60] sm:$0xff] %vm443_vm0, %v4079_v63  ;;  %v4193_v29 = vsel %vm443_vm0, %v4079_v63, 0.0  ;;  %v4252_v59 = vmul.f32 %v4079_v63, %v4079_v63  ;;  %4774 = vmatmul.msk.f32.gmra.mxu0 %vm1913_vm5, %v3917_v9 }
 0xa20   : > { %v4194_v39 = vadd.f32 %v4193_v29, %v4192_v53 }
 0xa21   : > { %v4295_v21 = vsel %vm443_vm0, %v4252_v59, 0.0 }
 0xa22   : > { %v4296_v31 = vadd.f32 %v4295_v21, %v4294_v12 }
 0xa24   : > { %v4081_v19 = vpop.f32.mrf.mxu0 }
 0xa25   : > { %v4082_v38 = vadd.f32 %v8334_v51, %v4081_v19 }
 0xa26   : > { %v3920_v47 = vpop.f32.mrf.mxu2 }
 0xa27   : > { %4151 = vst.msk [vmem:[%s8329_s12 + $0x68] sm:$0xff] %vm443_vm0, %v4082_v38  ;;  %v4195_v42 = vsel %vm443_vm0, %v4082_v38, 0.0  ;;  %v4253_v30 = vmul.f32 %v4082_v38, %v4082_v38  ;;  %4775 = vmatmul.msk.f32.gmra.mxu0 %vm1913_vm5, %v3920_v47 }
 0xa28   : > { %v4196_v41 = vadd.f32 %v4195_v42, %v4194_v39 }
 0xa29   : > { %v4297_v35 = vsel %vm443_vm0, %v4253_v30, 0.0 }
 0xa2a   : > { %v4298_v52 = vadd.f32 %v4297_v35, %v4296_v31 }
 0xa2c   : > { %v4084_v24 = vpop.f32.mrf.mxu0 }
 0xa2d   : > { %v4085_v46 = vadd.f32 %v8334_v51, %v4084_v24 }
 0xa2e   : > { %v3923_v33 = vpop.f32.mrf.mxu2 }
 0xa2f   : > { %4152 = vst.msk [vmem:[%s8329_s12 + $0x70] sm:$0xff] %vm443_vm0, %v4085_v46  ;;  %v4197_v3 = vsel %vm443_vm0, %v4085_v46, 0.0  ;;  %v4254_v2 = vmul.f32 %v4085_v46, %v4085_v46  ;;  %4776 = vmatmul.msk.f32.gmra.mxu0 %vm1913_vm5, %v3923_v33 }
 0xa30   : > { %v4198_v44 = vadd.f32 %v4197_v3, %v4196_v41 }
 0xa31   : > { %v4299_v54 = vsel %vm443_vm0, %v4254_v2, 0.0 }
 0xa32   : > { %v4300_v43 = vadd.f32 %v4299_v54, %v4298_v52 }
 0xa34   : > { %v4087_v10 = vpop.f32.mrf.mxu0 }
 0xa35   : > { %v4088_v50 = vadd.f32 %v8334_v51, %v4087_v10 }
 0xa36   : > { %v3926_v36 = vpop.f32.mrf.mxu2 }
 0xa37   : > { %4153 = vst.msk [vmem:[%s8329_s12 + $0x78] sm:$0xff] %vm443_vm0, %v4088_v50  ;;  %v4199_v40 = vsel %vm443_vm0, %v4088_v50, 0.0  ;;  %v4255_v61 = vmul.f32 %v4088_v50, %v4088_v50  ;;  %4777 = vmatmul.msk.f32.vlgmr.msrb.gmra.mxu2 %vm1913_vm5, %v3926_v36 }
 0xa38   : > { %v4200_v6 = vadd.f32 %v4199_v40, %v4198_v44 }
 0xa39   : > { %v4301_v23 = vsel %vm443_vm0, %v4255_v61, 0.0 }
 0xa3a   : > { %v4302_v14 = vadd.f32 %v4301_v23, %v4300_v43 }
 0xa3c   : > { %v4090_v34 = vpop.f32.mrf.mxu0 }
 0xa3d   : > { %v4091_v25 = vadd.f32 %v8334_v51, %v4090_v34 }
 0xa3f   : > { %4154 = vst.msk [vmem:[%s8329_s12 + $0x80] sm:$0xff] %vm443_vm0, %v4091_v25  ;;  %v4201_v55 = vsel %vm443_vm0, %v4091_v25, 0.0  ;;  %v4256_v18 = vmul.f32 %v4091_v25, %v4091_v25 }
 0xa40   : > { %v4202_v27 = vadd.f32 %v4201_v55, %v4200_v6 }
 0xa41   : > { %v4303_v5 = vsel %vm443_vm0, %v4256_v18, 0.0 }
 0xa42   : > { %v4304_v48 = vadd.f32 %v4303_v5, %v4302_v14 }
 0xa44   : > { %v4093_v62 = vpop.f32.mrf.mxu0 }
 0xa45   : > { %v4094_v32 = vadd.f32 %v8334_v51, %v4093_v62 }
 0xa47   : > { %4155 = vst.msk [vmem:[%s8329_s12 + $0x88] sm:$0xff] %vm443_vm0, %v4094_v32  ;;  %v4203_v17 = vsel %vm443_vm0, %v4094_v32, 0.0  ;;  %v4257_v13 = vmul.f32 %v4094_v32, %v4094_v32 }
 0xa48   : > { %v4204_v11 = vadd.f32 %v4203_v17, %v4202_v27 }
 0xa49   : > { %v4305_v22 = vsel %vm443_vm0, %v4257_v13, 0.0 }
 0xa4a   : > { %v4306_v57 = vadd.f32 %v4305_v22, %v4304_v48 }
 0xa4c   : > { %v4096_v16 = vpop.f32.mrf.mxu0 }
 0xa4d   : > { %5597 = shalt.err (!%p5594_p3)
}
 0xa4e   : > { %4819 = dma.vmem_to_hbm [thread:$0]  (%p5827_p5), %s4395_s27, 16, %s4397_s29, %s8449_s18   ;;  %v4097_v1 = vadd.f32 %v8334_v51, %v4096_v16 }
 0xa4f   : > { %s4379_s2 = scalar_lea.hbm %s8624_s7, %s5808_s17  ;;  %s9022_s21 = scalar_lea.vmem [#allocation2], %s7711_s20 }
 0xa50   : > { %s4381_s0 = sshll.u32 %s9022_s21, 4  ;;  %s4383_s1 = sshll.u32 %s4379_s2, 4  ;;  %4156 = vst.msk [vmem:[%s8329_s12 + $0x90] sm:$0xff] %vm443_vm0, %v4097_v1  ;;  %v4205_v37 = vsel %vm443_vm0, %v4097_v1, 0.0  ;;  %v4258_v56 = vmul.f32 %v4097_v1, %v4097_v1  ;;  %s4382_s0 = int_to_ptr.vmem [resolvable:$true] %s4381_s0  ;;  %s4384_s1 = int_to_ptr.hbm [resolvable:$true] %s4383_s1 }
 0xa51   : > { %v4206_v60 = vadd.f32 %v4205_v37, %v4204_v11  ;;  %s4353_s30 = scalar_lea.sflag [#allocation3], %s7711_s20  ;;  %s5612_s27 = sshra.s32 %s4384_s1, 4  ;;  %s5613_s27 = int_to_ptr.hbm [resolvable:$true] %s5612_s27 }
 0xa52   : > { %s5614_s29 = scalar_lea.hbm %s5613_s27, 1  ;;  %s5618_s28 = scalar_lea.hbm %s8624_s7, 2 }
 0xa53   : > { %p5615_p4 = scmp.ne.s32.totalorder %s5613_s27, %s5614_s29  ;;  %p5619_p9 = scmp.lt.s32.totalorder %s5613_s27, %s8624_s7 }
 0xa54   : > { %p5620_p10 = scmp.lt.s32.totalorder %s5618_s28, %s5614_s29 }
 0xa55   : > { %p5616_p7 = pnand %p5615_p4, %p5827_p5 }
 0xa56   : > { %p5621_p11 = por %p5620_p10, %p5619_p9 }
 0xa57   : > { %p5617_p8 = pneg %p5616_p7 }
 0xa59   : > { %p5622_p12 = pnand %p5621_p11, %p5617_p8 }
 0xa5b   : > { %5625 = shalt.err (!%p5622_p12)
}
 0xa5c   : > { %4818 = dma.vmem_to_hbm [thread:$0]  (%p5827_p5), %s4382_s0, 16, %s4384_s1, %s4353_s30   ;;  %v4307_v45 = vsel %vm443_vm0, %v4258_v56, 0.0  ;;  %v4099_v28 = vpop.f32.mrf.mxu0 }
 0xa5d   : > { %v4308_v8 = vadd.f32 %v4307_v45, %v4306_v57  ;;  %v4100_v15 = vadd.f32 %v8334_v51, %v4099_v28  ;;  %s4405_s1 = scalar_lea.hbm %s8626_s9, %s5808_s17  ;;  %s4418_s27 = scalar_lea.hbm %s8627_s10, %s5808_s17 }
 0xa5e   : > { %s384_s29 = scalar_lea.vmem [#allocation6], %s7711_s20  ;;  %s4409_s25 = sshll.u32 %s4405_s1, 4  ;;  %s4410_s25 = int_to_ptr.hbm [resolvable:$true] %s4409_s25 }
 0xa5f   : > { %4157 = vst.msk [vmem:[%s8329_s12 + $0x98] sm:$0xff] %vm443_vm0, %v4100_v15  ;;  %v4207_v4 = vsel %vm443_vm0, %v4100_v15, 0.0  ;;  %v4259_v49 = vmul.f32 %v4100_v15, %v4100_v15  ;;  %s8558_s11 = sshll.u32 %s384_s29, 4  ;;  %s390_s28 = scalar_lea.vmem [#allocation7], %s7711_s20  ;;  %s4408_s11 = int_to_ptr.vmem [resolvable:$true] %s8558_s11 }
 0xa60   : > { %v4208_v0 = vadd.f32 %v4207_v4, %v4206_v60  ;;  %s8561_s26 = sshll.u32 %s390_s28, 4  ;;  %s8563_s2 = sshll.u32 %s4418_s27, 4  ;;  %s4421_s26 = int_to_ptr.vmem [resolvable:$true] %s8561_s26  ;;  %s4423_s2 = int_to_ptr.hbm [resolvable:$true] %s8563_s2 }
 0xa61   : > { %v4309_v7 = vsel %vm443_vm0, %v4259_v49, 0.0  ;;  %s5640_s17 = sshra.s32 %s4410_s25, 4  ;;  %s5641_s17 = int_to_ptr.hbm [resolvable:$true] %s5640_s17 }
 0xa62   : > { %v4310_v26 = vadd.f32 %v4309_v7, %v4308_v8  ;;  %s5642_s21 = scalar_lea.hbm %s5641_s17, 1  ;;  %p5647_p2 = scmp.lt.s32.totalorder %s5641_s17, %s8626_s9 }
 0xa63   : > { %p5643_p13 = scmp.ne.s32.totalorder %s5641_s17, %s5642_s21 }
 0xa64   : > { %v4102_v53 = vpop.f32.mrf.mxu0 }
 0xa65   : > { %v4103_v58 = vadd.f32 %v8334_v51, %v4102_v53  ;;  %p5644_p0 = pnand %p5643_p13, %p5827_p5 }
 0xa67   : > { %4158 = vst.msk [vmem:[%s8329_s12 + $0xa0] sm:$0xff] %vm443_vm0, %v4103_v58  ;;  %v4209_v12 = vsel %vm443_vm0, %v4103_v58, 0.0  ;;  %v4260_v20 = vmul.f32 %v4103_v58, %v4103_v58  ;;  %p5645_p1 = pneg %p5644_p0 }
 0xa68   : > { %v4210_v63 = vadd.f32 %v4209_v12, %v4208_v0 }
 0xa69   : > { %v4311_v9 = vsel %vm443_vm0, %v4260_v20, 0.0 }
 0xa6a   : > { %v4312_v29 = vadd.f32 %v4311_v9, %v4310_v26 }
 0xa6c   : > { %v4105_v59 = vpop.f32.mrf.mxu0 }
 0xa6d   : > { %v4106_v39 = vadd.f32 %v8334_v51, %v4105_v59 }
 0xa6f   : > { %4159 = vst.msk [vmem:[%s8329_s12 + $0xa8] sm:$0xff] %vm443_vm0, %v4106_v39  ;;  %v4211_v21 = vsel %vm443_vm0, %v4106_v39, 0.0  ;;  %v4261_v31 = vmul.f32 %v4106_v39, %v4106_v39 }
 0xa70   : > { %v4212_v19 = vadd.f32 %v4211_v21, %v4210_v63 }
 0xa71   : > { %v4313_v38 = vsel %vm443_vm0, %v4261_v31, 0.0 }
 0xa72   : > { %v4314_v47 = vadd.f32 %v4313_v38, %v4312_v29 }
 0xa74   : > { %v4108_v42 = vpop.f32.mrf.mxu0 }
 0xa75   : > { %v4109_v30 = vadd.f32 %v8334_v51, %v4108_v42 }
 0xa77   : > { %4160 = vst.msk [vmem:[%s8329_s12 + $0xb0] sm:$0xff] %vm443_vm0, %v4109_v30  ;;  %v4262_v40 = vmul.f32 %v4109_v30, %v4109_v30  ;;  %v4213_v61 = vsel %vm443_vm0, %v4109_v30, 0.0 }
 0xa78   : > { %v4214_v25 = vadd.f32 %v4213_v61, %v4212_v19 }
 0xa79   : > { %v4315_v23 = vsel %vm443_vm0, %v4262_v40, 0.0 }
 0xa7a   : > { %v4316_v62 = vadd.f32 %v4315_v23, %v4314_v47 }
 0xa7c   : > { %v4111_v41 = vpop.f32.mrf.mxu0 }
 0xa7d   : > { %v4112_v35 = vadd.f32 %v8334_v51, %v4111_v41 }
 0xa7f   : > { %4161 = vst.msk [vmem:[%s8329_s12 + $0xb8] sm:$0xff] %vm443_vm0, %v4112_v35  ;;  %v4263_v6 = vmul.f32 %v4112_v35, %v4112_v35  ;;  %v4215_v14 = vsel %vm443_vm0, %v4112_v35, 0.0 }
 0xa80   : > { %v4216_v32 = vadd.f32 %v4215_v14, %v4214_v25 }
 0xa81   : > { %v4317_v18 = vsel %vm443_vm0, %v4263_v6, 0.0 }
 0xa82   : > { %v4318_v22 = vadd.f32 %v4317_v18, %v4316_v62 }
 0xa84   : > { %v4114_v52 = vpop.f32.mrf.mxu0 }
 0xa85   : > { %v4115_v24 = vadd.f32 %v8334_v51, %v4114_v52 }
 0xa87   : > { %4162 = vst.msk [vmem:[%s8329_s12 + $0xc0] sm:$0xff] %vm443_vm0, %v4115_v24  ;;  %v4264_v34 = vmul.f32 %v4115_v24, %v4115_v24  ;;  %v4217_v27 = vsel %vm443_vm0, %v4115_v24, 0.0 }
 0xa88   : > { %v4218_v57 = vadd.f32 %v4217_v27, %v4216_v32 }
 0xa89   : > { %v4319_v17 = vsel %vm443_vm0, %v4264_v34, 0.0 }
 0xa8a   : > { %v4320_v56 = vadd.f32 %v4319_v17, %v4318_v22 }
 0xa8c   : > { %v4117_v46 = vpop.f32.mrf.mxu0 }
 0xa8d   : > { %v4118_v33 = vadd.f32 %v8334_v51, %v4117_v46 }
 0xa8f   : > { %4163 = vst.msk [vmem:[%s8329_s12 + $0xc8] sm:$0xff] %vm443_vm0, %v4118_v33  ;;  %v4265_v5 = vmul.f32 %v4118_v33, %v4118_v33  ;;  %v4219_v13 = vsel %vm443_vm0, %v4118_v33, 0.0 }
 0xa90   : > { %v4220_v60 = vadd.f32 %v4219_v13, %v4218_v57 }
 0xa91   : > { %v4321_v16 = vsel %vm443_vm0, %v4265_v5, 0.0 }
 0xa92   : > { %v4322_v15 = vadd.f32 %v4321_v16, %v4320_v56 }
 0xa94   : > { %v4120_v3 = vpop.f32.mrf.mxu0 }
 0xa95   : > { %v4121_v2 = vadd.f32 %v8334_v51, %v4120_v3 }
 0xa97   : > { %4164 = vst.msk [vmem:[%s8329_s12 + $0xd0] sm:$0xff] %vm443_vm0, %v4121_v2  ;;  %v4266_v11 = vmul.f32 %v4121_v2, %v4121_v2  ;;  %v4221_v1 = vsel %vm443_vm0, %v4121_v2, 0.0 }
 0xa98   : > { %v4222_v4 = vadd.f32 %v4221_v1, %v4220_v60 }
 0xa99   : > { %v4323_v45 = vsel %vm443_vm0, %v4266_v11, 0.0 }
 0xa9a   : > { %v4324_v26 = vadd.f32 %v4323_v45, %v4322_v15 }
 0xa9c   : > { %v4123_v44 = vpop.f32.mrf.mxu0 }
 0xa9d   : > { %v4124_v54 = vadd.f32 %v8334_v51, %v4123_v44 }
 0xa9f   : > { %4165 = vst.msk [vmem:[%s8329_s12 + $0xd8] sm:$0xff] %vm443_vm0, %v4124_v54  ;;  %v4267_v37 = vmul.f32 %v4124_v54, %v4124_v54  ;;  %v4223_v8 = vsel %vm443_vm0, %v4124_v54, 0.0 }
 0xaa0   : > { %v4224_v53 = vadd.f32 %v4223_v8, %v4222_v4 }
 0xaa1   : > { %v4325_v49 = vsel %vm443_vm0, %v4267_v37, 0.0 }
 0xaa2   : > { %v4326_v63 = vadd.f32 %v4325_v49, %v4324_v26 }
 0xaa4   : > { %v4126_v43 = vpop.f32.mrf.mxu0 }
 0xaa5   : > { %v4127_v10 = vadd.f32 %v8334_v51, %v4126_v43 }
 0xaa7   : > { %4166 = vst.msk [vmem:[%s8329_s12 + $0xe0] sm:$0xff] %vm443_vm0, %v4127_v10  ;;  %v4268_v28 = vmul.f32 %v4127_v10, %v4127_v10  ;;  %v4225_v0 = vsel %vm443_vm0, %v4127_v10, 0.0 }
 0xaa8   : > { %v4226_v9 = vadd.f32 %v4225_v0, %v4224_v53 }
 0xaa9   : > { %v4327_v58 = vsel %vm443_vm0, %v4268_v28, 0.0 }
 0xaaa   : > { %v4328_v39 = vadd.f32 %v4327_v58, %v4326_v63 }
 0xaac   : > { %v4129_v50 = vpop.f32.mrf.mxu0 }
 0xaad   : > { %v4130_v36 = vadd.f32 %v8334_v51, %v4129_v50 }
 0xaaf   : > { %4167 = vst.msk [vmem:[%s8329_s12 + $0xe8] sm:$0xff] %vm443_vm0, %v4130_v36  ;;  %v4269_v7 = vmul.f32 %v4130_v36, %v4130_v36  ;;  %v4227_v12 = vsel %vm443_vm0, %v4130_v36, 0.0 }
 0xab0   : > { %v4228_v21 = vadd.f32 %v4227_v12, %v4226_v9 }
 0xab1   : > { %v4329_v29 = vsel %vm443_vm0, %v4269_v7, 0.0 }
 0xab2   : > { %v4330_v47 = vadd.f32 %v4329_v29, %v4328_v39 }
 0xab4   : > { %v4132_v55 = vpop.f32.mrf.mxu0 }
 0xab5   : > { %v4133_v48 = vadd.f32 %v8334_v51, %v4132_v55 }
 0xab7   : > { %4168 = vst.msk [vmem:[%s8329_s12 + $0xf0] sm:$0xff] %vm443_vm0, %v4133_v48  ;;  %v4270_v20 = vmul.f32 %v4133_v48, %v4133_v48  ;;  %v4229_v59 = vsel %vm443_vm0, %v4133_v48, 0.0 }
 0xab8   : > { %v4230_v42 = vadd.f32 %v4229_v59, %v4228_v21 }
 0xab9   : > { %v4331_v19 = vsel %vm443_vm0, %v4270_v20, 0.0 }
 0xaba   : > { %v4135_v31 = vpop.f32.mrf.mxu2  ;;  %v4332_v35 = vadd.f32 %v4331_v19, %v4330_v47 }
 0xabb   : > { %v4136_v38 = vadd.f32 %v8334_v51, %v4135_v31 }
 0xabd   : > { %4169 = vst.msk [vmem:[%s8329_s12 + $0xf8] sm:$0xff] %vm443_vm0, %v4136_v38  ;;  %v4231_v30 = vsel %vm443_vm0, %v4136_v38, 0.0  ;;  %v4271_v41 = vmul.f32 %v4136_v38, %v4136_v38  ;;  %s5646_s12 = scalar_lea.hbm %s8626_s9, 2 }
 0xabe   : > { %v4232_v52 = vadd.f32 %v4231_v30, %v4230_v42  ;;  %p5648_p3 = scmp.lt.s32.totalorder %s5646_s12, %s5642_s21 }
 0xabf   : > { %v4333_v24 = vsel %vm443_vm0, %v4271_v41, 0.0 }
 0xac0   : > { %v4233_v46 = vrot.slane %v4232_v52, 4  ;;  %v4334_v33 = vadd.f32 %v4333_v24, %v4332_v35  ;;  %p5649_p4 = por %p5648_p3, %p5647_p2 }
 0xac2   : > { %v4234_v3 = vadd.f32 %v4233_v46, %v4232_v52  ;;  %v4335_v2 = vrot.slane %v4334_v33, 4  ;;  %p5650_p7 = pnand %p5649_p4, %p5645_p1 }
 0xac4   : > { %v4235_v44 = vrot.slane %v4234_v3, 2  ;;  %v4336_v51 = vadd.f32 %v4335_v2, %v4334_v33 }
 0xac6   : > { %v4236_v54 = vadd.f32 %v4235_v44, %v4234_v3  ;;  %v4337_v43 = vrot.slane %v4336_v51, 2 }
 0xac8   : > { %v4237_v10 = vrot.slane %v4236_v54, 1  ;;  %v4338_v50 = vadd.f32 %v4337_v43, %v4336_v51 }
 0xaca   : > { %v4238_v36 = vadd.f32 %v4237_v10, %v4236_v54  ;;  %v4339_v40 = vrot.slane %v4338_v50, 1 }
 0xacc   : > { %4239 = vst.msk [vmem:[%s384_s29] sm:$0x1] %vm2224_vm6, %v4238_v36  ;;  %v4340_v61 = vadd.f32 %v4339_v40, %v4338_v50 }
 0xacd   : > { %5653 = shalt.err (!%p5650_p7)
}
 0xace   : > { %4820 = dma.vmem_to_hbm [thread:$0]  (%p5827_p5), %s4408_s11, 16, %s4410_s25, %s8449_s18   ;;  %4341 = vst.msk [vmem:[%s390_s28] sm:$0x1] %vm2224_vm6, %v4340_v61 }
 0xacf   : > { %s4365_s29 = scalar_lea.sflag [#allocation8], %s7711_s20  ;;  %s5668_s0 = sshra.s32 %s4423_s2, 4  ;;  %s5669_s0 = int_to_ptr.hbm [resolvable:$true] %s5668_s0 }
 0xad0   : > { %s5670_s1 = scalar_lea.hbm %s5669_s0, 1  ;;  %s5674_s12 = scalar_lea.hbm %s8627_s10, 2 }
 0xad1   : > { %p5671_p8 = scmp.ne.s32.totalorder %s5669_s0, %s5670_s1  ;;  %p5675_p11 = scmp.lt.s32.totalorder %s5669_s0, %s8627_s10 }
 0xad2   : > { %p5676_p12 = scmp.lt.s32.totalorder %s5674_s12, %s5670_s1 }
 0xad3   : > { %p5672_p9 = pnand %p5671_p8, %p5827_p5 }
 0xad4   : > { %p5677_p13 = por %p5676_p12, %p5675_p11 }
 0xad5   : > { %p5673_p10 = pneg %p5672_p9 }
 0xad7   : > { %p5678_p0 = pnand %p5677_p13, %p5673_p10 }
 0xad9   : > { %5681 = shalt.err (!%p5678_p0)
}
 0xada   : > { %4821 = dma.vmem_to_hbm [thread:$0]  (%p5827_p5), %s4421_s26, 16, %s4423_s2, %s4365_s29  }
 0xadb PF: > { %p4839_p1 = scmp.ge.s32.totalorder %s5724_s16, 2  ;;  %s4450_s18 = sand.u32 1, %s5712_s13  }
 0xadc   : > { %s4451_s20 = scalar_lea.sflag [#allocation3], %s4450_s18 }
 0xadd   : > { %p4827_p2 = pnand %p4839_p1, %p5831_p6 }
 0xadf   : > { %p4828_p3 = pneg %p4827_p2 }
 0xae1   : > { %5699 = dma.done.wait (%p4828_p3), %s4451_s20, 16  }
 0xae2   : > { %5701 = vsyncadd (%p4828_p3), %s4451_s20, 4294967280  ;;  %s9023_s11 = sadd.s32 4294967294, %s5724_s16  }
 0xae3   : > { %s4459_s23 = sand.u32 1, %s9023_s11  }
 0xae4   : > { %s4460_s25 = scalar_lea.sflag [#allocation5], %s4459_s23 }
 0xae5   : > { %5703 = dma.done.wait (%p4828_p3), %s4460_s25, 32  }
 0xae6   : > { %5705 = vsyncadd (%p4828_p3), %s4460_s25, 4294967264  ;;  %s4478_s28 = scalar_lea.sflag [#allocation8], %s4450_s18 }
 0xae7   : > { %5707 = dma.done.wait (%p4828_p3), %s4478_s28, 16  }
 0xae8   : > { %5709 = vsyncadd (%p4828_p3), %s4478_s28, 4294967280  ;;  %p27_p5 = scmp.ge.s32.totalorder %s5812_s19, 4   ;;  %s9024_s13 = smov %s5716_s14 }
 0xae9   : > { %s9025_s14 = smov %s5720_s15  ;;  %s9026_s15 = smov %s5825_s22 }
 0xaea   : > { %s9027_s16 = smov %s5812_s19  ;;  %29 = sbr.rel (!%p27_p5) target bundleno = 11 (0xb), region = 148 }
 0xaef   :  { %4483 = vsyncpa [#allocation3], 1 }
 0xaf0   :  { %4485 = vsyncpa [#allocation3 + $0x1], 1 }
 0xaf1   :  { %4486 = vsyncpa [#allocation5], 1 }
 0xaf2   :  { %4488 = vsyncpa [#allocation5 + $0x1], 1 }
 0xaf3   :  { %4489 = vsyncpa [#allocation8], 1 }
 0xaf4   :  { %4491 = vsyncpa [#allocation8 + $0x1], 1 }

</bundles_post_ra>
